<compile_context>
chip_gen: v7x
topology: tpu7x:2x2x1
jax: 0.10.0
libtpu: 0.0.40
codegen_flags: <defaults>
</compile_context>

<pallas_src>
import functools

import jax
import jax.numpy as jnp
import numpy as np
from jax.experimental import pallas as pl
from jax.experimental.pallas import tpu as pltpu

HIDDEN = 256     # fixed by the module: nn.LSTM(state_dim, 256, num_layers=2)
MLP_MID = 512    # Linear(256, 512)


def _gates_to_hc(gates, c_prev):
    """PyTorch gate ordering [i, f, g, o] -> (h_new, c_new)."""
    i = jax.nn.sigmoid(gates[:, 0 * HIDDEN:1 * HIDDEN])
    f = jax.nn.sigmoid(gates[:, 1 * HIDDEN:2 * HIDDEN])
    g = jnp.tanh(gates[:, 2 * HIDDEN:3 * HIDDEN])
    o = jax.nn.sigmoid(gates[:, 3 * HIDDEN:4 * HIDDEN])
    c_new = f * c_prev + i * g
    h_new = o * jnp.tanh(c_new)
    return h_new, c_new


def pokenet_kernel(
    # ---- inputs ----
    x_ref,                       # (B, S_pad)           f32   VMEM
    h0_ref, c0_ref,              # (2, B, H)            f32   VMEM (aliased to hn/cn)
    wc0_ref, b0_ref,             # (S_pad+H, 4H) bf16 VMEM, (1, 4H) f32 VMEM
    wc1_hbm, b1_ref,             # (2H, 4H)  bf16 HBM (manual DMA), (1, 4H) f32 VMEM
    w1_hbm, bm1_ref,             # (H, 512)  bf16 HBM,  (1, 512) f32 VMEM
    w2_hbm, bm2_ref,             # (512, H)  bf16 HBM,  (1, H)   f32 VMEM
    w3_hbm, bm3_ref,             # (H, Apad) bf16 HBM,  (1, Apad) f32 VMEM
    # ---- outputs ----
    q_ref, hn_ref, cn_ref,       # (B, Apad), (2, B, H), (2, B, H)  f32
    # ---- scratch ----
    wc1_buf, w1_buf, w2_buf, w3_buf,   # VMEM landing buffers for the HBM weights
    dma_sem,                           # DMA semaphores, shape (4,)
):
    bf16 = jnp.bfloat16
    S = x_ref.shape[1]

    # Kick off weight prefetches for everything downstream of LSTM layer 0 so
    # their HBM->VMEM DMAs overlap with layer-0 / layer-1 / MLP compute.
    cp_wc1 = pltpu.make_async_copy(wc1_hbm, wc1_buf, dma_sem.at[0]); cp_wc1.start()
    cp_w1 = pltpu.make_async_copy(w1_hbm, w1_buf, dma_sem.at[1]); cp_w1.start()
    cp_w2 = pltpu.make_async_copy(w2_hbm, w2_buf, dma_sem.at[2]); cp_w2.start()
    cp_w3 = pltpu.make_async_copy(w3_hbm, w3_buf, dma_sem.at[3]); cp_w3.start()

    # ---- LSTM layer 0 (single time step: seq_len == 1 from x.unsqueeze(1)) ----
    # Fused [W_ih; W_hh] array; two dots on static, tile-aligned row slices.
    g0 = (
        jnp.dot(x_ref[...].astype(bf16), wc0_ref[:S, :],
                preferred_element_type=jnp.float32)
        + jnp.dot(h0_ref[0].astype(bf16), wc0_ref[S:, :],
                  preferred_element_type=jnp.float32)
        + b0_ref[...]
    )
    h1, c1 = _gates_to_hc(g0, c0_ref[0])

    # ---- LSTM layer 1 (inter-layer Dropout(0.1) is identity at inference) ----
    cp_wc1.wait()
    g1 = (
        jnp.dot(h1.astype(bf16), wc1_buf[:HIDDEN, :],
                preferred_element_type=jnp.float32)
        + jnp.dot(h0_ref[1].astype(bf16), wc1_buf[HIDDEN:, :],
                  preferred_element_type=jnp.float32)
        + b1_ref[...]
    )
    h2, c2 = _gates_to_hc(g1, c0_ref[1])

    # ---- MLP head (Dropout(0.2) identity at inference) ----
    cp_w1.wait()
    z1 = jnp.maximum(
        jnp.dot(h2.astype(bf16), w1_buf[...],
                preferred_element_type=jnp.float32) + bm1_ref[...], 0.0)
    cp_w2.wait()
    z2 = jnp.maximum(
        jnp.dot(z1.astype(bf16), w2_buf[...],
                preferred_element_type=jnp.float32) + bm2_ref[...], 0.0)
    cp_w3.wait()
    q = (jnp.dot(z2.astype(bf16), w3_buf[...],
                 preferred_element_type=jnp.float32) + bm3_ref[...])

    # ---- outputs (all reads of h0/c0 happened above; hn/cn alias them in HBM) ----
    q_ref[...] = q
    hn_ref[0, :, :] = h1
    hn_ref[1, :, :] = h2
    cn_ref[0, :, :] = c1
    cn_ref[1, :, :] = c2


@functools.partial(jax.jit, static_argnames=("action_dim",))
def pokenet_forward(x, params, h0, c0, *, action_dim):
    B = x.shape[0]
    H = HIDDEN
    s_pad = params["wc0"].shape[0] - H           # padded state_dim (multiple of 16)
    a_pad = params["w3"].shape[1]                # lane-padded head width (>= 128)
    if x.shape[1] != s_pad:                      # zero-pad state_dim to the bf16 sublane tile
        x = jnp.pad(x, ((0, 0), (0, s_pad - x.shape[1])))

    vmem = pl.BlockSpec(memory_space=pltpu.MemorySpace.VMEM)
    hbm = pl.BlockSpec(memory_space=pl.ANY)
    bf16 = jnp.bfloat16

    # Advisory cost estimate: lets XLA overlap this tiny latency-bound custom
    # call with surrounding ops in an RL/decode loop.
    w_elems = ((s_pad + H) * 4 * H + 2 * H * 4 * H
               + H * MLP_MID + MLP_MID * H + H * a_pad)
    cost = pl.CostEstimate(
        flops=2 * B * w_elems,
        transcendentals=10 * B * H,   # 2 layers x (3 sigmoid + 2 tanh) per unit
        bytes_accessed=(2 * w_elems                                   # bf16 weights
                        + 4 * (8 * H + MLP_MID + H + a_pad)           # f32 biases
                        + 4 * (B * s_pad + 8 * B * H + B * a_pad)),   # f32 activations
    )

    out_shapes = (
        jax.ShapeDtypeStruct((B, a_pad), jnp.float32),
        jax.ShapeDtypeStruct((2, B, H), jnp.float32),
        jax.ShapeDtypeStruct((2, B, H), jnp.float32),
    )
    q_pad, hn, cn = pl.pallas_call(
        pokenet_kernel,
        out_shape=out_shapes,
        in_specs=[
            vmem, vmem, vmem,      # x, h0, c0
            vmem, vmem,            # wc0 (needed first -> auto-DMA), b_l0
            hbm, vmem,             # wc1 (manual overlap DMA), b_l1
            hbm, vmem,             # w1, b1
            hbm, vmem,             # w2, b2
            hbm, vmem,             # w3, b3
        ],
        out_specs=(vmem, vmem, vmem),
        scratch_shapes=[
            pltpu.VMEM((2 * H, 4 * H), bf16),   # wc1 landing buffer
            pltpu.VMEM((H, MLP_MID), bf16),     # w1
            pltpu.VMEM((MLP_MID, H), bf16),     # w2
            pltpu.VMEM((H, a_pad), bf16),       # w3
            pltpu.SemaphoreType.DMA((4,)),
        ],
        # h0 (input 1) -> hn (output 1), c0 (input 2) -> cn (output 2).
        # The HBM round-trip is elided only if the caller donates h0/c0.
        input_output_aliases={1: 1, 2: 2},
        compiler_params=pltpu.CompilerParams(vmem_limit_bytes=16 << 20),
        cost_estimate=cost,
    )(
        x, h0, c0,
        params["wc0"], params["b_l0"],
        params["wc1"], params["b_l1"],
        params["w1"], params["b1"],
        params["w2"], params["b2"],
        params["w3"], params["b3"],
    )
    return q_pad[:, :action_dim], (hn, cn)


def init_params(key, state_dim, action_dim):
    """Deterministic synthetic parameters.

    LSTM weights are fused ([W_ih; W_hh], stored (in, out)) in bfloat16;
    biases (b_ih + b_hh pre-combined) and MLP biases stay f32.  state_dim is
    zero-padded to a multiple of 16 (bf16 sublane tile); the head is
    zero-padded to a multiple of 128 lanes.
    NOTE: bf16 weight storage shifts numerics slightly vs. an f32 PyTorch
    module; acceptable for RL inference.
    """
    ks = jax.random.split(key, 14)
    s = 0.05
    bf16 = jnp.bfloat16
    s_pad = -(-state_dim // 16) * 16
    a_pad = -(-action_dim // 128) * 128

    def rnd(k, shape):
        return (s * jax.random.normal(k, shape)).astype(jnp.float32)

    # LSTM layer 0 (rows beyond state_dim are zero; x is zero-padded to match).
    wih0 = jnp.zeros((s_pad, 4 * HIDDEN), jnp.float32).at[:state_dim].set(
        rnd(ks[0], (state_dim, 4 * HIDDEN)))
    whh0 = rnd(ks[1], (HIDDEN, 4 * HIDDEN))
    b_l0 = rnd(ks[2], (1, 4 * HIDDEN)) + rnd(ks[3], (1, 4 * HIDDEN))  # b_ih + b_hh
    # LSTM layer 1.
    wih1 = rnd(ks[4], (HIDDEN, 4 * HIDDEN))
    whh1 = rnd(ks[5], (HIDDEN, 4 * HIDDEN))
    b_l1 = rnd(ks[6], (1, 4 * HIDDEN)) + rnd(ks[7], (1, 4 * HIDDEN))
    # MLP head (weights stored (in, out); last layer lane-padded to a_pad).
    w1 = rnd(ks[8], (HIDDEN, MLP_MID));   b1 = rnd(ks[9], (1, MLP_MID))
    w2 = rnd(ks[10], (MLP_MID, HIDDEN));  b2 = rnd(ks[11], (1, HIDDEN))
    w3 = jnp.zeros((HIDDEN, a_pad), jnp.float32).at[:, :action_dim].set(
        rnd(ks[12], (HIDDEN, action_dim)))
    b3 = jnp.zeros((1, a_pad), jnp.float32).at[:, :action_dim].set(
        rnd(ks[13], (1, action_dim)))
    return dict(
        wc0=jnp.concatenate([wih0, whh0], axis=0).astype(bf16), b_l0=b_l0,
        wc1=jnp.concatenate([wih1, whh1], axis=0).astype(bf16), b_l1=b_l1,
        w1=w1.astype(bf16), b1=b1,
        w2=w2.astype(bf16), b2=b2,
        w3=w3.astype(bf16), b3=b3,
    )


def pokenet_reference(x, params, h0, c0, action_dim):
    """Pure-JAX f32 reference using the same (bf16-quantized) weights."""
    wc0 = params["wc0"].astype(jnp.float32)
    wc1 = params["wc1"].astype(jnp.float32)
    s_pad = wc0.shape[0] - HIDDEN
    x = jnp.pad(x, ((0, 0), (0, s_pad - x.shape[1])))

    def step(inp, h_prev, c_prev, wc, b):
        gates = jnp.concatenate([inp, h_prev], axis=-1) @ wc + b
        return _gates_to_hc(gates, c_prev)

    h1, c1 = step(x, h0[0], c0[0], wc0, params["b_l0"])
    h2, c2 = step(h1, h0[1], c0[1], wc1, params["b_l1"])
    z1 = jnp.maximum(h2 @ params["w1"].astype(jnp.float32) + params["b1"], 0.0)
    z2 = jnp.maximum(z1 @ params["w2"].astype(jnp.float32) + params["b2"], 0.0)
    q = z2 @ params["w3"].astype(jnp.float32) + params["b3"]
    hn = jnp.stack([h1, h2], axis=0)
    cn = jnp.stack([c1, c2], axis=0)
    return q[:, :action_dim], (hn, cn)


if __name__ == "__main__":
    BATCH = 2
    STATE_DIM = 32
    ACTION_DIM = 8

    key = jax.random.PRNGKey(0)
    k_params, k_x = jax.random.split(key)
    params = init_params(k_params, STATE_DIM, ACTION_DIM)
    x = jax.random.normal(k_x, (BATCH, STATE_DIM), dtype=jnp.float32)

    # hidden=None in the PyTorch forward -> zero initial states.
    h0 = jnp.zeros((2, BATCH, HIDDEN), jnp.float32)
    c0 = jnp.zeros((2, BATCH, HIDDEN), jnp.float32)

    q, (hn, cn) = pokenet_forward(x, params, h0, c0, action_dim=ACTION_DIM)
    jax.block_until_ready((q, hn, cn))

    q_ref, (hn_ref, cn_ref) = pokenet_reference(x, params, h0, c0, ACTION_DIM)
    np.testing.assert_allclose(np.asarray(q), np.asarray(q_ref), rtol=2e-2, atol=1e-2)
    np.testing.assert_allclose(np.asarray(hn), np.asarray(hn_ref), rtol=2e-2, atol=1e-2)
    np.testing.assert_allclose(np.asarray(cn), np.asarray(cn_ref), rtol=2e-2, atol=1e-2)

    assert q.shape == (BATCH, ACTION_DIM)
    assert hn.shape == (2, BATCH, HIDDEN) and cn.shape == (2, BATCH, HIDDEN)
    print("KERNEL_OK")
</pallas_src>

<mosaic_0001>
module attributes {stable_mosaic.version = 11 : i64} {
  func.func @pokenet_kernel(%arg0: memref<2x32xf32, #tpu.memory_space<vmem>>, %arg1: memref<2x2x256xf32, #tpu.memory_space<vmem>>, %arg2: memref<2x2x256xf32, #tpu.memory_space<vmem>>, %arg3: memref<288x1024xbf16, #tpu.memory_space<vmem>>, %arg4: memref<1x1024xf32, #tpu.memory_space<vmem>>, %arg5: memref<512x1024xbf16, #tpu.memory_space<any>>, %arg6: memref<1x1024xf32, #tpu.memory_space<vmem>>, %arg7: memref<256x512xbf16, #tpu.memory_space<any>>, %arg8: memref<1x512xf32, #tpu.memory_space<vmem>>, %arg9: memref<512x256xbf16, #tpu.memory_space<any>>, %arg10: memref<1x256xf32, #tpu.memory_space<vmem>>, %arg11: memref<256x128xbf16, #tpu.memory_space<any>>, %arg12: memref<1x128xf32, #tpu.memory_space<vmem>>, %arg13: memref<2x128xf32, #tpu.memory_space<vmem>>, %arg14: memref<2x2x256xf32, #tpu.memory_space<vmem>>, %arg15: memref<2x2x256xf32, #tpu.memory_space<vmem>>, %arg16: memref<512x1024xbf16, #tpu.memory_space<vmem>>, %arg17: memref<256x512xbf16, #tpu.memory_space<vmem>>, %arg18: memref<512x256xbf16, #tpu.memory_space<vmem>>, %arg19: memref<256x128xbf16, #tpu.memory_space<vmem>>, %arg20: memref<4x!tpu.dma_semaphore, #tpu.memory_space<semaphore_mem>>) attributes {dimension_semantics = [], scalar_prefetch = 0 : i64, scratch_operands = 5 : i64, tpu.core_type = #tpu.core_type<tc>} {
    %c0_i32 = arith.constant 0 : i32
    %0 = tpu.memref_slice %arg20[%c0_i32] : memref<4x!tpu.dma_semaphore, #tpu.memory_space<semaphore_mem>> -> memref<1x!tpu.dma_semaphore, #tpu.memory_space<semaphore_mem>>
    %1 = tpu.memref_squeeze %0 : memref<1x!tpu.dma_semaphore, #tpu.memory_space<semaphore_mem>> -> memref<!tpu.dma_semaphore, #tpu.memory_space<semaphore_mem>>
    tpu.enqueue_dma source(%arg5 : memref<512x1024xbf16, #tpu.memory_space<any>>) target(%arg16 : memref<512x1024xbf16, #tpu.memory_space<vmem>>) target_semaphore(%1 : memref<!tpu.dma_semaphore, #tpu.memory_space<semaphore_mem>>)
    %c1_i32 = arith.constant 1 : i32
    %2 = tpu.memref_slice %arg20[%c1_i32] : memref<4x!tpu.dma_semaphore, #tpu.memory_space<semaphore_mem>> -> memref<1x!tpu.dma_semaphore, #tpu.memory_space<semaphore_mem>>
    %3 = tpu.memref_squeeze %2 : memref<1x!tpu.dma_semaphore, #tpu.memory_space<semaphore_mem>> -> memref<!tpu.dma_semaphore, #tpu.memory_space<semaphore_mem>>
    tpu.enqueue_dma source(%arg7 : memref<256x512xbf16, #tpu.memory_space<any>>) target(%arg17 : memref<256x512xbf16, #tpu.memory_space<vmem>>) target_semaphore(%3 : memref<!tpu.dma_semaphore, #tpu.memory_space<semaphore_mem>>)
    %c2_i32 = arith.constant 2 : i32
    %4 = tpu.memref_slice %arg20[%c2_i32] : memref<4x!tpu.dma_semaphore, #tpu.memory_space<semaphore_mem>> -> memref<1x!tpu.dma_semaphore, #tpu.memory_space<semaphore_mem>>
    %5 = tpu.memref_squeeze %4 : memref<1x!tpu.dma_semaphore, #tpu.memory_space<semaphore_mem>> -> memref<!tpu.dma_semaphore, #tpu.memory_space<semaphore_mem>>
    tpu.enqueue_dma source(%arg9 : memref<512x256xbf16, #tpu.memory_space<any>>) target(%arg18 : memref<512x256xbf16, #tpu.memory_space<vmem>>) target_semaphore(%5 : memref<!tpu.dma_semaphore, #tpu.memory_space<semaphore_mem>>)
    %c3_i32 = arith.constant 3 : i32
    %6 = tpu.memref_slice %arg20[%c3_i32] : memref<4x!tpu.dma_semaphore, #tpu.memory_space<semaphore_mem>> -> memref<1x!tpu.dma_semaphore, #tpu.memory_space<semaphore_mem>>
    %7 = tpu.memref_squeeze %6 : memref<1x!tpu.dma_semaphore, #tpu.memory_space<semaphore_mem>> -> memref<!tpu.dma_semaphore, #tpu.memory_space<semaphore_mem>>
    tpu.enqueue_dma source(%arg11 : memref<256x128xbf16, #tpu.memory_space<any>>) target(%arg19 : memref<256x128xbf16, #tpu.memory_space<vmem>>) target_semaphore(%7 : memref<!tpu.dma_semaphore, #tpu.memory_space<semaphore_mem>>)
    %c0 = arith.constant 0 : index
    %c0_0 = arith.constant 0 : index
    %8 = vector.load %arg0[%c0, %c0_0] : memref<2x32xf32, #tpu.memory_space<vmem>>, vector<2x32xf32>
    %9 = arith.truncf %8 : vector<2x32xf32> to vector<2x32xbf16>
    %c0_1 = arith.constant 0 : index
    %c0_2 = arith.constant 0 : index
    %10 = vector.load %arg3[%c0_1, %c0_2] : memref<288x1024xbf16, #tpu.memory_space<vmem>>, vector<32x1024xbf16>
    %cst = arith.constant dense<0.000000e+00> : vector<2x1024xf32>
    %11 = tpu.matmul %9, %10, %cst {dimension_numbers = #tpu.dot_dimension_numbers<[1], [0], [0], [1], [0, 0, 1, 1], [], []>} : vector<2x32xbf16>, vector<32x1024xbf16>, vector<2x1024xf32> -> vector<2x1024xf32>
    %c0_3 = arith.constant 0 : index
    %c0_4 = arith.constant 0 : index
    %c0_5 = arith.constant 0 : index
    %12 = vector.load %arg1[%c0_3, %c0_4, %c0_5] : memref<2x2x256xf32, #tpu.memory_space<vmem>>, vector<1x2x256xf32>
    %13 = vector.shape_cast %12 : vector<1x2x256xf32> to vector<2x256xf32>
    %14 = arith.truncf %13 : vector<2x256xf32> to vector<2x256xbf16>
    %c32 = arith.constant 32 : index
    %c0_6 = arith.constant 0 : index
    %15 = vector.load %arg3[%c32, %c0_6] : memref<288x1024xbf16, #tpu.memory_space<vmem>>, vector<256x1024xbf16>
    %cst_7 = arith.constant dense<0.000000e+00> : vector<2x1024xf32>
    %16 = tpu.matmul %14, %15, %cst_7 {dimension_numbers = #tpu.dot_dimension_numbers<[1], [0], [0], [1], [0, 0, 1, 1], [], []>} : vector<2x256xbf16>, vector<256x1024xbf16>, vector<2x1024xf32> -> vector<2x1024xf32>
    %17 = arith.addf %11, %16 : vector<2x1024xf32>
    %c0_8 = arith.constant 0 : index
    %c0_9 = arith.constant 0 : index
    %18 = vector.load %arg4[%c0_8, %c0_9] : memref<1x1024xf32, #tpu.memory_space<vmem>>, vector<1x1024xf32>
    %19 = vector.broadcast %18 : vector<1x1024xf32> to vector<2x1024xf32>
    %20 = arith.addf %17, %19 : vector<2x1024xf32>
    %c0_10 = arith.constant 0 : index
    %c0_11 = arith.constant 0 : index
    %c0_12 = arith.constant 0 : index
    %21 = vector.load %arg2[%c0_10, %c0_11, %c0_12] : memref<2x2x256xf32, #tpu.memory_space<vmem>>, vector<1x2x256xf32>
    %22 = vector.shape_cast %21 : vector<1x2x256xf32> to vector<2x256xf32>
    %23 = vector.extract_strided_slice %20 {offsets = [0, 0], sizes = [2, 256], strides = [1, 1]} : vector<2x1024xf32> to vector<2x256xf32>
    %24 = arith.negf %23 : vector<2x256xf32>
    %25 = math.exp %24 : vector<2x256xf32>
    %cst_13 = arith.constant 1.000000e+00 : f32
    %26 = vector.broadcast %cst_13 : f32 to vector<2x256xf32>
    %27 = arith.addf %26, %25 : vector<2x256xf32>
    %28 = arith.divf %26, %27 : vector<2x256xf32>
    %29 = vector.extract_strided_slice %20 {offsets = [0, 256], sizes = [2, 256], strides = [1, 1]} : vector<2x1024xf32> to vector<2x256xf32>
    %30 = arith.negf %29 : vector<2x256xf32>
    %31 = math.exp %30 : vector<2x256xf32>
    %cst_14 = arith.constant 1.000000e+00 : f32
    %32 = vector.broadcast %cst_14 : f32 to vector<2x256xf32>
    %33 = arith.addf %32, %31 : vector<2x256xf32>
    %34 = arith.divf %32, %33 : vector<2x256xf32>
    %35 = vector.extract_strided_slice %20 {offsets = [0, 512], sizes = [2, 256], strides = [1, 1]} : vector<2x1024xf32> to vector<2x256xf32>
    %36 = math.tanh %35 : vector<2x256xf32>
    %37 = vector.extract_strided_slice %20 {offsets = [0, 768], sizes = [2, 256], strides = [1, 1]} : vector<2x1024xf32> to vector<2x256xf32>
    %38 = arith.negf %37 : vector<2x256xf32>
    %39 = math.exp %38 : vector<2x256xf32>
    %cst_15 = arith.constant 1.000000e+00 : f32
    %40 = vector.broadcast %cst_15 : f32 to vector<2x256xf32>
    %41 = arith.addf %40, %39 : vector<2x256xf32>
    %42 = arith.divf %40, %41 : vector<2x256xf32>
    %43 = arith.mulf %34, %22 : vector<2x256xf32>
    %44 = arith.mulf %28, %36 : vector<2x256xf32>
    %45 = arith.addf %43, %44 : vector<2x256xf32>
    %46 = math.tanh %45 : vector<2x256xf32>
    %47 = arith.mulf %42, %46 : vector<2x256xf32>
    %c0_i32_16 = arith.constant 0 : i32
    %48 = tpu.memref_slice %arg20[%c0_i32_16] : memref<4x!tpu.dma_semaphore, #tpu.memory_space<semaphore_mem>> -> memref<1x!tpu.dma_semaphore, #tpu.memory_space<semaphore_mem>>
    %49 = tpu.memref_squeeze %48 : memref<1x!tpu.dma_semaphore, #tpu.memory_space<semaphore_mem>> -> memref<!tpu.dma_semaphore, #tpu.memory_space<semaphore_mem>>
    tpu.wait_dma2 semaphore(%49 : memref<!tpu.dma_semaphore, #tpu.memory_space<semaphore_mem>>) src(%arg5 : memref<512x1024xbf16, #tpu.memory_space<any>>) dst(%arg16 : memref<512x1024xbf16, #tpu.memory_space<vmem>>)
    %50 = arith.truncf %47 : vector<2x256xf32> to vector<2x256xbf16>
    %c0_17 = arith.constant 0 : index
    %c0_18 = arith.constant 0 : index
    %51 = vector.load %arg16[%c0_17, %c0_18] : memref<512x1024xbf16, #tpu.memory_space<vmem>>, vector<256x1024xbf16>
    %cst_19 = arith.constant dense<0.000000e+00> : vector<2x1024xf32>
    %52 = tpu.matmul %50, %51, %cst_19 {dimension_numbers = #tpu.dot_dimension_numbers<[1], [0], [0], [1], [0, 0, 1, 1], [], []>} : vector<2x256xbf16>, vector<256x1024xbf16>, vector<2x1024xf32> -> vector<2x1024xf32>
    %c1 = arith.constant 1 : index
    %c0_20 = arith.constant 0 : index
    %c0_21 = arith.constant 0 : index
    %53 = vector.load %arg1[%c1, %c0_20, %c0_21] : memref<2x2x256xf32, #tpu.memory_space<vmem>>, vector<1x2x256xf32>
    %54 = vector.shape_cast %53 : vector<1x2x256xf32> to vector<2x256xf32>
    %55 = arith.truncf %54 : vector<2x256xf32> to vector<2x256xbf16>
    %c256 = arith.constant 256 : index
    %c0_22 = arith.constant 0 : index
    %56 = vector.load %arg16[%c256, %c0_22] : memref<512x1024xbf16, #tpu.memory_space<vmem>>, vector<256x1024xbf16>
    %cst_23 = arith.constant dense<0.000000e+00> : vector<2x1024xf32>
    %57 = tpu.matmul %55, %56, %cst_23 {dimension_numbers = #tpu.dot_dimension_numbers<[1], [0], [0], [1], [0, 0, 1, 1], [], []>} : vector<2x256xbf16>, vector<256x1024xbf16>, vector<2x1024xf32> -> vector<2x1024xf32>
    %58 = arith.addf %52, %57 : vector<2x1024xf32>
    %c0_24 = arith.constant 0 : index
    %c0_25 = arith.constant 0 : index
    %59 = vector.load %arg6[%c0_24, %c0_25] : memref<1x1024xf32, #tpu.memory_space<vmem>>, vector<1x1024xf32>
    %60 = vector.broadcast %59 : vector<1x1024xf32> to vector<2x1024xf32>
    %61 = arith.addf %58, %60 : vector<2x1024xf32>
    %c1_26 = arith.constant 1 : index
    %c0_27 = arith.constant 0 : index
    %c0_28 = arith.constant 0 : index
    %62 = vector.load %arg2[%c1_26, %c0_27, %c0_28] : memref<2x2x256xf32, #tpu.memory_space<vmem>>, vector<1x2x256xf32>
    %63 = vector.shape_cast %62 : vector<1x2x256xf32> to vector<2x256xf32>
    %64 = vector.extract_strided_slice %61 {offsets = [0, 0], sizes = [2, 256], strides = [1, 1]} : vector<2x1024xf32> to vector<2x256xf32>
    %65 = arith.negf %64 : vector<2x256xf32>
    %66 = math.exp %65 : vector<2x256xf32>
    %cst_29 = arith.constant 1.000000e+00 : f32
    %67 = vector.broadcast %cst_29 : f32 to vector<2x256xf32>
    %68 = arith.addf %67, %66 : vector<2x256xf32>
    %69 = arith.divf %67, %68 : vector<2x256xf32>
    %70 = vector.extract_strided_slice %61 {offsets = [0, 256], sizes = [2, 256], strides = [1, 1]} : vector<2x1024xf32> to vector<2x256xf32>
    %71 = arith.negf %70 : vector<2x256xf32>
    %72 = math.exp %71 : vector<2x256xf32>
    %cst_30 = arith.constant 1.000000e+00 : f32
    %73 = vector.broadcast %cst_30 : f32 to vector<2x256xf32>
    %74 = arith.addf %73, %72 : vector<2x256xf32>
    %75 = arith.divf %73, %74 : vector<2x256xf32>
    %76 = vector.extract_strided_slice %61 {offsets = [0, 512], sizes = [2, 256], strides = [1, 1]} : vector<2x1024xf32> to vector<2x256xf32>
    %77 = math.tanh %76 : vector<2x256xf32>
    %78 = vector.extract_strided_slice %61 {offsets = [0, 768], sizes = [2, 256], strides = [1, 1]} : vector<2x1024xf32> to vector<2x256xf32>
    %79 = arith.negf %78 : vector<2x256xf32>
    %80 = math.exp %79 : vector<2x256xf32>
    %cst_31 = arith.constant 1.000000e+00 : f32
    %81 = vector.broadcast %cst_31 : f32 to vector<2x256xf32>
    %82 = arith.addf %81, %80 : vector<2x256xf32>
    %83 = arith.divf %81, %82 : vector<2x256xf32>
    %84 = arith.mulf %75, %63 : vector<2x256xf32>
    %85 = arith.mulf %69, %77 : vector<2x256xf32>
    %86 = arith.addf %84, %85 : vector<2x256xf32>
    %87 = math.tanh %86 : vector<2x256xf32>
    %88 = arith.mulf %83, %87 : vector<2x256xf32>
    %c1_i32_32 = arith.constant 1 : i32
    %89 = tpu.memref_slice %arg20[%c1_i32_32] : memref<4x!tpu.dma_semaphore, #tpu.memory_space<semaphore_mem>> -> memref<1x!tpu.dma_semaphore, #tpu.memory_space<semaphore_mem>>
    %90 = tpu.memref_squeeze %89 : memref<1x!tpu.dma_semaphore, #tpu.memory_space<semaphore_mem>> -> memref<!tpu.dma_semaphore, #tpu.memory_space<semaphore_mem>>
    tpu.wait_dma2 semaphore(%90 : memref<!tpu.dma_semaphore, #tpu.memory_space<semaphore_mem>>) src(%arg7 : memref<256x512xbf16, #tpu.memory_space<any>>) dst(%arg17 : memref<256x512xbf16, #tpu.memory_space<vmem>>)
    %91 = arith.truncf %88 : vector<2x256xf32> to vector<2x256xbf16>
    %c0_33 = arith.constant 0 : index
    %c0_34 = arith.constant 0 : index
    %92 = vector.load %arg17[%c0_33, %c0_34] : memref<256x512xbf16, #tpu.memory_space<vmem>>, vector<256x512xbf16>
    %cst_35 = arith.constant dense<0.000000e+00> : vector<2x512xf32>
    %93 = tpu.matmul %91, %92, %cst_35 {dimension_numbers = #tpu.dot_dimension_numbers<[1], [0], [0], [1], [0, 0, 1, 1], [], []>} : vector<2x256xbf16>, vector<256x512xbf16>, vector<2x512xf32> -> vector<2x512xf32>
    %c0_36 = arith.constant 0 : index
    %c0_37 = arith.constant 0 : index
    %94 = vector.load %arg8[%c0_36, %c0_37] : memref<1x512xf32, #tpu.memory_space<vmem>>, vector<1x512xf32>
    %95 = vector.broadcast %94 : vector<1x512xf32> to vector<2x512xf32>
    %96 = arith.addf %93, %95 : vector<2x512xf32>
    %cst_38 = arith.constant 0.000000e+00 : f32
    %97 = vector.broadcast %cst_38 : f32 to vector<2x512xf32>
    %98 = arith.maximumf %96, %97 : vector<2x512xf32>
    %c2_i32_39 = arith.constant 2 : i32
    %99 = tpu.memref_slice %arg20[%c2_i32_39] : memref<4x!tpu.dma_semaphore, #tpu.memory_space<semaphore_mem>> -> memref<1x!tpu.dma_semaphore, #tpu.memory_space<semaphore_mem>>
    %100 = tpu.memref_squeeze %99 : memref<1x!tpu.dma_semaphore, #tpu.memory_space<semaphore_mem>> -> memref<!tpu.dma_semaphore, #tpu.memory_space<semaphore_mem>>
    tpu.wait_dma2 semaphore(%100 : memref<!tpu.dma_semaphore, #tpu.memory_space<semaphore_mem>>) src(%arg9 : memref<512x256xbf16, #tpu.memory_space<any>>) dst(%arg18 : memref<512x256xbf16, #tpu.memory_space<vmem>>)
    %101 = arith.truncf %98 : vector<2x512xf32> to vector<2x512xbf16>
    %c0_40 = arith.constant 0 : index
    %c0_41 = arith.constant 0 : index
    %102 = vector.load %arg18[%c0_40, %c0_41] : memref<512x256xbf16, #tpu.memory_space<vmem>>, vector<512x256xbf16>
    %cst_42 = arith.constant dense<0.000000e+00> : vector<2x256xf32>
    %103 = tpu.matmul %101, %102, %cst_42 {dimension_numbers = #tpu.dot_dimension_numbers<[1], [0], [0], [1], [0, 0, 1, 1], [], []>} : vector<2x512xbf16>, vector<512x256xbf16>, vector<2x256xf32> -> vector<2x256xf32>
    %c0_43 = arith.constant 0 : index
    %c0_44 = arith.constant 0 : index
    %104 = vector.load %arg10[%c0_43, %c0_44] : memref<1x256xf32, #tpu.memory_space<vmem>>, vector<1x256xf32>
    %105 = vector.broadcast %104 : vector<1x256xf32> to vector<2x256xf32>
    %106 = arith.addf %103, %105 : vector<2x256xf32>
    %cst_45 = arith.constant 0.000000e+00 : f32
    %107 = vector.broadcast %cst_45 : f32 to vector<2x256xf32>
    %108 = arith.maximumf %106, %107 : vector<2x256xf32>
    %c3_i32_46 = arith.constant 3 : i32
    %109 = tpu.memref_slice %arg20[%c3_i32_46] : memref<4x!tpu.dma_semaphore, #tpu.memory_space<semaphore_mem>> -> memref<1x!tpu.dma_semaphore, #tpu.memory_space<semaphore_mem>>
    %110 = tpu.memref_squeeze %109 : memref<1x!tpu.dma_semaphore, #tpu.memory_space<semaphore_mem>> -> memref<!tpu.dma_semaphore, #tpu.memory_space<semaphore_mem>>
    tpu.wait_dma2 semaphore(%110 : memref<!tpu.dma_semaphore, #tpu.memory_space<semaphore_mem>>) src(%arg11 : memref<256x128xbf16, #tpu.memory_space<any>>) dst(%arg19 : memref<256x128xbf16, #tpu.memory_space<vmem>>)
    %111 = arith.truncf %108 : vector<2x256xf32> to vector<2x256xbf16>
    %c0_47 = arith.constant 0 : index
    %c0_48 = arith.constant 0 : index
    %112 = vector.load %arg19[%c0_47, %c0_48] : memref<256x128xbf16, #tpu.memory_space<vmem>>, vector<256x128xbf16>
    %cst_49 = arith.constant dense<0.000000e+00> : vector<2x128xf32>
    %113 = tpu.matmul %111, %112, %cst_49 {dimension_numbers = #tpu.dot_dimension_numbers<[1], [0], [0], [1], [0, 0, 1, 1], [], []>} : vector<2x256xbf16>, vector<256x128xbf16>, vector<2x128xf32> -> vector<2x128xf32>
    %c0_50 = arith.constant 0 : index
    %c0_51 = arith.constant 0 : index
    %114 = vector.load %arg12[%c0_50, %c0_51] : memref<1x128xf32, #tpu.memory_space<vmem>>, vector<1x128xf32>
    %115 = vector.broadcast %114 : vector<1x128xf32> to vector<2x128xf32>
    %116 = arith.addf %113, %115 : vector<2x128xf32>
    %c0_52 = arith.constant 0 : index
    %c0_53 = arith.constant 0 : index
    %117 = vector.load %arg13[%c0_52, %c0_53] : memref<2x128xf32, #tpu.memory_space<vmem>>, vector<2x128xf32>
    tpu.vector_store %arg13[%c0_52, %c0_53], %116 {strides = array<i32>} : memref<2x128xf32, #tpu.memory_space<vmem>>, vector<2x128xf32>,
    %c0_54 = arith.constant 0 : index
    %c0_55 = arith.constant 0 : index
    %c0_56 = arith.constant 0 : index
    %118 = vector.load %arg14[%c0_54, %c0_55, %c0_56] : memref<2x2x256xf32, #tpu.memory_space<vmem>>, vector<1x2x256xf32>
    %119 = vector.shape_cast %118 : vector<1x2x256xf32> to vector<2x256xf32>
    %120 = vector.shape_cast %47 : vector<2x256xf32> to vector<1x2x256xf32>
    tpu.vector_store %arg14[%c0_54, %c0_55, %c0_56], %120 {strides = array<i32>} : memref<2x2x256xf32, #tpu.memory_space<vmem>>, vector<1x2x256xf32>,
    %c1_57 = arith.constant 1 : index
    %c0_58 = arith.constant 0 : index
    %c0_59 = arith.constant 0 : index
    %121 = vector.load %arg14[%c1_57, %c0_58, %c0_59] : memref<2x2x256xf32, #tpu.memory_space<vmem>>, vector<1x2x256xf32>
    %122 = vector.shape_cast %121 : vector<1x2x256xf32> to vector<2x256xf32>
    %123 = vector.shape_cast %88 : vector<2x256xf32> to vector<1x2x256xf32>
    tpu.vector_store %arg14[%c1_57, %c0_58, %c0_59], %123 {strides = array<i32>} : memref<2x2x256xf32, #tpu.memory_space<vmem>>, vector<1x2x256xf32>,
    %c0_60 = arith.constant 0 : index
    %c0_61 = arith.constant 0 : index
    %c0_62 = arith.constant 0 : index
    %124 = vector.load %arg15[%c0_60, %c0_61, %c0_62] : memref<2x2x256xf32, #tpu.memory_space<vmem>>, vector<1x2x256xf32>
    %125 = vector.shape_cast %124 : vector<1x2x256xf32> to vector<2x256xf32>
    %126 = vector.shape_cast %45 : vector<2x256xf32> to vector<1x2x256xf32>
    tpu.vector_store %arg15[%c0_60, %c0_61, %c0_62], %126 {strides = array<i32>} : memref<2x2x256xf32, #tpu.memory_space<vmem>>, vector<1x2x256xf32>,
    %c1_63 = arith.constant 1 : index
    %c0_64 = arith.constant 0 : index
    %c0_65 = arith.constant 0 : index
    %127 = vector.load %arg15[%c1_63, %c0_64, %c0_65] : memref<2x2x256xf32, #tpu.memory_space<vmem>>, vector<1x2x256xf32>
    %128 = vector.shape_cast %127 : vector<1x2x256xf32> to vector<2x256xf32>
    %129 = vector.shape_cast %86 : vector<2x256xf32> to vector<1x2x256xf32>
    tpu.vector_store %arg15[%c1_63, %c0_64, %c0_65], %129 {strides = array<i32>} : memref<2x2x256xf32, #tpu.memory_space<vmem>>, vector<1x2x256xf32>,
    return
  }
}

</mosaic_0001>

<bundles_post_ra>
// kernel: pokenet_forward.1
= control target key start
LH: loop header
LB: loop body
LE: loop exit
PB: predicated region body
PF: predicated region fallthrough
CT: control target
= control target key end

     0   :  { %21 = vsyncpa [#allocation8], 0  ;;  %s3490_s0 = inlined_call_operand.vmem [shape: f32[2,32], index: 0, kind: input, shape index: {}]   ;;  %s3491_s1 = inlined_call_operand.vmem [shape: f32[2,2,256], index: 1, kind: input, shape index: {}, may-alias: {1,14}]   ;;  %s3492_s2 = inlined_call_operand.vmem [shape: f32[2,2,256], index: 2, kind: input, shape index: {}, may-alias: {2,15}]   ;;  %s3493_s3 = inlined_call_operand.hbm [shape: bf16[288,1024], index: 3, kind: input, shape index: {}]   ;;  %s3494_s4 = inlined_call_operand.vmem [shape: f32[1,1024], index: 4, kind: input, shape index: {}]   ;;  %s3495_s5 = inlined_call_operand.hbm [shape: bf16[512,1024], index: 5, kind: input, shape index: {}]   ;;  %s3496_s6 = inlined_call_operand.vmem [shape: f32[1,1024], index: 6, kind: input, shape index: {}]   ;;  %s3497_s7 = inlined_call_operand.hbm [shape: bf16[256,512], index: 7, kind: input, shape index: {}]   ;;  %s3498_s8 = inlined_call_operand.vmem [shape: f32[1,512], index: 8, kind: input, shape index: {}]   ;;  %s3499_s9 = inlined_call_operand.hbm [shape: bf16[512,256], index: 9, kind: input, shape index: {}]   ;;  %s3500_s10 = inlined_call_operand.vmem [shape: f32[1,256], index: 10, kind: input, shape index: {}]   ;;  %s3501_s11 = inlined_call_operand.hbm [shape: bf16[256,128], index: 11, kind: input, shape index: {}]   ;;  %s3502_s12 = inlined_call_operand.vmem [shape: f32[1,128], index: 12, kind: input, shape index: {}]   ;;  %s3503_s13 = inlined_call_operand.hbm [shape: f32[2,128], index: 13, kind: output, shape index: {0}]   ;;  %s3504_s14 = inlined_call_operand.vmem [shape: f32[2,2,256], index: 14, kind: output, shape index: {1}, may-alias: {1,14}]   ;;  %s3505_s15 = inlined_call_operand.vmem [shape: f32[2,2,256], index: 15, kind: output, shape index: {2}, may-alias: {2,15}]  }
   0x1   :  { %22 = vsyncpa [#allocation9], 0  ;;  %s3099_s18 = smov [#allocation7]   ;;  %s3021_s22 = scalar_lea.hbm %s3493_s3, 18432 }
   0x2   :  { %s34_s19 = sshll.u32 %s3099_s18, 4  ;;  %p3022_p0 = scmp.ne.s32.totalorder %s3493_s3, %s3021_s22  ;;  %s35_s19 = int_to_ptr.vmem [resolvable:$true] %s34_s19 }
   0x3   :  { %p3025_p1 = scmp.lt.u32.totalorder %s3021_s22, %s3493_s3 }
   0x5   :  { %p3027_p2 = pnand %p3025_p1, %p3022_p0 }
   0x7   :  { %3030 = shalt.err (!%p3027_p2)
}
   0x8   :  { %s3031_s27 = scalar_lea.vmem %s35_s19, 18432  ;;  %p3036_p4 = scmp.lt.s32.totalorder %s35_s19, %s35_s19 }
   0x9   :  { %p3032_p3 = scmp.ne.s32.totalorder %s35_s19, %s3031_s27  ;;  %p3037_p5 = scmp.lt.s32.totalorder %s3031_s27, %s3031_s27 }
   0xb   :  { %p3038_p6 = por %p3037_p5, %p3036_p4 }
   0xd   :  { %p3039_p7 = pnand %p3038_p6, %p3032_p3 }
   0xf   :  { %3042 = shalt.err (!%p3039_p7)
}
  0x10   :  { %s3100_s28 = smov 512   ;;  %s3101_s29 = smov 32  }
  0x11   :  { %40 = dma.hbm_to_vmem [thread:$0]  %s3493_s3, 18432, %s35_s19, [#allocation8], %s3100_s28, %s3100_s28, %s3101_s29  }
  0x12   :  { %3087 = dma.done.wait [#allocation8], 18432  }
  0x13   :  { %3088 = vsyncadd [#allocation8], 4294948864  ;;  %s59_s17 = sld [smem:[#allocation0]]   ;;  %s3102_s18 = smov 1024   ;;  %vm1216_vm0 = vcmask 261120  }
  0x14   :  { %71 = sst [smem:[#allocation12]] %s3102_s18  ;;  %s3103_s20 = smov 8  }
  0x15   :  { %73 = sst [smem:[#allocation12 + $0x1]] %s3102_s18  ;;  %s3104_s21 = smov 64  }
  0x16   :  { %75 = sst [smem:[#allocation12 + $0x2]] %s3103_s20  ;;  %s3105_s22 = smov [#allocation2]  }
  0x17   :  { %77 = sst [smem:[#allocation12 + $0x3]] %s3104_s21  ;;  %s67_s23 = sshll.u32 %s3105_s22, 4  ;;  %s68_s23 = int_to_ptr.vmem [resolvable:$true] %s67_s23 }
  0x18   :  { %83 = sst [smem:[#allocation12 + $0x6]] %s3100_s28  ;;  %s3106_s3 = smov 128  }
  0x19   :  { %85 = sst [smem:[#allocation12 + $0x7]] %s3104_s21  ;;  %s2724_s24 = sshll.u32 %s59_s17, 26 }
  0x1a   :  { %79 = sst [smem:[#allocation12 + $0x4]] %s3106_s3  ;;  %s3219_s19 = sadd.s32 134217728, %s2724_s24 }
  0x1b   :  { %s3107_s25 = smov 2   ;;  %s3108_s26 = smov 4  }
  0x1c   :  { %81 = sst [smem:[#allocation12 + $0x5]] %s3107_s25  ;;  %s3109_s27 = smov [#allocation6]  }
  0x1d   :  { %87 = sst [smem:[#allocation12 + $0x8]] %s3108_s26  ;;  %s3110_s29 = smov [#allocation11]  }
  0x1e   :  { %89 = dma.general %s3495_s5, 32768, %s68_s23, %s3109_s27, %s3110_s29, [#allocation12], %s3219_s19, 0  }
  0x1f   :  { %106 = sst [smem:[#allocation14]] %s3100_s28  ;;  %s3111_s17 = smov [#allocation3]  }
  0x20   :  { %108 = sst [smem:[#allocation14 + $0x1]] %s3100_s28  ;;  %s102_s18 = sshll.u32 %s3111_s17, 4  ;;  %s103_s18 = int_to_ptr.vmem [resolvable:$true] %s102_s18 }
  0x21   :  { %110 = sst [smem:[#allocation14 + $0x2]] %s3108_s26  ;;  %s3112_s20 = smov 256  }
  0x22   :  { %112 = sst [smem:[#allocation14 + $0x3]] %s3104_s21  ;;  %s3113_s5 = smov [#allocation6 + $0x1]  }
  0x23   :  { %114 = sst [smem:[#allocation14 + $0x4]] %s3106_s3  ;;  %s3114_s22 = smov [#allocation13]  }
  0x24   :  { %116 = sst [smem:[#allocation14 + $0x5]] %s3107_s25  ;;  %s3115_s24 = smov [#allocation4]  }
  0x25   :  { %118 = sst [smem:[#allocation14 + $0x6]] %s3112_s20  ;;  %s137_s27 = sshll.u32 %s3115_s24, 4  ;;  %s138_s27 = int_to_ptr.vmem [resolvable:$true] %s137_s27 }
  0x26   :  { %120 = sst [smem:[#allocation14 + $0x7]] %s3104_s21  ;;  %s3117_s29 = smov [#allocation15]  }
  0x27   :  { %122 = sst [smem:[#allocation14 + $0x8]] %s3108_s26 }
  0x28   :  { %124 = dma.general %s3497_s7, 8192, %s103_s18, %s3113_s5, %s3114_s22, [#allocation14], %s3219_s19, 0  }
  0x29   :  { %141 = sst [smem:[#allocation16]] %s3112_s20  ;;  %s3116_s7 = smov [#allocation6 + $0x2]  }
  0x2a   :  { %143 = sst [smem:[#allocation16 + $0x1]] %s3112_s20  ;;  %s3043_s20 = scalar_lea.hbm %s3501_s11, 2048 }
  0x2b   :  { %145 = sst [smem:[#allocation16 + $0x2]] %s3107_s25  ;;  %p3044_p8 = scmp.ne.s32.totalorder %s3501_s11, %s3043_s20 }
  0x2c   :  { %147 = sst [smem:[#allocation16 + $0x3]] %s3104_s21  ;;  %p3047_p9 = scmp.lt.u32.totalorder %s3043_s20, %s3501_s11 }
  0x2d   :  { %149 = sst [smem:[#allocation16 + $0x4]] %s3106_s3 }
  0x2e   :  { %151 = sst [smem:[#allocation16 + $0x5]] %s3107_s25  ;;  %p3049_p10 = pnand %p3047_p9, %p3044_p8 }
  0x2f   :  { %153 = sst [smem:[#allocation16 + $0x6]] %s3106_s3 }
  0x30   :  { %155 = sst [smem:[#allocation16 + $0x7]] %s3104_s21 }
  0x31   :  { %157 = sst [smem:[#allocation16 + $0x8]] %s3108_s26 }
  0x32   :  { %159 = dma.general %s3499_s9, 8192, %s138_s27, %s3116_s7, %s3117_s29, [#allocation16], %s3219_s19, 0  }
  0x33   :  { %v204_v0 = vld [vmem:[#allocation7 + $0x80] sm:$0xff]  ;;  %v206_v2 = vld [vmem:[#allocation7 + $0x90] sm:$0xff] }
  0x34   :  { %v208_v1 = vld [vmem:[#allocation7 + $0xa0] sm:$0xff]  ;;  %v210_v4 = vld [vmem:[#allocation7 + $0xb0] sm:$0xff] }
  0x35   :  { %v2732_v3 = vcombine.high %v204_v0, %v208_v1  ;;  %v2731_v5 = vcombine.low %v204_v0, %v208_v1  ;;  %v212_v6 = vld [vmem:[#allocation7 + $0xc0] sm:$0xff]  ;;  %v2736_v8 = vcombine.high %v206_v2, %v210_v4  ;;  %v2735_v9 = vcombine.low %v206_v2, %v210_v4  ;;  %v214_v11 = vld [vmem:[#allocation7 + $0xd0] sm:$0xff] }
  0x36   :  { %v216_v7 = vld [vmem:[#allocation7 + $0xe0] sm:$0xff]  ;;  %v218_v12 = vld [vmem:[#allocation7 + $0xf0] sm:$0xff] }
  0x37   :  { %v2740_v10 = vcombine.high %v212_v6, %v216_v7  ;;  %v220_v13 = vld [vmem:[#allocation7 + $0x100] sm:$0xff]  ;;  %972 = vmatprep.subr.bf16.mxu1 %v2732_v3  ;;  %v2744_v14 = vcombine.high %v214_v11, %v218_v12  ;;  %v222_v16 = vld [vmem:[#allocation7 + $0x110] sm:$0xff]  ;;  %1054 = vmatprep.subr.bf16.mxu0 %v2736_v8  ;;  %v2739_v18 = vcombine.low %v212_v6, %v216_v7 }
  0x38   :  { %v224_v15 = vld [vmem:[#allocation7 + $0x120] sm:$0xff]  ;;  %v226_v17 = vld [vmem:[#allocation7 + $0x130] sm:$0xff]  ;;  %973 = vmatpush1.bf16.msra.mxu1 %v2731_v5  ;;  %1055 = vmatpush1.bf16.msra.mxu0 %v2735_v9  ;;  %v2743_v19 = vcombine.low %v214_v11, %v218_v12 }
  0x39   :  { %974 = vmatprep.subr.bf16.mxu1 %v2740_v10  ;;  %v2748_v20 = vcombine.high %v220_v13, %v224_v15  ;;  %1056 = vmatprep.subr.bf16.mxu0 %v2744_v14  ;;  %v2752_v21 = vcombine.high %v222_v16, %v226_v17  ;;  %v228_v22 = vld [vmem:[#allocation7 + $0x140] sm:$0xff]  ;;  %v230_v24 = vld [vmem:[#allocation7 + $0x150] sm:$0xff]  ;;  %v2747_v26 = vcombine.low %v220_v13, %v224_v15 }
  0x3a   :  { %v232_v23 = vld [vmem:[#allocation7 + $0x160] sm:$0xff]  ;;  %v234_v25 = vld [vmem:[#allocation7 + $0x170] sm:$0xff]  ;;  %v2751_v27 = vcombine.low %v222_v16, %v226_v17 }
  0x3b   :  { %v2756_v28 = vcombine.high %v228_v22, %v232_v23  ;;  %v2760_v29 = vcombine.high %v230_v24, %v234_v25  ;;  %v236_v30 = vld [vmem:[#allocation7 + $0x180] sm:$0xff]  ;;  %v238_v32 = vld [vmem:[#allocation7 + $0x190] sm:$0xff]  ;;  %v2755_v34 = vcombine.low %v228_v22, %v232_v23  ;;  %v2759_v35 = vcombine.low %v230_v24, %v234_v25 }
  0x3c   :  { %975 = vmatpush1.bf16.msra.mxu1 %v2739_v18  ;;  %1057 = vmatpush1.bf16.msra.mxu0 %v2743_v19  ;;  %v240_v31 = vld [vmem:[#allocation7 + $0x1a0] sm:$0xff]  ;;  %v242_v33 = vld [vmem:[#allocation7 + $0x1b0] sm:$0xff] }
  0x3d   :  { %976 = vmatprep.subr.bf16.mxu1 %v2748_v20  ;;  %1058 = vmatprep.subr.bf16.mxu0 %v2752_v21  ;;  %v2764_v36 = vcombine.high %v236_v30, %v240_v31  ;;  %v2768_v37 = vcombine.high %v238_v32, %v242_v33  ;;  %v244_v38 = vld [vmem:[#allocation7 + $0x1c0] sm:$0xff]  ;;  %v246_v40 = vld [vmem:[#allocation7 + $0x1d0] sm:$0xff]  ;;  %v2763_v42 = vcombine.low %v236_v30, %v240_v31 }
  0x3e   :  { %v248_v39 = vld [vmem:[#allocation7 + $0x1e0] sm:$0xff]  ;;  %v250_v41 = vld [vmem:[#allocation7 + $0x1f0] sm:$0xff]  ;;  %v2767_v43 = vcombine.low %v238_v32, %v242_v33 }
  0x3f   :  { %v2772_v44 = vcombine.high %v244_v38, %v248_v39  ;;  %v2776_v45 = vcombine.high %v246_v40, %v250_v41  ;;  %v252_v46 = vld [vmem:[#allocation7 + $0x200] sm:$0xff]  ;;  %v254_v48 = vld [vmem:[#allocation7 + $0x210] sm:$0xff]  ;;  %v2771_v50 = vcombine.low %v244_v38, %v248_v39  ;;  %v2775_v51 = vcombine.low %v246_v40, %v250_v41 }
  0x40   :  { %977 = vmatpush1.bf16.msra.mxu1 %v2747_v26  ;;  %1059 = vmatpush1.bf16.msra.mxu0 %v2751_v27  ;;  %v256_v47 = vld [vmem:[#allocation7 + $0x220] sm:$0xff]  ;;  %v258_v49 = vld [vmem:[#allocation7 + $0x230] sm:$0xff] }
  0x41   :  { %978 = vmatprep.subr.bf16.mxu1 %v2756_v28  ;;  %1060 = vmatprep.subr.bf16.mxu0 %v2760_v29  ;;  %v2780_v52 = vcombine.high %v252_v46, %v256_v47  ;;  %v3253_v53 = vld.sshfl [vmem:[%s3491_s1] sm:$0x33 pattern:$0x76325410]  ;;  %v2784_v54 = vcombine.high %v254_v48, %v258_v49  ;;  %v262_v58 = vld [vmem:[#allocation7 + $0x250] sm:$0xff]  ;;  %v2779_v60 = vcombine.low %v252_v46, %v256_v47 }
  0x42   :  { %v260_v55 = vld [vmem:[#allocation7 + $0x240] sm:$0xff]  ;;  %v199_v57 = vcombine.high %v3253_v53, %v3253_v53  ;;  %v266_v59 = vld [vmem:[#allocation7 + $0x270] sm:$0xff]  ;;  %v2783_v62 = vcombine.low %v254_v48, %v258_v49 }
  0x43   :  { %v264_v56 = vld [vmem:[#allocation7 + $0x260] sm:$0xff]  ;;  %v2792_v0 = vcombine.high %v262_v58, %v266_v59  ;;  %v270_v3 = vld [vmem:[#allocation7 + $0x290] sm:$0xff]  ;;  %v2791_v6 = vcombine.low %v262_v58, %v266_v59 }
  0x44   :  { %979 = vmatpush1.bf16.msra.mxu1 %v2755_v34  ;;  %1061 = vmatpush1.bf16.msra.mxu0 %v2759_v35  ;;  %v3257_v61 = vpack.c.bf16 %v199_v57, %v199_v57  ;;  %v2788_v63 = vcombine.high %v260_v55, %v264_v56  ;;  %v268_v1 = vld [vmem:[#allocation7 + $0x280] sm:$0xff]  ;;  %v274_v4 = vld [vmem:[#allocation7 + $0x2b0] sm:$0xff]  ;;  %v2787_v5 = vcombine.low %v260_v55, %v264_v56 }
  0x45   :  { %980 = vmatprep.subr.bf16.mxu1 %v2764_v36  ;;  %1062 = vmatprep.subr.bf16.mxu0 %v2768_v37  ;;  %v272_v2 = vld [vmem:[#allocation7 + $0x2a0] sm:$0xff]  ;;  %v2800_v8 = vcombine.high %v270_v3, %v274_v4  ;;  %v278_v11 = vld [vmem:[#allocation7 + $0x2d0] sm:$0xff]  ;;  %v2799_v14 = vcombine.low %v270_v3, %v274_v4  ;;  %v205_v3 = vld [vmem:[#allocation7 + $0x88] sm:$0xff] }
  0x46   :  { %1004 = vmatprep.mubr.bf16.mxu1 %v3257_v61  ;;  %1086 = vmatprep.mubr.bf16.mxu0 %v3257_v61  ;;  %v2796_v7 = vcombine.high %v268_v1, %v272_v2  ;;  %v276_v9 = vld [vmem:[#allocation7 + $0x2c0] sm:$0xff]  ;;  %v282_v12 = vld [vmem:[#allocation7 + $0x2f0] sm:$0xff]  ;;  %v2795_v13 = vcombine.low %v268_v1, %v272_v2  ;;  %v209_v4 = vld [vmem:[#allocation7 + $0xa8] sm:$0xff] }
  0x47   :  { %v280_v10 = vld [vmem:[#allocation7 + $0x2e0] sm:$0xff]  ;;  %v2808_v16 = vcombine.high %v278_v11, %v282_v12  ;;  %v286_v19 = vld [vmem:[#allocation7 + $0x310] sm:$0xff]  ;;  %v2807_v22 = vcombine.low %v278_v11, %v282_v12  ;;  %v213_v11 = vld [vmem:[#allocation7 + $0xc8] sm:$0xff] }
  0x48   :  { %981 = vmatpush1.bf16.msra.mxu1 %v2763_v42  ;;  %1063 = vmatpush1.bf16.msra.mxu0 %v2767_v43  ;;  %v2804_v15 = vcombine.high %v276_v9, %v280_v10  ;;  %v284_v17 = vld [vmem:[#allocation7 + $0x300] sm:$0xff]  ;;  %v290_v20 = vld [vmem:[#allocation7 + $0x330] sm:$0xff]  ;;  %v2803_v21 = vcombine.low %v276_v9, %v280_v10  ;;  %v2734_v9 = vcombine.high %v205_v3, %v209_v4  ;;  %v217_v12 = vld [vmem:[#allocation7 + $0xe8] sm:$0xff] }
  0x49   :  { %982 = vmatprep.subr.bf16.mxu1 %v2772_v44  ;;  %1064 = vmatprep.subr.bf16.mxu0 %v2776_v45  ;;  %v288_v18 = vld [vmem:[#allocation7 + $0x320] sm:$0xff]  ;;  %v2816_v24 = vcombine.high %v286_v19, %v290_v20  ;;  %v294_v27 = vld [vmem:[#allocation7 + $0x350] sm:$0xff]  ;;  %v2815_v30 = vcombine.low %v286_v19, %v290_v20  ;;  %v221_v20 = vld [vmem:[#allocation7 + $0x108] sm:$0xff] }
  0x4a   :  { %v2812_v23 = vcombine.high %v284_v17, %v288_v18  ;;  %v292_v25 = vld [vmem:[#allocation7 + $0x340] sm:$0xff]  ;;  %v298_v28 = vld [vmem:[#allocation7 + $0x370] sm:$0xff]  ;;  %v2811_v29 = vcombine.low %v284_v17, %v288_v18  ;;  %v2742_v18 = vcombine.high %v213_v11, %v217_v12 }
  0x4b   :  { %v296_v26 = vld [vmem:[#allocation7 + $0x360] sm:$0xff]  ;;  %v2824_v32 = vcombine.high %v294_v27, %v298_v28  ;;  %v302_v35 = vld [vmem:[#allocation7 + $0x390] sm:$0xff]  ;;  %v2823_v38 = vcombine.low %v294_v27, %v298_v28  ;;  %v3118_v27 = vmov 0  }
  0x4c   :  { %983 = vmatpush1.bf16.msra.mxu1 %v2771_v50  ;;  %1065 = vmatpush1.bf16.msra.mxu0 %v2775_v51  ;;  %v2820_v31 = vcombine.high %v292_v25, %v296_v26  ;;  %v300_v33 = vld [vmem:[#allocation7 + $0x380] sm:$0xff]  ;;  %v306_v36 = vld [vmem:[#allocation7 + $0x3b0] sm:$0xff]  ;;  %v2819_v37 = vcombine.low %v292_v25, %v296_v26 }
  0x4d   :  { %984 = vmatprep.subr.bf16.mxu1 %v2780_v52  ;;  %1066 = vmatprep.subr.bf16.mxu0 %v2784_v54  ;;  %v304_v34 = vld [vmem:[#allocation7 + $0x3a0] sm:$0xff]  ;;  %v2832_v40 = vcombine.high %v302_v35, %v306_v36  ;;  %v310_v43 = vld [vmem:[#allocation7 + $0x3d0] sm:$0xff]  ;;  %v2831_v46 = vcombine.low %v302_v35, %v306_v36 }
  0x4e   :  { %v2828_v39 = vcombine.high %v300_v33, %v304_v34  ;;  %v308_v41 = vld [vmem:[#allocation7 + $0x3c0] sm:$0xff]  ;;  %v314_v44 = vld [vmem:[#allocation7 + $0x3f0] sm:$0xff]  ;;  %v2827_v45 = vcombine.low %v300_v33, %v304_v34 }
  0x4f   :  { %v312_v42 = vld [vmem:[#allocation7 + $0x3e0] sm:$0xff]  ;;  %v2840_v48 = vcombine.high %v310_v43, %v314_v44  ;;  %v318_v51 = vld [vmem:[#allocation7 + $0x410] sm:$0xff]  ;;  %v2839_v55 = vcombine.low %v310_v43, %v314_v44 }
  0x50   :  { %985 = vmatpush1.bf16.msra.mxu1 %v2779_v60  ;;  %1067 = vmatpush1.bf16.msra.mxu0 %v2783_v62  ;;  %v2836_v47 = vcombine.high %v308_v41, %v312_v42  ;;  %v316_v49 = vld [vmem:[#allocation7 + $0x400] sm:$0xff]  ;;  %v322_v52 = vld [vmem:[#allocation7 + $0x430] sm:$0xff]  ;;  %v2835_v54 = vcombine.low %v308_v41, %v312_v42 }
  0x51   :  { %986 = vmatprep.subr.bf16.mxu1 %v2788_v63  ;;  %1068 = vmatprep.subr.bf16.mxu0 %v2792_v0  ;;  %v320_v50 = vld [vmem:[#allocation7 + $0x420] sm:$0xff]  ;;  %v2848_v57 = vcombine.high %v318_v51, %v322_v52  ;;  %v326_v60 = vld [vmem:[#allocation7 + $0x450] sm:$0xff]  ;;  %v2847_v0 = vcombine.low %v318_v51, %v322_v52 }
  0x52   :  { %v2844_v56 = vcombine.high %v316_v49, %v320_v50  ;;  %v324_v58 = vld [vmem:[#allocation7 + $0x440] sm:$0xff]  ;;  %v330_v62 = vld [vmem:[#allocation7 + $0x470] sm:$0xff]  ;;  %v2843_v63 = vcombine.low %v316_v49, %v320_v50 }
  0x53   :  { %v328_v59 = vld [vmem:[#allocation7 + $0x460] sm:$0xff]  ;;  %v2856_v2 = vcombine.high %v326_v60, %v330_v62  ;;  %v180_v41 = vld [vmem:[#allocation7 + $0x30] sm:$0xff] }
  0x54   :  { %987 = vmatpush1.bf16.msra.mxu1 %v2787_v5  ;;  %1069 = vmatpush1.bf16.msra.mxu0 %v2791_v6  ;;  %v2852_v1 = vcombine.high %v324_v58, %v328_v59  ;;  %v174_v5 = vld [vmem:[#allocation7] sm:$0xff]  ;;  %v188_v49 = vld [vmem:[#allocation7 + $0x70] sm:$0xff] }
  0x55   :  { %988 = vmatprep.subr.bf16.mxu1 %v2796_v7  ;;  %1070 = vmatprep.subr.bf16.mxu0 %v2800_v8  ;;  %v178_v6 = vld [vmem:[#allocation7 + $0x20] sm:$0xff]  ;;  %v2851_v7 = vcombine.low %v324_v58, %v328_v59  ;;  %v2855_v8 = vcombine.low %v326_v60, %v330_v62  ;;  %v181_v58 = vld [vmem:[#allocation7 + $0x38] sm:$0xff] }
  0x56   :  { %v2860_v10 = vcombine.high %v174_v5, %v178_v6  ;;  %v2859_v17 = vcombine.low %v174_v5, %v178_v6  ;;  %v172_v26 = vld [vmem:[%s3490_s0] sm:$0x3] }
  0x57   :  { %v3272_v34 = vpack.c.bf16 %v172_v26, %v172_v26  ;;  %v305_v26 = vld [vmem:[#allocation7 + $0x3a8] sm:$0xff] }
  0x58   :  { %989 = vmatpush1.bf16.msra.mxu1 %v2795_v13  ;;  %1071 = vmatpush1.bf16.msra.mxu0 %v2799_v14  ;;  %v3263_v13 = vpack.c.bf16 %v3253_v53, %v3253_v53  ;;  %v182_v14 = vld [vmem:[#allocation7 + $0x40] sm:$0xff]  ;;  %v2741_v53 = vcombine.low %v213_v11, %v217_v12 }
  0x59   :  { %990 = vmatprep.subr.bf16.mxu1 %v2804_v15  ;;  %1072 = vmatprep.subr.bf16.mxu0 %v2808_v16  ;;  %v186_v15 = vld [vmem:[#allocation7 + $0x60] sm:$0xff]  ;;  %v2733_v16 = vcombine.low %v205_v3, %v209_v4  ;;  %v189_v3 = vld [vmem:[#allocation7 + $0x78] sm:$0xff] }
  0x5a   :  { %v2868_v19 = vcombine.high %v182_v14, %v186_v15 }
  0x5c   :  { %991 = vmatpush1.bf16.msra.mxu1 %v2803_v21  ;;  %1073 = vmatpush1.bf16.msra.mxu0 %v2807_v22  ;;  %v225_v21 = vld [vmem:[#allocation7 + $0x128] sm:$0xff] }
  0x5d   :  { %992 = vmatprep.subr.bf16.mxu1 %v2812_v23  ;;  %1074 = vmatprep.subr.bf16.mxu0 %v2816_v24  ;;  %v175_v22 = vld [vmem:[#allocation7 + $0x8] sm:$0xff]  ;;  %v2867_v24 = vcombine.low %v182_v14, %v186_v15  ;;  %v2750_v25 = vcombine.high %v221_v20, %v225_v21  ;;  %v2749_v33 = vcombine.low %v221_v20, %v225_v21 }
  0x5e   :  { %v179_v23 = vld [vmem:[#allocation7 + $0x28] sm:$0xff] }
  0x5f   :  { %v2862_v28 = vcombine.high %v175_v22, %v179_v23  ;;  %v2861_v35 = vcombine.low %v175_v22, %v179_v23  ;;  %v277_v14 = vld [vmem:[#allocation7 + $0x2c8] sm:$0xff] }
  0x60   :  { %993 = vmatpush1.bf16.msra.mxu1 %v2811_v29  ;;  %1075 = vmatpush1.bf16.msra.mxu0 %v2815_v30  ;;  %v229_v29 = vld [vmem:[#allocation7 + $0x148] sm:$0xff] }
  0x61   :  { %994 = vmatprep.subr.bf16.mxu1 %v2820_v31  ;;  %1076 = vmatprep.subr.bf16.mxu0 %v2824_v32  ;;  %v233_v30 = vld [vmem:[#allocation7 + $0x168] sm:$0xff] }
  0x62   :  { %v183_v31 = vld [vmem:[#allocation7 + $0x48] sm:$0xff]  ;;  %v2758_v36 = vcombine.high %v229_v29, %v233_v30  ;;  %v2757_v42 = vcombine.low %v229_v29, %v233_v30 }
  0x63   :  { %v187_v32 = vld [vmem:[#allocation7 + $0x68] sm:$0xff] }
  0x64   :  { %995 = vmatpush1.bf16.msra.mxu1 %v2819_v37  ;;  %1077 = vmatpush1.bf16.msra.mxu0 %v2823_v38  ;;  %v2870_v37 = vcombine.high %v183_v31, %v187_v32  ;;  %v237_v38 = vld [vmem:[#allocation7 + $0x188] sm:$0xff]  ;;  %v2869_v43 = vcombine.low %v183_v31, %v187_v32 }
  0x65   :  { %996 = vmatprep.subr.bf16.mxu1 %v2828_v39  ;;  %1078 = vmatprep.subr.bf16.mxu0 %v2832_v40  ;;  %v241_v39 = vld [vmem:[#allocation7 + $0x1a8] sm:$0xff]  ;;  %v176_v40 = vld [vmem:[#allocation7 + $0x10] sm:$0xff] }
  0x66   :  { %v2766_v44 = vcombine.high %v237_v38, %v241_v39  ;;  %v2765_v50 = vcombine.low %v237_v38, %v241_v39  ;;  %v2863_v51 = vcombine.low %v176_v40, %v180_v41  ;;  %v281_v15 = vld [vmem:[#allocation7 + $0x2e8] sm:$0xff] }
  0x67   :  { %v2805_v20 = vcombine.low %v277_v14, %v281_v15  ;;  %v293_v22 = vld [vmem:[#allocation7 + $0x348] sm:$0xff] }
  0x68   :  { %997 = vmatpush1.bf16.msra.mxu1 %v2827_v45  ;;  %1079 = vmatpush1.bf16.msra.mxu0 %v2831_v46  ;;  %v2864_v45 = vcombine.high %v176_v40, %v180_v41  ;;  %v245_v46 = vld [vmem:[#allocation7 + $0x1c8] sm:$0xff]  ;;  %v207_v41 = vld [vmem:[#allocation7 + $0x98] sm:$0xff] }
  0x69   :  { %998 = vmatprep.subr.bf16.mxu1 %v2836_v47  ;;  %1080 = vmatprep.subr.bf16.mxu0 %v2840_v48  ;;  %v249_v47 = vld [vmem:[#allocation7 + $0x1e8] sm:$0xff]  ;;  %v184_v48 = vld [vmem:[#allocation7 + $0x50] sm:$0xff] }
  0x6a   :  { %v2774_v52 = vcombine.high %v245_v46, %v249_v47  ;;  %v2773_v59 = vcombine.low %v245_v46, %v249_v47  ;;  %v2871_v60 = vcombine.low %v184_v48, %v188_v49  ;;  %v297_v23 = vld [vmem:[#allocation7 + $0x368] sm:$0xff]  ;;  %v219_v46 = vld [vmem:[#allocation7 + $0xf8] sm:$0xff] }
  0x6b   :  { %v309_v29 = vld [vmem:[#allocation7 + $0x3c8] sm:$0xff] }
  0x6c   :  { %999 = vmatpush1.bf16.msra.mxu1 %v2835_v54  ;;  %1081 = vmatpush1.bf16.msra.mxu0 %v2839_v55  ;;  %v2872_v54 = vcombine.high %v184_v48, %v188_v49  ;;  %v253_v55 = vld [vmem:[#allocation7 + $0x208] sm:$0xff]  ;;  %v223_v49 = vld [vmem:[#allocation7 + $0x118] sm:$0xff] }
  0x6d   :  { %1000 = vmatprep.subr.bf16.mxu1 %v2844_v56  ;;  %1082 = vmatprep.subr.bf16.mxu0 %v2848_v57  ;;  %v257_v56 = vld [vmem:[#allocation7 + $0x228] sm:$0xff]  ;;  %v177_v57 = vld [vmem:[#allocation7 + $0x18] sm:$0xff] }
  0x6e   :  { %v2782_v62 = vcombine.high %v253_v55, %v257_v56  ;;  %v2781_v4 = vcombine.low %v253_v55, %v257_v56  ;;  %v2865_v6 = vcombine.low %v177_v57, %v181_v58  ;;  %v313_v30 = vld [vmem:[#allocation7 + $0x3e8] sm:$0xff]  ;;  %v235_v55 = vld [vmem:[#allocation7 + $0x178] sm:$0xff] }
  0x6f   :  { %v2838_v32 = vcombine.high %v309_v29, %v313_v30  ;;  %v329_v38 = vld [vmem:[#allocation7 + $0x468] sm:$0xff] }
  0x70   :  { %1001 = vmatpush1.bf16.msra.mxu1 %v2843_v63  ;;  %1083 = vmatpush1.bf16.msra.mxu0 %v2847_v0  ;;  %v261_v63 = vld [vmem:[#allocation7 + $0x248] sm:$0xff] }
  0x71   :  { %1002 = vmatprep.subr.bf16.mxu1 %v2852_v1  ;;  %1084 = vmatprep.subr.bf16.mxu0 %v2856_v2  ;;  %v265_v0 = vld [vmem:[#allocation7 + $0x268] sm:$0xff]  ;;  %v2866_v1 = vcombine.high %v177_v57, %v181_v58  ;;  %v185_v2 = vld [vmem:[#allocation7 + $0x58] sm:$0xff] }
  0x72   :  { %v2790_v5 = vcombine.high %v261_v63, %v265_v0  ;;  %v2873_v12 = vcombine.low %v185_v2, %v189_v3  ;;  %v239_v58 = vld [vmem:[#allocation7 + $0x198] sm:$0xff] }
  0x74   :  { %1003 = vmatpush1.bf16.msra.mxu1 %v2851_v7  ;;  %1085 = vmatpush1.bf16.msra.mxu0 %v2855_v8  ;;  %v269_v7 = vld [vmem:[#allocation7 + $0x288] sm:$0xff] }
  0x75   :  { %1013 = vmatprep.subr.bf16.mxu1 %v2734_v9  ;;  %1220 = vmatprep.subr.bf16.mxu0 %v2860_v10  ;;  %v273_v8 = vld [vmem:[#allocation7 + $0x2a8] sm:$0xff]  ;;  %v2874_v9 = vcombine.high %v185_v2, %v189_v3  ;;  %v2789_v10 = vcombine.low %v261_v63, %v265_v0  ;;  %v247_v63 = vld [vmem:[#allocation7 + $0x1d8] sm:$0xff] }
  0x76   :  { %v2798_v11 = vcombine.high %v269_v7, %v273_v8  ;;  %v251_v0 = vld [vmem:[#allocation7 + $0x1f8] sm:$0xff] }
  0x77   :  { %1005 = vmatmul.mubr.bf16.vlgmr.msra.gmra.mrb[0].mxu1 %v3263_v13  ;;  %1087 = vmatmul.mubr.bf16.vlgmr.msra.gmra.mrb[0].mxu0 %v3263_v13  ;;  %v255_v2 = vld [vmem:[#allocation7 + $0x218] sm:$0xff] }
  0x78   :  { %1014 = vmatpush1.bf16.msra.mxu1 %v2733_v16  ;;  %1221 = vmatpush1.bf16.msra.mxu0 %v2859_v17  ;;  %v2797_v16 = vcombine.low %v269_v7, %v273_v8  ;;  %v2806_v17 = vcombine.high %v277_v14, %v281_v15  ;;  %v259_v3 = vld [vmem:[#allocation7 + $0x238] sm:$0xff] }
  0x79   :  { %1015 = vmatprep.subr.bf16.mxu1 %v2742_v18  ;;  %1222 = vmatprep.subr.bf16.mxu0 %v2868_v19  ;;  %v285_v18 = vld [vmem:[#allocation7 + $0x308] sm:$0xff]  ;;  %v267_v7 = vld [vmem:[#allocation7 + $0x278] sm:$0xff]  ;;  %v2785_v8 = vcombine.low %v255_v2, %v259_v3 }
  0x7a   :  { %1252 = vmatprep.mubr.bf16.mxu0 %v3118_v27  ;;  %1045 = vmatprep.mubr.bf16.mxu1 %v3257_v61  ;;  %v289_v19 = vld [vmem:[#allocation7 + $0x328] sm:$0xff]  ;;  %v279_v15 = vld [vmem:[#allocation7 + $0x2d8] sm:$0xff] }
  0x7b   :  { %v2814_v21 = vcombine.high %v285_v18, %v289_v19 }
  0x7c   :  { %1016 = vmatpush1.bf16.msra.mxu1 %v2741_v53  ;;  %1223 = vmatpush1.bf16.msra.mxu0 %v2867_v24  ;;  %v2813_v53 = vcombine.low %v285_v18, %v289_v19  ;;  %v2822_v24 = vcombine.high %v293_v22, %v297_v23  ;;  %v287_v19 = vld [vmem:[#allocation7 + $0x318] sm:$0xff] }
  0x7d   :  { %1017 = vmatprep.subr.bf16.mxu1 %v2750_v25  ;;  %1261 = vmatprep.subr.bf16.mxu0 %v2862_v28  ;;  %v301_v25 = vld [vmem:[#allocation7 + $0x388] sm:$0xff] }
  0x7e   :  { %v2830_v28 = vcombine.high %v301_v25, %v305_v26  ;;  %v2829_v31 = vcombine.low %v301_v25, %v305_v26  ;;  %v303_v26 = vld [vmem:[#allocation7 + $0x398] sm:$0xff] }
  0x7f   :  { %2875 = vmatmul.mubr.msk.bf16.vlgmr.msra.gmra.mrb[4].mxu0 %vm1216_vm0, %v3272_v34 }
  0x80   :  { %1018 = vmatpush1.bf16.msra.mxu1 %v2749_v33  ;;  %1262 = vmatpush1.bf16.msra.mxu0 %v2861_v35  ;;  %v317_v33 = vld [vmem:[#allocation7 + $0x408] sm:$0xff]  ;;  %v2837_v35 = vcombine.low %v309_v29, %v313_v30  ;;  %v311_v30 = vld [vmem:[#allocation7 + $0x3d8] sm:$0xff] }
  0x81   :  { %1019 = vmatprep.subr.bf16.mxu1 %v2758_v36  ;;  %1263 = vmatprep.subr.bf16.mxu0 %v2870_v37  ;;  %v325_v37 = vld [vmem:[#allocation7 + $0x448] sm:$0xff] }
  0x82   :  { %1293 = vmatprep.mubr.bf16.mxu0 %v3118_v27  ;;  %v2854_v40 = vcombine.high %v325_v37, %v329_v38 }
  0x84   :  { %1020 = vmatpush1.bf16.msra.mxu1 %v2757_v42  ;;  %1264 = vmatpush1.bf16.msra.mxu0 %v2869_v43  ;;  %v211_v42 = vld [vmem:[#allocation7 + $0xb8] sm:$0xff]  ;;  %v2853_v43 = vcombine.low %v325_v37, %v329_v38 }
  0x85   :  { %1021 = vmatprep.subr.bf16.mxu1 %v2766_v44  ;;  %1302 = vmatprep.subr.bf16.mxu0 %v2864_v45  ;;  %v2738_v44 = vcombine.high %v207_v41, %v211_v42  ;;  %v215_v45 = vld [vmem:[#allocation7 + $0xd8] sm:$0xff]  ;;  %v2737_v47 = vcombine.low %v207_v41, %v211_v42 }
  0x86   :  { %v2746_v48 = vcombine.high %v215_v45, %v219_v46  ;;  %v327_v38 = vld [vmem:[#allocation7 + $0x458] sm:$0xff] }
  0x87   :  { %2876 = vmatmul.mubr.msk.bf16.vlgmr.msra.gmra.mrb[8].mxu0 %vm1216_vm0, %v3272_v34 }
  0x88   :  { %1022 = vmatpush1.bf16.msra.mxu1 %v2765_v50  ;;  %1303 = vmatpush1.bf16.msra.mxu0 %v2863_v51  ;;  %v227_v50 = vld [vmem:[#allocation7 + $0x138] sm:$0xff]  ;;  %v2745_v51 = vcombine.low %v215_v45, %v219_v46 }
  0x89   :  { %1023 = vmatprep.subr.bf16.mxu1 %v2774_v52  ;;  %1304 = vmatprep.subr.bf16.mxu0 %v2872_v54  ;;  %v2754_v52 = vcombine.high %v223_v49, %v227_v50  ;;  %v231_v54 = vld [vmem:[#allocation7 + $0x158] sm:$0xff]  ;;  %v2753_v56 = vcombine.low %v223_v49, %v227_v50 }
  0x8a   :  { %1334 = vmatprep.mubr.bf16.mxu0 %v3118_v27  ;;  %v2762_v57 = vcombine.high %v231_v54, %v235_v55 }
  0x8c   :  { %1024 = vmatpush1.bf16.msra.mxu1 %v2773_v59  ;;  %1305 = vmatpush1.bf16.msra.mxu0 %v2871_v60  ;;  %v243_v59 = vld [vmem:[#allocation7 + $0x1b8] sm:$0xff]  ;;  %v2761_v60 = vcombine.low %v231_v54, %v235_v55  ;;  %v3296_v55 = vld [vmem:[%s3494_s4] sm:$0xff]  ;;  %s3119_s4 = smov [#allocation5]  }
  0x8d   :  { %1025 = vmatprep.subr.bf16.mxu1 %v2782_v62  ;;  %1343 = vmatprep.subr.bf16.mxu0 %v2866_v1  ;;  %v2770_v62 = vcombine.high %v239_v58, %v243_v59  ;;  %v2769_v1 = vcombine.low %v239_v58, %v243_v59  ;;  %s168_s26 = sshll.u32 %s3119_s4, 4  ;;  %s169_s26 = int_to_ptr.vmem [resolvable:$true] %s168_s26 }
  0x8f   :  { %2877 = vmatmul.mubr.msk.bf16.vlgmr.msra.gmra.mrb[12].mxu0 %vm1216_vm0, %v3272_v34 }
  0x90   :  { %1026 = vmatpush1.bf16.msra.mxu1 %v2781_v4  ;;  %1344 = vmatpush1.bf16.msra.mxu0 %v2865_v6  ;;  %v2777_v4 = vcombine.low %v247_v63, %v251_v0  ;;  %v263_v6 = vld [vmem:[#allocation7 + $0x258] sm:$0xff] }
  0x91   :  { %1027 = vmatprep.subr.bf16.mxu1 %v2790_v5  ;;  %1345 = vmatprep.subr.bf16.mxu0 %v2874_v9  ;;  %v2786_v5 = vcombine.high %v255_v2, %v259_v3  ;;  %v2794_v9 = vcombine.high %v263_v6, %v267_v7 }
  0x92   :  { %1375 = vmatprep.mubr.bf16.mxu0 %v3118_v27  ;;  %v2821_v27 = vcombine.low %v293_v22, %v297_v23  ;;  %v295_v23 = vld [vmem:[#allocation7 + $0x358] sm:$0xff] }
  0x94   :  { %1028 = vmatpush1.bf16.msra.mxu1 %v2789_v10  ;;  %1346 = vmatpush1.bf16.msra.mxu0 %v2873_v12  ;;  %v271_v10 = vld [vmem:[#allocation7 + $0x298] sm:$0xff]  ;;  %v2793_v12 = vcombine.low %v263_v6, %v267_v7 }
  0x95   :  { %1029 = vmatprep.subr.bf16.mxu1 %v2798_v11  ;;  %v275_v11 = vld [vmem:[#allocation7 + $0x2b8] sm:$0xff] }
  0x96   :  { %v2802_v14 = vcombine.high %v271_v10, %v275_v11 }
  0x97   :  { %2878 = vmatmul.mubr.msk.bf16.vlgmr.msra.gmra.mrb[16].mxu0 %vm1216_vm0, %v3272_v34  ;;  %v321_v34 = vld [vmem:[#allocation7 + $0x428] sm:$0xff] }
  0x98   :  { %1030 = vmatpush1.bf16.msra.mxu1 %v2797_v16  ;;  %v2846_v36 = vcombine.high %v317_v33, %v321_v34  ;;  %v2845_v39 = vcombine.low %v317_v33, %v321_v34  ;;  %v283_v16 = vld [vmem:[#allocation7 + $0x2f8] sm:$0xff] }
  0x99   :  { %1031 = vmatprep.subr.bf16.mxu1 %v2806_v17  ;;  %v2801_v17 = vcombine.low %v271_v10, %v275_v11  ;;  %v2810_v18 = vcombine.high %v279_v15, %v283_v16  ;;  %v319_v34 = vld [vmem:[#allocation7 + $0x418] sm:$0xff] }
  0x9c   :  { %1032 = vmatpush1.bf16.msra.mxu1 %v2805_v20  ;;  %v291_v20 = vld [vmem:[#allocation7 + $0x338] sm:$0xff] }
  0x9d   :  { %1033 = vmatprep.subr.bf16.mxu1 %v2814_v21  ;;  %v2809_v21 = vcombine.low %v279_v15, %v283_v16  ;;  %v2818_v22 = vcombine.high %v287_v19, %v291_v20 }
  0xa0   :  { %1034 = vmatpush1.bf16.msra.mxu1 %v2813_v53  ;;  %v299_v53 = vld [vmem:[#allocation7 + $0x378] sm:$0xff] }
  0xa1   :  { %1035 = vmatprep.subr.bf16.mxu1 %v2822_v24  ;;  %v2817_v24 = vcombine.low %v287_v19, %v291_v20  ;;  %v2826_v25 = vcombine.high %v295_v23, %v299_v53 }
  0xa4   :  { %1036 = vmatpush1.bf16.msra.mxu1 %v2821_v27  ;;  %v307_v27 = vld [vmem:[#allocation7 + $0x3b8] sm:$0xff] }
  0xa5   :  { %1037 = vmatprep.subr.bf16.mxu1 %v2830_v28  ;;  %v2825_v28 = vcombine.low %v295_v23, %v299_v53  ;;  %v2834_v29 = vcombine.high %v303_v26, %v307_v27 }
  0xa8   :  { %1038 = vmatpush1.bf16.msra.mxu1 %v2829_v31  ;;  %v315_v31 = vld [vmem:[#allocation7 + $0x3f8] sm:$0xff] }
  0xa9   :  { %1039 = vmatprep.subr.bf16.mxu1 %v2838_v32  ;;  %v2833_v32 = vcombine.low %v303_v26, %v307_v27  ;;  %v2842_v33 = vcombine.high %v311_v30, %v315_v31 }
  0xac   :  { %1040 = vmatpush1.bf16.msra.mxu1 %v2837_v35  ;;  %v323_v35 = vld [vmem:[#allocation7 + $0x438] sm:$0xff] }
  0xad   :  { %1041 = vmatprep.subr.bf16.mxu1 %v2846_v36  ;;  %v2841_v36 = vcombine.low %v311_v30, %v315_v31  ;;  %v2850_v37 = vcombine.high %v319_v34, %v323_v35 }
  0xb0   :  { %1042 = vmatpush1.bf16.msra.mxu1 %v2845_v39  ;;  %v331_v39 = vld [vmem:[#allocation7 + $0x478] sm:$0xff] }
  0xb1   :  { %1043 = vmatprep.subr.bf16.mxu1 %v2854_v40  ;;  %v2849_v40 = vcombine.low %v319_v34, %v323_v35  ;;  %v2858_v41 = vcombine.high %v327_v38, %v331_v39  ;;  %v2857_v42 = vcombine.low %v327_v38, %v331_v39 }
  0xb4   :  { %1044 = vmatpush1.bf16.msra.mxu1 %v2853_v43  ;;  %v1386_v43 = vlaneseq }
  0xb5   :  { %1095 = vmatprep.subr.bf16.mxu1 %v2738_v44 }
  0xb6   :  { %v3288_v45 = vshrl.u32 %v1386_v43, 7 }
  0xb7   :  { %1046 = vmatmul.mubr.bf16.vlgmr.msra.gmra.mrb[4].mxu1 %v3263_v13 }
  0xb8   :  { %1096 = vmatpush1.bf16.msra.mxu1 %v2737_v47  ;;  %1127 = vmatprep.mubr.bf16.mxu1 %v3257_v61  ;;  %v2778_v61 = vcombine.high %v247_v63, %v251_v0  ;;  %v3291_v54 = vsub.s32 0, %v3288_v45 }
  0xb9   :  { %1097 = vmatprep.subr.bf16.mxu1 %v2746_v48 }
  0xbc   :  { %1098 = vmatpush1.bf16.msra.mxu1 %v2745_v51 }
  0xbd   :  { %1099 = vmatprep.subr.bf16.mxu1 %v2754_v52 }
  0xc0   :  { %1100 = vmatpush1.bf16.msra.mxu1 %v2753_v56  ;;  %v1389_v56 = vrot.slane %v3296_v55, %v3291_v54 }
  0xc1   :  { %1101 = vmatprep.subr.bf16.mxu1 %v2762_v57 }
  0xc4   :  { %1102 = vmatpush1.bf16.msra.mxu1 %v2761_v60 }
  0xc5   :  { %1103 = vmatprep.subr.bf16.mxu1 %v2770_v62 }
  0xc8   :  { %1104 = vmatpush1.bf16.msra.mxu1 %v2769_v1 }
  0xc9   :  { %1105 = vmatprep.subr.bf16.mxu1 %v2778_v61 }
  0xcc   :  { %1106 = vmatpush1.bf16.msra.mxu1 %v2777_v4 }
  0xcd   :  { %1107 = vmatprep.subr.bf16.mxu1 %v2786_v5 }
  0xd0   :  { %1108 = vmatpush1.bf16.msra.mxu1 %v2785_v8  ;;  %v1404_v8 = vsub.s32 4, %v3288_v45 }
  0xd1   :  { %1109 = vmatprep.subr.bf16.mxu1 %v2794_v9  ;;  %v1408_v9 = vsub.s32 5, %v3288_v45 }
  0xd2   :  { %v1405_v10 = vrot.slane %v3296_v55, %v1404_v8 }
  0xd4   :  { %1110 = vmatpush1.bf16.msra.mxu1 %v2793_v12  ;;  %v1409_v12 = vrot.slane %v3296_v55, %v1408_v9 }
  0xd5   :  { %1111 = vmatprep.subr.bf16.mxu1 %v2802_v14 }
  0xd8   :  { %1112 = vmatpush1.bf16.msra.mxu1 %v2801_v17 }
  0xd9   :  { %1113 = vmatprep.subr.bf16.mxu1 %v2810_v18 }
  0xdc   :  { %1114 = vmatpush1.bf16.msra.mxu1 %v2809_v21 }
  0xdd   :  { %1115 = vmatprep.subr.bf16.mxu1 %v2818_v22 }
  0xe0   :  { %1116 = vmatpush1.bf16.msra.mxu1 %v2817_v24 }
  0xe1   :  { %1117 = vmatprep.subr.bf16.mxu1 %v2826_v25 }
  0xe4   :  { %1118 = vmatpush1.bf16.msra.mxu1 %v2825_v28 }
  0xe5   :  { %1119 = vmatprep.subr.bf16.mxu1 %v2834_v29 }
  0xe8   :  { %1120 = vmatpush1.bf16.msra.mxu1 %v2833_v32 }
  0xe9   :  { %1121 = vmatprep.subr.bf16.mxu1 %v2842_v33 }
  0xec   :  { %1122 = vmatpush1.bf16.msra.mxu1 %v2841_v36 }
  0xed   :  { %1123 = vmatprep.subr.bf16.mxu1 %v2850_v37 }
  0xf0   :  { %1124 = vmatpush1.bf16.msra.mxu1 %v2849_v40 }
  0xf1   :  { %1125 = vmatprep.subr.bf16.mxu1 %v2858_v41 }
  0xf4   :  { %1126 = vmatpush1.bf16.msra.mxu1 %v2857_v42 }
  0xf7   :  { %1128 = vmatmul.mubr.bf16.vlgmr.msra.gmra.mrb[8].mxu1 %v3263_v13  ;;  %v3299_v13 = vsub.s32 1, %v3288_v45 }
  0xf9   :  { %v1393_v58 = vrot.slane %v3296_v55, %v3299_v13 }
 0x14a   :  { %v1006_v44 = vpop.f32.mrb[0].mxu1  ;;  %v1088_v47 = vpop.f32.mrb[0].mxu0 }
 0x14b   :  { %v1008_v46 = vpop.f32.mrb[1].mxu1  ;;  %v1090_v49 = vpop.f32.mrb[1].mxu0 }
 0x14c   :  { %v1010_v48 = vpop.f32.mrb[2].mxu1  ;;  %v1092_v51 = vpop.f32.mrb[2].mxu0 }
 0x14d   :  { %v1011_v50 = vpop.f32.mrb[3].mxu1  ;;  %v1093_v52 = vpop.f32.mrb[3].mxu0 }
 0x152   :  { %v1254_v57 = vpop.f32.mrb[4].mxu0 }
 0x153   :  { %v1255_v59 = vadd.f32 %v1254_v57, %v1006_v44  ;;  %v1256_v60 = vpop.f32.mrb[5].mxu0 }
 0x154   :  { %v1257_v62 = vadd.f32 %v1256_v60, %v1008_v46  ;;  %v1258_v63 = vpop.f32.mrb[6].mxu0 }
 0x155   :  { %v1426_v0 = vadd.f32 %v1389_v56, %v1255_v59  ;;  %v1259_v1 = vpop.f32.mrb[7].mxu0 }
 0x156   :  { %v1427_v61 = vadd.f32 %v1393_v58, %v1257_v62 }
 0x157   :  { %v2879_v2 = vmul.f32 -1.442695, %v1426_v0 }
 0x158   :  { %v2880_v3 = vmul.f32 -1.442695, %v1427_v61 }
 0x159   :  { %2957 = vpow2.f32 %v2879_v2 }
 0x15a   :  { %2959 = vpow2.f32 %v2880_v3  ;;  %v1295_v4 = vpop.f32.mrb[8].mxu0 }
 0x15b   :  { %v1297_v5 = vpop.f32.mrb[9].mxu0 }
 0x15c   :  { %v1299_v6 = vpop.f32.mrb[10].mxu0 }
 0x15d   :  { %v1300_v7 = vpop.f32.mrb[11].mxu0 }
 0x162   :  { %v1336_v11 = vpop.f32.mrb[12].mxu0 }
 0x163   :  { %v2958_v14 = vpop.eup %2957  ;;  %v1337_v15 = vadd.f32 %v1336_v11, %v1088_v47  ;;  %v1338_v16 = vpop.f32.mrb[13].mxu0 }
 0x164   :  { %v2960_v17 = vpop.eup %2959  ;;  %v1441_v18 = vadd.f32 1.0, %v2958_v14  ;;  %v1339_v19 = vadd.f32 %v1338_v16, %v1090_v49  ;;  %v1340_v20 = vpop.f32.mrb[14].mxu0 }
 0x165   :  { %v1442_v21 = vadd.f32 1.0, %v2960_v17  ;;  %v1430_v22 = vadd.f32 %v1405_v10, %v1337_v15  ;;  %v1341_v23 = vpop.f32.mrb[15].mxu0 }
 0x166   :  { %2961 = vrcp.f32 %v1441_v18  ;;  %v1431_v53 = vadd.f32 %v1409_v12, %v1339_v19 }
 0x167   :  { %2963 = vrcp.f32 %v1442_v21 }
 0x168   :  { %2965 = vtanh.f32 %v1430_v22 }
 0x169   :  { %2967 = vtanh.f32 %v1431_v53 }
 0x16a   :  { %v1377_v24 = vpop.f32.mrb[16].mxu0 }
 0x16b   :  { %v1379_v25 = vpop.f32.mrb[17].mxu0 }
 0x16c   :  { %3052 = shalt.err (!%p3049_p10)  }
 0x16d   :  { %s3053_s24 = scalar_lea.vmem %s169_s26, 2048  ;;  %p3058_p12 = scmp.lt.s32.totalorder %s169_s26, %s169_s26 }
 0x16e   :  { %p3054_p11 = scmp.ne.s32.totalorder %s169_s26, %s3053_s24  ;;  %p3059_p13 = scmp.lt.s32.totalorder %s3053_s24, %s3053_s24 }
 0x170   :  { %p3060_p0 = por %p3059_p13, %p3058_p12 }
 0x172   :  { %p3061_p1 = pnand %p3060_p0, %p3054_p11 }
 0x174   :  { %3064 = shalt.err (!%p3061_p1)  }
 0x175   :  { %171 = dma.hbm_to_vmem [thread:$0]  %s3501_s11, 2048, %s169_s26, [#allocation6 + $0x3]  ;;  %v1381_v26 = vpop.f32.mrb[18].mxu0  ;;  %v2962_v28 = vpop.eup %2961  ;;  %v3326_v34 = vsub.s32 2, %v3288_v45  ;;  %v3329_v35 = vsub.s32 3, %v3288_v45  ;;  %v1412_v1 = vsub.s32 6, %v3288_v45 }
 0x176   :  { %v1382_v27 = vpop.f32.mrb[19].mxu0  ;;  %v2964_v29 = vpop.eup %2963  ;;  %v2885_v56 = vld.sshfl [vmem:[%s3492_s2] sm:$0x33 pattern:$0x76325410]  ;;  %v1416_v61 = vsub.s32 7, %v3288_v45 }
 0x177   :  { %v2966_v30 = vpop.eup %2965  ;;  %v1397_v36 = vrot.slane %v3296_v55, %v3326_v34  ;;  %v1401_v38 = vrot.slane %v3296_v55, %v3329_v35  ;;  %v1481_v57 = vcombine.high %v2885_v56, %v2885_v56  ;;  %v1413_v2 = vrot.slane %v3296_v55, %v1412_v1 }
 0x178   :  { %v2968_v31 = vpop.eup %2967  ;;  %v1486_v32 = vmul.f32 %v2966_v30, %v2962_v28 }
 0x179   :  { %v1487_v33 = vmul.f32 %v2968_v31, %v2964_v29 }
 0x18a   :  { %v1047_v37 = vpop.f32.mrb[4].mxu1 }
 0x18b   :  { %v1296_v39 = vadd.f32 %v1295_v4, %v1047_v37  ;;  %v1049_v40 = vpop.f32.mrb[5].mxu1  ;;  %v1417_v4 = vrot.slane %v3296_v55, %v1416_v61 }
 0x18c   :  { %v1298_v41 = vadd.f32 %v1297_v5, %v1049_v40  ;;  %v1051_v42 = vpop.f32.mrb[6].mxu1 }
 0x18d   :  { %v1428_v43 = vadd.f32 %v1397_v36, %v1296_v39  ;;  %v1052_v44 = vpop.f32.mrb[7].mxu1 }
 0x18e   :  { %v1429_v46 = vadd.f32 %v1401_v38, %v1298_v41 }
 0x18f   :  { %v2881_v47 = vmul.f32 -1.442695, %v1428_v43 }
 0x190   :  { %v2882_v48 = vmul.f32 -1.442695, %v1429_v46 }
 0x191   :  { %2969 = vpow2.f32 %v2881_v47 }
 0x192   :  { %2971 = vpow2.f32 %v2882_v48 }
 0x19b   :  { %v2970_v49 = vpop.eup %2969 }
 0x19c   :  { %v2972_v50 = vpop.eup %2971  ;;  %v1453_v51 = vadd.f32 1.0, %v2970_v49 }
 0x19d   :  { %v1454_v52 = vadd.f32 1.0, %v2972_v50 }
 0x19e   :  { %2973 = vrcp.f32 %v1453_v51 }
 0x19f   :  { %2975 = vrcp.f32 %v1454_v52 }
 0x1a8   :  { %v2974_v58 = vpop.eup %2973 }
 0x1a9   :  { %v2976_v59 = vpop.eup %2975  ;;  %v1484_v60 = vmul.f32 %v2974_v58, %v2885_v56 }
 0x1aa   :  { %v1485_v62 = vmul.f32 %v2976_v59, %v1481_v57 }
 0x1ab   :  { %v3338_v63 = vadd.f32 %v1486_v32, %v1484_v60 }
 0x1ac   :  { %v3340_v0 = vadd.f32 %v1487_v33, %v1485_v62 }
 0x1ca   :  { %v1129_v3 = vpop.f32.mrb[8].mxu1 }
 0x1cb   :  { %v1378_v5 = vadd.f32 %v1377_v24, %v1129_v3  ;;  %v1131_v6 = vpop.f32.mrb[9].mxu1 }
 0x1cc   :  { %v1380_v7 = vadd.f32 %v1379_v25, %v1131_v6  ;;  %v1133_v10 = vpop.f32.mrb[10].mxu1 }
 0x1cd   :  { %v1432_v11 = vadd.f32 %v1413_v2, %v1378_v5  ;;  %v1134_v12 = vpop.f32.mrb[11].mxu1 }
 0x1ce   :  { %v1433_v14 = vadd.f32 %v1417_v4, %v1380_v7 }
 0x1cf   :  { %v2883_v15 = vmul.f32 -1.442695, %v1432_v11 }
 0x1d0   :  { %v2884_v16 = vmul.f32 -1.442695, %v1433_v14 }
 0x1d1   :  { %2977 = vpow2.f32 %v2883_v15 }
 0x1d2   :  { %2979 = vpow2.f32 %v2884_v16 }
 0x1d3   :  { %2981 = vtanh.f32 %v3338_v63 }
 0x1d4   :  { %2983 = vtanh.f32 %v3340_v0 }
 0x1db   :  { %v2978_v17 = vpop.eup %2977 }
 0x1dc   :  { %v2980_v18 = vpop.eup %2979  ;;  %v1467_v19 = vadd.f32 1.0, %v2978_v17 }
 0x1dd   :  { %v1468_v20 = vadd.f32 1.0, %v2980_v18  ;;  %v2982_v55 = vpop.eup %2981 }
 0x1de   :  { %2985 = vrcp.f32 %v1467_v19  ;;  %v2984_v21 = vpop.eup %2983 }
 0x1df   :  { %2987 = vrcp.f32 %v1468_v20 }
 0x1e8   :  { %v2986_v22 = vpop.eup %2985 }
 0x1e9   :  { %v2988_v23 = vpop.eup %2987  ;;  %v3352_v53 = vmul.f32 %v2986_v22, %v2982_v55 }
 0x1ea   :  { %v3354_v24 = vmul.f32 %v2988_v23, %v2984_v21 }
 0x1eb   :  { %3089 = dma.done.wait [#allocation6], 32768 }
 0x1ec   :  { %3090 = vsyncadd [#allocation6], 4294934528  ;;  %v1644_v25 = vld [vmem:[#allocation2 + $0x408] sm:$0xff]  ;;  %v1646_v26 = vld [vmem:[#allocation2 + $0x418] sm:$0xff] }
 0x1ed   :  { %v1643_v27 = vld [vmem:[#allocation2 + $0x400] sm:$0xff]  ;;  %1771 = vmatprep.subr.bf16.mxu0 %v1644_v25  ;;  %1812 = vmatprep.subr.bf16.mxu1 %v1646_v26  ;;  %v1645_v28 = vld [vmem:[#allocation2 + $0x410] sm:$0xff]  ;;  %v1652_v29 = vld [vmem:[#allocation2 + $0x448] sm:$0xff] }
 0x1ee   :  { %v1654_v30 = vld [vmem:[#allocation2 + $0x458] sm:$0xff]  ;;  %1772 = vmatpush1.bf16.msra.mxu0 %v1643_v27  ;;  %1813 = vmatpush1.bf16.msra.mxu1 %v1645_v28  ;;  %v1651_v31 = vld [vmem:[#allocation2 + $0x440] sm:$0xff]  ;;  %v1653_v32 = vld [vmem:[#allocation2 + $0x450] sm:$0xff] }
 0x1ef   :  { %1773 = vmatprep.subr.bf16.mxu0 %v1652_v29  ;;  %1814 = vmatprep.subr.bf16.mxu1 %v1654_v30  ;;  %v1660_v33 = vld [vmem:[#allocation2 + $0x488] sm:$0xff]  ;;  %v1662_v36 = vld [vmem:[#allocation2 + $0x498] sm:$0xff]  ;;  %v1659_v37 = vld [vmem:[#allocation2 + $0x480] sm:$0xff] }
 0x1f0   :  { %v1661_v38 = vld [vmem:[#allocation2 + $0x490] sm:$0xff]  ;;  %v1668_v39 = vld [vmem:[#allocation2 + $0x4c8] sm:$0xff]  ;;  %v1670_v40 = vld [vmem:[#allocation2 + $0x4d8] sm:$0xff] }
 0x1f1   :  { %v1667_v41 = vld [vmem:[#allocation2 + $0x4c0] sm:$0xff]  ;;  %v1669_v42 = vld [vmem:[#allocation2 + $0x4d0] sm:$0xff]  ;;  %v1676_v43 = vld [vmem:[#allocation2 + $0x508] sm:$0xff] }
 0x1f2   :  { %1774 = vmatpush1.bf16.msra.mxu0 %v1651_v31  ;;  %1815 = vmatpush1.bf16.msra.mxu1 %v1653_v32  ;;  %v1678_v44 = vld [vmem:[#allocation2 + $0x518] sm:$0xff]  ;;  %v1675_v46 = vld [vmem:[#allocation2 + $0x500] sm:$0xff]  ;;  %v1677_v47 = vld [vmem:[#allocation2 + $0x510] sm:$0xff] }
 0x1f3   :  { %1775 = vmatprep.subr.bf16.mxu0 %v1660_v33  ;;  %1816 = vmatprep.subr.bf16.mxu1 %v1662_v36  ;;  %v1684_v48 = vld [vmem:[#allocation2 + $0x548] sm:$0xff]  ;;  %v1686_v49 = vld [vmem:[#allocation2 + $0x558] sm:$0xff]  ;;  %v1683_v50 = vld [vmem:[#allocation2 + $0x540] sm:$0xff] }
 0x1f4   :  { %v1685_v51 = vld [vmem:[#allocation2 + $0x550] sm:$0xff]  ;;  %v1692_v52 = vld [vmem:[#allocation2 + $0x588] sm:$0xff]  ;;  %v1694_v56 = vld [vmem:[#allocation2 + $0x598] sm:$0xff] }
 0x1f5   :  { %v3359_v57 = vld.sshfl [vmem:[%s3491_s1 + $0x4] sm:$0x33 pattern:$0x76325410]  ;;  %v1693_v60 = vld [vmem:[#allocation2 + $0x590] sm:$0xff]  ;;  %v1700_v62 = vld [vmem:[#allocation2 + $0x5c8] sm:$0xff] }
 0x1f6   :  { %1776 = vmatpush1.bf16.msra.mxu0 %v1659_v37  ;;  %1817 = vmatpush1.bf16.msra.mxu1 %v1661_v38  ;;  %v1638_v58 = vcombine.high %v3359_v57, %v3359_v57  ;;  %v1691_v59 = vld [vmem:[#allocation2 + $0x580] sm:$0xff]  ;;  %v1702_v2 = vld [vmem:[#allocation2 + $0x5d8] sm:$0xff]  ;;  %v1701_v5 = vld [vmem:[#allocation2 + $0x5d0] sm:$0xff] }
 0x1f7   :  { %1777 = vmatprep.subr.bf16.mxu0 %v1668_v39  ;;  %1818 = vmatprep.subr.bf16.mxu1 %v1670_v40  ;;  %v1699_v4 = vld [vmem:[#allocation2 + $0x5c0] sm:$0xff]  ;;  %v1708_v6 = vld [vmem:[#allocation2 + $0x608] sm:$0xff]  ;;  %v1710_v7 = vld [vmem:[#allocation2 + $0x618] sm:$0xff] }
 0x1f8   :  { %v3363_v3 = vpack.c.bf16 %v1638_v58, %v1638_v58  ;;  %v1707_v10 = vld [vmem:[#allocation2 + $0x600] sm:$0xff]  ;;  %v1709_v11 = vld [vmem:[#allocation2 + $0x610] sm:$0xff]  ;;  %v1716_v12 = vld [vmem:[#allocation2 + $0x648] sm:$0xff] }
 0x1f9   :  { %v1718_v14 = vld [vmem:[#allocation2 + $0x658] sm:$0xff]  ;;  %v1715_v15 = vld [vmem:[#allocation2 + $0x640] sm:$0xff]  ;;  %v1717_v16 = vld [vmem:[#allocation2 + $0x650] sm:$0xff] }
 0x1fa   :  { %1778 = vmatpush1.bf16.msra.mxu0 %v1667_v41  ;;  %1819 = vmatpush1.bf16.msra.mxu1 %v1669_v42  ;;  %v1724_v17 = vld [vmem:[#allocation2 + $0x688] sm:$0xff]  ;;  %v1726_v18 = vld [vmem:[#allocation2 + $0x698] sm:$0xff]  ;;  %v1723_v19 = vld [vmem:[#allocation2 + $0x680] sm:$0xff] }
 0x1fb   :  { %1779 = vmatprep.subr.bf16.mxu0 %v1676_v43  ;;  %1820 = vmatprep.subr.bf16.mxu1 %v1678_v44  ;;  %v1725_v20 = vld [vmem:[#allocation2 + $0x690] sm:$0xff]  ;;  %v1732_v55 = vld [vmem:[#allocation2 + $0x6c8] sm:$0xff]  ;;  %v1734_v21 = vld [vmem:[#allocation2 + $0x6d8] sm:$0xff] }
 0x1fc   :  { %1803 = vmatprep.mubr.bf16.mxu0 %v3363_v3  ;;  %1844 = vmatprep.mubr.bf16.mxu1 %v3363_v3  ;;  %v1731_v22 = vld [vmem:[#allocation2 + $0x6c0] sm:$0xff]  ;;  %v1733_v23 = vld [vmem:[#allocation2 + $0x6d0] sm:$0xff]  ;;  %v1740_v25 = vld [vmem:[#allocation2 + $0x708] sm:$0xff] }
 0x1fd   :  { %v1742_v26 = vld [vmem:[#allocation2 + $0x718] sm:$0xff]  ;;  %v1739_v27 = vld [vmem:[#allocation2 + $0x700] sm:$0xff]  ;;  %v1741_v28 = vld [vmem:[#allocation2 + $0x710] sm:$0xff] }
 0x1fe   :  { %1780 = vmatpush1.bf16.msra.mxu0 %v1675_v46  ;;  %1821 = vmatpush1.bf16.msra.mxu1 %v1677_v47  ;;  %v1748_v29 = vld [vmem:[#allocation2 + $0x748] sm:$0xff]  ;;  %v1750_v30 = vld [vmem:[#allocation2 + $0x758] sm:$0xff]  ;;  %v1747_v31 = vld [vmem:[#allocation2 + $0x740] sm:$0xff]  ;;  %v3369_v46 = vpack.c.bf16 %v3359_v57, %v3359_v57 }
 0x1ff   :  { %1781 = vmatprep.subr.bf16.mxu0 %v1684_v48  ;;  %1822 = vmatprep.subr.bf16.mxu1 %v1686_v49  ;;  %v1749_v32 = vld [vmem:[#allocation2 + $0x750] sm:$0xff]  ;;  %v1756_v33 = vld [vmem:[#allocation2 + $0x788] sm:$0xff]  ;;  %v1758_v36 = vld [vmem:[#allocation2 + $0x798] sm:$0xff] }
 0x200   :  { %v1755_v37 = vld [vmem:[#allocation2 + $0x780] sm:$0xff]  ;;  %v1757_v38 = vld [vmem:[#allocation2 + $0x790] sm:$0xff]  ;;  %v1764_v39 = vld [vmem:[#allocation2 + $0x7c8] sm:$0xff] }
 0x201   :  { %v1766_v40 = vld [vmem:[#allocation2 + $0x7d8] sm:$0xff]  ;;  %v1763_v41 = vld [vmem:[#allocation2 + $0x7c0] sm:$0xff]  ;;  %v1765_v42 = vld [vmem:[#allocation2 + $0x7d0] sm:$0xff] }
 0x202   :  { %1782 = vmatpush1.bf16.msra.mxu0 %v1683_v50  ;;  %1823 = vmatpush1.bf16.msra.mxu1 %v1685_v51  ;;  %v1648_v43 = vld [vmem:[#allocation2 + $0x428] sm:$0xff]  ;;  %v1650_v44 = vld [vmem:[#allocation2 + $0x438] sm:$0xff]  ;;  %v1647_v47 = vld [vmem:[#allocation2 + $0x420] sm:$0xff] }
 0x203   :  { %1783 = vmatprep.subr.bf16.mxu0 %v1692_v52  ;;  %1824 = vmatprep.subr.bf16.mxu1 %v1694_v56  ;;  %v1649_v48 = vld [vmem:[#allocation2 + $0x430] sm:$0xff]  ;;  %v1656_v49 = vld [vmem:[#allocation2 + $0x468] sm:$0xff]  ;;  %v1658_v50 = vld [vmem:[#allocation2 + $0x478] sm:$0xff] }
 0x204   :  { %v1655_v51 = vld [vmem:[#allocation2 + $0x460] sm:$0xff]  ;;  %v1657_v52 = vld [vmem:[#allocation2 + $0x470] sm:$0xff]  ;;  %v1664_v56 = vld [vmem:[#allocation2 + $0x4a8] sm:$0xff] }
 0x205   :  { %v1666_v57 = vld [vmem:[#allocation2 + $0x4b8] sm:$0xff]  ;;  %v1663_v58 = vld [vmem:[#allocation2 + $0x4a0] sm:$0xff] }
 0x206   :  { %1784 = vmatpush1.bf16.msra.mxu0 %v1691_v59  ;;  %1825 = vmatpush1.bf16.msra.mxu1 %v1693_v60  ;;  %v1665_v59 = vld [vmem:[#allocation2 + $0x4b0] sm:$0xff]  ;;  %v1672_v60 = vld [vmem:[#allocation2 + $0x4e8] sm:$0xff] }
 0x207   :  { %1785 = vmatprep.subr.bf16.mxu0 %v1700_v62  ;;  %1826 = vmatprep.subr.bf16.mxu1 %v1702_v2  ;;  %v1674_v62 = vld [vmem:[#allocation2 + $0x4f8] sm:$0xff]  ;;  %v1671_v2 = vld [vmem:[#allocation2 + $0x4e0] sm:$0xff] }
 0x20a   :  { %1786 = vmatpush1.bf16.msra.mxu0 %v1699_v4  ;;  %1827 = vmatpush1.bf16.msra.mxu1 %v1701_v5  ;;  %v1673_v4 = vld [vmem:[#allocation2 + $0x4f0] sm:$0xff]  ;;  %v1680_v5 = vld [vmem:[#allocation2 + $0x528] sm:$0xff] }
 0x20b   :  { %1787 = vmatprep.subr.bf16.mxu0 %v1708_v6  ;;  %1828 = vmatprep.subr.bf16.mxu1 %v1710_v7  ;;  %v1682_v6 = vld [vmem:[#allocation2 + $0x538] sm:$0xff]  ;;  %v1681_v7 = vld [vmem:[#allocation2 + $0x530] sm:$0xff] }
 0x20e   :  { %1788 = vmatpush1.bf16.msra.mxu0 %v1707_v10  ;;  %1829 = vmatpush1.bf16.msra.mxu1 %v1709_v11  ;;  %v1688_v10 = vld [vmem:[#allocation2 + $0x568] sm:$0xff]  ;;  %v1690_v11 = vld [vmem:[#allocation2 + $0x578] sm:$0xff] }
 0x20f   :  { %1789 = vmatprep.subr.bf16.mxu0 %v1716_v12  ;;  %1830 = vmatprep.subr.bf16.mxu1 %v1718_v14  ;;  %v1687_v12 = vld [vmem:[#allocation2 + $0x560] sm:$0xff]  ;;  %v1689_v14 = vld [vmem:[#allocation2 + $0x570] sm:$0xff] }
 0x212   :  { %1790 = vmatpush1.bf16.msra.mxu0 %v1715_v15  ;;  %1831 = vmatpush1.bf16.msra.mxu1 %v1717_v16  ;;  %v1696_v15 = vld [vmem:[#allocation2 + $0x5a8] sm:$0xff]  ;;  %v1698_v16 = vld [vmem:[#allocation2 + $0x5b8] sm:$0xff] }
 0x213   :  { %1791 = vmatprep.subr.bf16.mxu0 %v1724_v17  ;;  %1832 = vmatprep.subr.bf16.mxu1 %v1726_v18  ;;  %v1695_v17 = vld [vmem:[#allocation2 + $0x5a0] sm:$0xff]  ;;  %v1697_v18 = vld [vmem:[#allocation2 + $0x5b0] sm:$0xff] }
 0x216   :  { %1792 = vmatpush1.bf16.msra.mxu0 %v1723_v19  ;;  %1833 = vmatpush1.bf16.msra.mxu1 %v1725_v20  ;;  %v1704_v19 = vld [vmem:[#allocation2 + $0x5e8] sm:$0xff]  ;;  %v1706_v20 = vld [vmem:[#allocation2 + $0x5f8] sm:$0xff] }
 0x217   :  { %1793 = vmatprep.subr.bf16.mxu0 %v1732_v55  ;;  %1834 = vmatprep.subr.bf16.mxu1 %v1734_v21  ;;  %v1703_v55 = vld [vmem:[#allocation2 + $0x5e0] sm:$0xff]  ;;  %v1705_v21 = vld [vmem:[#allocation2 + $0x5f0] sm:$0xff] }
 0x21a   :  { %1794 = vmatpush1.bf16.msra.mxu0 %v1731_v22  ;;  %1835 = vmatpush1.bf16.msra.mxu1 %v1733_v23  ;;  %v1712_v22 = vld [vmem:[#allocation2 + $0x628] sm:$0xff]  ;;  %v1714_v23 = vld [vmem:[#allocation2 + $0x638] sm:$0xff] }
 0x21b   :  { %1795 = vmatprep.subr.bf16.mxu0 %v1740_v25  ;;  %1836 = vmatprep.subr.bf16.mxu1 %v1742_v26  ;;  %v1711_v25 = vld [vmem:[#allocation2 + $0x620] sm:$0xff]  ;;  %v1713_v26 = vld [vmem:[#allocation2 + $0x630] sm:$0xff] }
 0x21e   :  { %1796 = vmatpush1.bf16.msra.mxu0 %v1739_v27  ;;  %1837 = vmatpush1.bf16.msra.mxu1 %v1741_v28  ;;  %v1720_v27 = vld [vmem:[#allocation2 + $0x668] sm:$0xff]  ;;  %v1722_v28 = vld [vmem:[#allocation2 + $0x678] sm:$0xff] }
 0x21f   :  { %1797 = vmatprep.subr.bf16.mxu0 %v1748_v29  ;;  %1838 = vmatprep.subr.bf16.mxu1 %v1750_v30  ;;  %v1719_v29 = vld [vmem:[#allocation2 + $0x660] sm:$0xff]  ;;  %v1721_v30 = vld [vmem:[#allocation2 + $0x670] sm:$0xff] }
 0x222   :  { %1798 = vmatpush1.bf16.msra.mxu0 %v1747_v31  ;;  %1839 = vmatpush1.bf16.msra.mxu1 %v1749_v32  ;;  %v1728_v31 = vld [vmem:[#allocation2 + $0x6a8] sm:$0xff]  ;;  %v1730_v32 = vld [vmem:[#allocation2 + $0x6b8] sm:$0xff] }
 0x223   :  { %1799 = vmatprep.subr.bf16.mxu0 %v1756_v33  ;;  %1840 = vmatprep.subr.bf16.mxu1 %v1758_v36  ;;  %v1727_v33 = vld [vmem:[#allocation2 + $0x6a0] sm:$0xff]  ;;  %v1729_v36 = vld [vmem:[#allocation2 + $0x6b0] sm:$0xff] }
 0x226   :  { %1800 = vmatpush1.bf16.msra.mxu0 %v1755_v37  ;;  %1841 = vmatpush1.bf16.msra.mxu1 %v1757_v38  ;;  %v1736_v37 = vld [vmem:[#allocation2 + $0x6e8] sm:$0xff]  ;;  %v1738_v38 = vld [vmem:[#allocation2 + $0x6f8] sm:$0xff] }
 0x227   :  { %1801 = vmatprep.subr.bf16.mxu0 %v1764_v39  ;;  %1842 = vmatprep.subr.bf16.mxu1 %v1766_v40  ;;  %v1735_v39 = vld [vmem:[#allocation2 + $0x6e0] sm:$0xff]  ;;  %v1737_v40 = vld [vmem:[#allocation2 + $0x6f0] sm:$0xff] }
 0x22a   :  { %1802 = vmatpush1.bf16.msra.mxu0 %v1763_v41  ;;  %1843 = vmatpush1.bf16.msra.mxu1 %v1765_v42  ;;  %v1744_v41 = vld [vmem:[#allocation2 + $0x728] sm:$0xff]  ;;  %v1746_v42 = vld [vmem:[#allocation2 + $0x738] sm:$0xff] }
 0x22b   :  { %1853 = vmatprep.subr.bf16.mxu0 %v1648_v43  ;;  %1894 = vmatprep.subr.bf16.mxu1 %v1650_v44  ;;  %v1743_v43 = vld [vmem:[#allocation2 + $0x720] sm:$0xff]  ;;  %v1745_v44 = vld [vmem:[#allocation2 + $0x730] sm:$0xff] }
 0x22d   :  { %1804 = vmatmul.mubr.bf16.vlgmr.msra.gmra.mrb[20].mxu0 %v3369_v46  ;;  %1845 = vmatmul.mubr.bf16.vlgmr.msra.gmra.mrb[12].mxu1 %v3369_v46 }
 0x22e   :  { %1854 = vmatpush1.bf16.msra.mxu0 %v1647_v47  ;;  %1895 = vmatpush1.bf16.msra.mxu1 %v1649_v48  ;;  %v1752_v47 = vld [vmem:[#allocation2 + $0x768] sm:$0xff]  ;;  %v1754_v48 = vld [vmem:[#allocation2 + $0x778] sm:$0xff] }
 0x22f   :  { %1855 = vmatprep.subr.bf16.mxu0 %v1656_v49  ;;  %1896 = vmatprep.subr.bf16.mxu1 %v1658_v50  ;;  %v1751_v49 = vld [vmem:[#allocation2 + $0x760] sm:$0xff]  ;;  %v1753_v50 = vld [vmem:[#allocation2 + $0x770] sm:$0xff] }
 0x230   :  { %1885 = vmatprep.mubr.bf16.mxu0 %v3363_v3  ;;  %1926 = vmatprep.mubr.bf16.mxu1 %v3363_v3  ;;  %v1679_v3 = vld [vmem:[#allocation2 + $0x520] sm:$0xff] }
 0x232   :  { %1856 = vmatpush1.bf16.msra.mxu0 %v1655_v51  ;;  %1897 = vmatpush1.bf16.msra.mxu1 %v1657_v52  ;;  %v1760_v51 = vld [vmem:[#allocation2 + $0x7a8] sm:$0xff]  ;;  %v1762_v52 = vld [vmem:[#allocation2 + $0x7b8] sm:$0xff] }
 0x233   :  { %1857 = vmatprep.subr.bf16.mxu0 %v1664_v56  ;;  %1898 = vmatprep.subr.bf16.mxu1 %v1666_v57  ;;  %v1759_v56 = vld [vmem:[#allocation2 + $0x7a0] sm:$0xff]  ;;  %v1761_v57 = vld [vmem:[#allocation2 + $0x7b0] sm:$0xff] }
 0x236   :  { %1858 = vmatpush1.bf16.msra.mxu0 %v1663_v58  ;;  %1899 = vmatpush1.bf16.msra.mxu1 %v1665_v59  ;;  %v1768_v58 = vld [vmem:[#allocation2 + $0x7e8] sm:$0xff]  ;;  %v1770_v59 = vld [vmem:[#allocation2 + $0x7f8] sm:$0xff] }
 0x237   :  { %1859 = vmatprep.subr.bf16.mxu0 %v1672_v60  ;;  %1900 = vmatprep.subr.bf16.mxu1 %v1674_v62  ;;  %v1767_v60 = vld [vmem:[#allocation2 + $0x7e0] sm:$0xff]  ;;  %v1769_v62 = vld [vmem:[#allocation2 + $0x7f0] sm:$0xff] }
 0x23a   :  { %1860 = vmatpush1.bf16.msra.mxu0 %v1671_v2  ;;  %1901 = vmatpush1.bf16.msra.mxu1 %v1673_v4  ;;  %v1501_v2 = vld [vmem:[#allocation2 + $0x8] sm:$0xff]  ;;  %v1503_v4 = vld [vmem:[#allocation2 + $0x18] sm:$0xff] }
 0x23b   :  { %1861 = vmatprep.subr.bf16.mxu0 %v1680_v5  ;;  %1902 = vmatprep.subr.bf16.mxu1 %v1682_v6  ;;  %v1500_v5 = vld [vmem:[#allocation2] sm:$0xff]  ;;  %v1502_v6 = vld [vmem:[#allocation2 + $0x10] sm:$0xff] }
 0x23e   :  { %1862 = vmatpush1.bf16.msra.mxu0 %v1679_v3  ;;  %1903 = vmatpush1.bf16.msra.mxu1 %v1681_v7  ;;  %v1509_v3 = vld [vmem:[#allocation2 + $0x48] sm:$0xff]  ;;  %v1511_v7 = vld [vmem:[#allocation2 + $0x58] sm:$0xff] }
 0x23f   :  { %1863 = vmatprep.subr.bf16.mxu0 %v1688_v10  ;;  %1904 = vmatprep.subr.bf16.mxu1 %v1690_v11  ;;  %v3377_v10 = vpack.c.bf16 %v3354_v24, %v3354_v24  ;;  %v1508_v11 = vld [vmem:[#allocation2 + $0x40] sm:$0xff] }
 0x242   :  { %1864 = vmatpush1.bf16.msra.mxu0 %v1687_v12  ;;  %1905 = vmatpush1.bf16.msra.mxu1 %v1689_v14  ;;  %v1510_v12 = vld [vmem:[#allocation2 + $0x50] sm:$0xff]  ;;  %v1517_v14 = vld [vmem:[#allocation2 + $0x88] sm:$0xff] }
 0x243   :  { %1865 = vmatprep.subr.bf16.mxu0 %v1696_v15  ;;  %1906 = vmatprep.subr.bf16.mxu1 %v1698_v16  ;;  %v1519_v15 = vld [vmem:[#allocation2 + $0x98] sm:$0xff]  ;;  %v1516_v16 = vld [vmem:[#allocation2 + $0x80] sm:$0xff] }
 0x246   :  { %1866 = vmatpush1.bf16.msra.mxu0 %v1695_v17  ;;  %1907 = vmatpush1.bf16.msra.mxu1 %v1697_v18  ;;  %v1518_v17 = vld [vmem:[#allocation2 + $0x90] sm:$0xff]  ;;  %v1525_v18 = vld [vmem:[#allocation2 + $0xc8] sm:$0xff] }
 0x247   :  { %1867 = vmatprep.subr.bf16.mxu0 %v1704_v19  ;;  %1908 = vmatprep.subr.bf16.mxu1 %v1706_v20  ;;  %v1524_v19 = vld [vmem:[#allocation2 + $0xc0] sm:$0xff]  ;;  %v1526_v20 = vld [vmem:[#allocation2 + $0xd0] sm:$0xff] }
 0x24a   :  { %1868 = vmatpush1.bf16.msra.mxu0 %v1703_v55  ;;  %1909 = vmatpush1.bf16.msra.mxu1 %v1705_v21  ;;  %v1533_v55 = vld [vmem:[#allocation2 + $0x108] sm:$0xff]  ;;  %v1535_v21 = vld [vmem:[#allocation2 + $0x118] sm:$0xff] }
 0x24b   :  { %1869 = vmatprep.subr.bf16.mxu0 %v1712_v22  ;;  %1910 = vmatprep.subr.bf16.mxu1 %v1714_v23  ;;  %v1532_v22 = vld [vmem:[#allocation2 + $0x100] sm:$0xff]  ;;  %v1534_v23 = vld [vmem:[#allocation2 + $0x110] sm:$0xff] }
 0x24e   :  { %1870 = vmatpush1.bf16.msra.mxu0 %v1711_v25  ;;  %1911 = vmatpush1.bf16.msra.mxu1 %v1713_v26  ;;  %v1541_v25 = vld [vmem:[#allocation2 + $0x148] sm:$0xff]  ;;  %v1543_v26 = vld [vmem:[#allocation2 + $0x158] sm:$0xff] }
 0x24f   :  { %1871 = vmatprep.subr.bf16.mxu0 %v1720_v27  ;;  %1912 = vmatprep.subr.bf16.mxu1 %v1722_v28  ;;  %v1540_v27 = vld [vmem:[#allocation2 + $0x140] sm:$0xff]  ;;  %v1542_v28 = vld [vmem:[#allocation2 + $0x150] sm:$0xff] }
 0x252   :  { %1872 = vmatpush1.bf16.msra.mxu0 %v1719_v29  ;;  %1913 = vmatpush1.bf16.msra.mxu1 %v1721_v30  ;;  %v1549_v29 = vld [vmem:[#allocation2 + $0x188] sm:$0xff]  ;;  %v1551_v30 = vld [vmem:[#allocation2 + $0x198] sm:$0xff] }
 0x253   :  { %1873 = vmatprep.subr.bf16.mxu0 %v1728_v31  ;;  %1914 = vmatprep.subr.bf16.mxu1 %v1730_v32  ;;  %v1548_v31 = vld [vmem:[#allocation2 + $0x180] sm:$0xff]  ;;  %v1550_v32 = vld [vmem:[#allocation2 + $0x190] sm:$0xff] }
 0x256   :  { %1874 = vmatpush1.bf16.msra.mxu0 %v1727_v33  ;;  %1915 = vmatpush1.bf16.msra.mxu1 %v1729_v36  ;;  %v1557_v33 = vld [vmem:[#allocation2 + $0x1c8] sm:$0xff]  ;;  %v1559_v36 = vld [vmem:[#allocation2 + $0x1d8] sm:$0xff] }
 0x257   :  { %1875 = vmatprep.subr.bf16.mxu0 %v1736_v37  ;;  %1916 = vmatprep.subr.bf16.mxu1 %v1738_v38  ;;  %v1556_v37 = vld [vmem:[#allocation2 + $0x1c0] sm:$0xff]  ;;  %v1558_v38 = vld [vmem:[#allocation2 + $0x1d0] sm:$0xff] }
 0x25a   :  { %1876 = vmatpush1.bf16.msra.mxu0 %v1735_v39  ;;  %1917 = vmatpush1.bf16.msra.mxu1 %v1737_v40  ;;  %v1565_v39 = vld [vmem:[#allocation2 + $0x208] sm:$0xff]  ;;  %v1567_v40 = vld [vmem:[#allocation2 + $0x218] sm:$0xff] }
 0x25b   :  { %1877 = vmatprep.subr.bf16.mxu0 %v1744_v41  ;;  %1918 = vmatprep.subr.bf16.mxu1 %v1746_v42  ;;  %v1564_v41 = vld [vmem:[#allocation2 + $0x200] sm:$0xff]  ;;  %v1566_v42 = vld [vmem:[#allocation2 + $0x210] sm:$0xff] }
 0x25e   :  { %1878 = vmatpush1.bf16.msra.mxu0 %v1743_v43  ;;  %1919 = vmatpush1.bf16.msra.mxu1 %v1745_v44  ;;  %v1573_v43 = vld [vmem:[#allocation2 + $0x248] sm:$0xff]  ;;  %v1575_v44 = vld [vmem:[#allocation2 + $0x258] sm:$0xff] }
 0x25f   :  { %1879 = vmatprep.subr.bf16.mxu0 %v1752_v47  ;;  %1920 = vmatprep.subr.bf16.mxu1 %v1754_v48  ;;  %v1572_v47 = vld [vmem:[#allocation2 + $0x240] sm:$0xff]  ;;  %v1574_v48 = vld [vmem:[#allocation2 + $0x250] sm:$0xff] }
 0x262   :  { %1880 = vmatpush1.bf16.msra.mxu0 %v1751_v49  ;;  %1921 = vmatpush1.bf16.msra.mxu1 %v1753_v50  ;;  %v1581_v49 = vld [vmem:[#allocation2 + $0x288] sm:$0xff]  ;;  %v1583_v50 = vld [vmem:[#allocation2 + $0x298] sm:$0xff] }
 0x263   :  { %1881 = vmatprep.subr.bf16.mxu0 %v1760_v51  ;;  %1922 = vmatprep.subr.bf16.mxu1 %v1762_v52  ;;  %v1580_v51 = vld [vmem:[#allocation2 + $0x280] sm:$0xff]  ;;  %v1582_v52 = vld [vmem:[#allocation2 + $0x290] sm:$0xff] }
 0x266   :  { %1882 = vmatpush1.bf16.msra.mxu0 %v1759_v56  ;;  %1923 = vmatpush1.bf16.msra.mxu1 %v1761_v57  ;;  %v1589_v56 = vld [vmem:[#allocation2 + $0x2c8] sm:$0xff]  ;;  %v1591_v57 = vld [vmem:[#allocation2 + $0x2d8] sm:$0xff] }
 0x267   :  { %1883 = vmatprep.subr.bf16.mxu0 %v1768_v58  ;;  %1924 = vmatprep.subr.bf16.mxu1 %v1770_v59  ;;  %v1588_v58 = vld [vmem:[#allocation2 + $0x2c0] sm:$0xff]  ;;  %v1590_v59 = vld [vmem:[#allocation2 + $0x2d0] sm:$0xff] }
 0x26a   :  { %1884 = vmatpush1.bf16.msra.mxu0 %v1767_v60  ;;  %1925 = vmatpush1.bf16.msra.mxu1 %v1769_v62  ;;  %v1597_v60 = vld [vmem:[#allocation2 + $0x308] sm:$0xff]  ;;  %v1599_v62 = vld [vmem:[#allocation2 + $0x318] sm:$0xff] }
 0x26b   :  { %1935 = vmatprep.subr.bf16.mxu0 %v1501_v2  ;;  %1976 = vmatprep.subr.bf16.mxu1 %v1503_v4  ;;  %v1596_v2 = vld [vmem:[#allocation2 + $0x300] sm:$0xff]  ;;  %v1598_v4 = vld [vmem:[#allocation2 + $0x310] sm:$0xff] }
 0x26d   :  { %1886 = vmatmul.mubr.bf16.vlgmr.msra.gmra.mrb[24].mxu0 %v3369_v46  ;;  %1927 = vmatmul.mubr.bf16.vlgmr.msra.gmra.mrb[16].mxu1 %v3369_v46  ;;  %v1527_v46 = vld [vmem:[#allocation2 + $0xd8] sm:$0xff] }
 0x26e   :  { %1936 = vmatpush1.bf16.msra.mxu0 %v1500_v5  ;;  %1977 = vmatpush1.bf16.msra.mxu1 %v1502_v6  ;;  %v1605_v5 = vld [vmem:[#allocation2 + $0x348] sm:$0xff]  ;;  %v1607_v6 = vld [vmem:[#allocation2 + $0x358] sm:$0xff] }
 0x26f   :  { %1937 = vmatprep.subr.bf16.mxu0 %v1509_v3  ;;  %1978 = vmatprep.subr.bf16.mxu1 %v1511_v7  ;;  %v1604_v3 = vld [vmem:[#allocation2 + $0x340] sm:$0xff]  ;;  %v1606_v7 = vld [vmem:[#allocation2 + $0x350] sm:$0xff] }
 0x270   :  { %1967 = vmatprep.mubr.bf16.mxu0 %v3377_v10  ;;  %2008 = vmatprep.mubr.bf16.mxu1 %v3377_v10 }
 0x272   :  { %1938 = vmatpush1.bf16.msra.mxu0 %v1508_v11  ;;  %1979 = vmatpush1.bf16.msra.mxu1 %v1510_v12  ;;  %v1613_v11 = vld [vmem:[#allocation2 + $0x388] sm:$0xff]  ;;  %v1615_v12 = vld [vmem:[#allocation2 + $0x398] sm:$0xff] }
 0x273   :  { %1939 = vmatprep.subr.bf16.mxu0 %v1517_v14  ;;  %1980 = vmatprep.subr.bf16.mxu1 %v1519_v15  ;;  %v1612_v14 = vld [vmem:[#allocation2 + $0x380] sm:$0xff]  ;;  %v1614_v15 = vld [vmem:[#allocation2 + $0x390] sm:$0xff] }
 0x276   :  { %1940 = vmatpush1.bf16.msra.mxu0 %v1516_v16  ;;  %1981 = vmatpush1.bf16.msra.mxu1 %v1518_v17  ;;  %v1621_v16 = vld [vmem:[#allocation2 + $0x3c8] sm:$0xff]  ;;  %v1623_v17 = vld [vmem:[#allocation2 + $0x3d8] sm:$0xff] }
 0x277   :  { %1941 = vmatprep.subr.bf16.mxu0 %v1525_v18  ;;  %1982 = vmatprep.subr.bf16.mxu1 %v1527_v46  ;;  %v1620_v18 = vld [vmem:[#allocation2 + $0x3c0] sm:$0xff]  ;;  %v1622_v46 = vld [vmem:[#allocation2 + $0x3d0] sm:$0xff] }
 0x27a   :  { %1942 = vmatpush1.bf16.msra.mxu0 %v1524_v19  ;;  %1983 = vmatpush1.bf16.msra.mxu1 %v1526_v20  ;;  %v1505_v19 = vld [vmem:[#allocation2 + $0x28] sm:$0xff]  ;;  %v1507_v20 = vld [vmem:[#allocation2 + $0x38] sm:$0xff] }
 0x27b   :  { %1943 = vmatprep.subr.bf16.mxu0 %v1533_v55  ;;  %1984 = vmatprep.subr.bf16.mxu1 %v1535_v21  ;;  %v3385_v55 = vpack.c.bf16 %v3352_v53, %v3352_v53  ;;  %v1504_v21 = vld [vmem:[#allocation2 + $0x20] sm:$0xff] }
 0x27e   :  { %1944 = vmatpush1.bf16.msra.mxu0 %v1532_v22  ;;  %1985 = vmatpush1.bf16.msra.mxu1 %v1534_v23  ;;  %v1506_v22 = vld [vmem:[#allocation2 + $0x30] sm:$0xff]  ;;  %v1513_v23 = vld [vmem:[#allocation2 + $0x68] sm:$0xff] }
 0x27f   :  { %1945 = vmatprep.subr.bf16.mxu0 %v1541_v25  ;;  %1986 = vmatprep.subr.bf16.mxu1 %v1543_v26  ;;  %v1515_v25 = vld [vmem:[#allocation2 + $0x78] sm:$0xff]  ;;  %v1512_v26 = vld [vmem:[#allocation2 + $0x60] sm:$0xff] }
 0x282   :  { %1946 = vmatpush1.bf16.msra.mxu0 %v1540_v27  ;;  %1987 = vmatpush1.bf16.msra.mxu1 %v1542_v28  ;;  %v1514_v27 = vld [vmem:[#allocation2 + $0x70] sm:$0xff]  ;;  %v1521_v28 = vld [vmem:[#allocation2 + $0xa8] sm:$0xff] }
 0x283   :  { %1947 = vmatprep.subr.bf16.mxu0 %v1549_v29  ;;  %1988 = vmatprep.subr.bf16.mxu1 %v1551_v30  ;;  %v1523_v29 = vld [vmem:[#allocation2 + $0xb8] sm:$0xff]  ;;  %v1520_v30 = vld [vmem:[#allocation2 + $0xa0] sm:$0xff] }
 0x286   :  { %1948 = vmatpush1.bf16.msra.mxu0 %v1548_v31  ;;  %1989 = vmatpush1.bf16.msra.mxu1 %v1550_v32  ;;  %v1522_v31 = vld [vmem:[#allocation2 + $0xb0] sm:$0xff]  ;;  %v1529_v32 = vld [vmem:[#allocation2 + $0xe8] sm:$0xff] }
 0x287   :  { %1949 = vmatprep.subr.bf16.mxu0 %v1557_v33  ;;  %1990 = vmatprep.subr.bf16.mxu1 %v1559_v36  ;;  %v1531_v33 = vld [vmem:[#allocation2 + $0xf8] sm:$0xff]  ;;  %v1528_v36 = vld [vmem:[#allocation2 + $0xe0] sm:$0xff] }
 0x28a   :  { %1950 = vmatpush1.bf16.msra.mxu0 %v1556_v37  ;;  %1991 = vmatpush1.bf16.msra.mxu1 %v1558_v38  ;;  %v1530_v37 = vld [vmem:[#allocation2 + $0xf0] sm:$0xff]  ;;  %v1537_v38 = vld [vmem:[#allocation2 + $0x128] sm:$0xff] }
 0x28b   :  { %1951 = vmatprep.subr.bf16.mxu0 %v1565_v39  ;;  %1992 = vmatprep.subr.bf16.mxu1 %v1567_v40  ;;  %v1539_v39 = vld [vmem:[#allocation2 + $0x138] sm:$0xff]  ;;  %v1538_v40 = vld [vmem:[#allocation2 + $0x130] sm:$0xff] }
 0x28e   :  { %1952 = vmatpush1.bf16.msra.mxu0 %v1564_v41  ;;  %1993 = vmatpush1.bf16.msra.mxu1 %v1566_v42  ;;  %v1545_v41 = vld [vmem:[#allocation2 + $0x168] sm:$0xff]  ;;  %v1547_v42 = vld [vmem:[#allocation2 + $0x178] sm:$0xff] }
 0x28f   :  { %1953 = vmatprep.subr.bf16.mxu0 %v1573_v43  ;;  %1994 = vmatprep.subr.bf16.mxu1 %v1575_v44  ;;  %v1544_v43 = vld [vmem:[#allocation2 + $0x160] sm:$0xff]  ;;  %v1546_v44 = vld [vmem:[#allocation2 + $0x170] sm:$0xff] }
 0x292   :  { %1954 = vmatpush1.bf16.msra.mxu0 %v1572_v47  ;;  %1995 = vmatpush1.bf16.msra.mxu1 %v1574_v48  ;;  %v1553_v47 = vld [vmem:[#allocation2 + $0x1a8] sm:$0xff]  ;;  %v1555_v48 = vld [vmem:[#allocation2 + $0x1b8] sm:$0xff] }
 0x293   :  { %1955 = vmatprep.subr.bf16.mxu0 %v1581_v49  ;;  %1996 = vmatprep.subr.bf16.mxu1 %v1583_v50  ;;  %v1552_v49 = vld [vmem:[#allocation2 + $0x1a0] sm:$0xff]  ;;  %v1554_v50 = vld [vmem:[#allocation2 + $0x1b0] sm:$0xff] }
 0x296   :  { %1956 = vmatpush1.bf16.msra.mxu0 %v1580_v51  ;;  %1997 = vmatpush1.bf16.msra.mxu1 %v1582_v52  ;;  %v1561_v51 = vld [vmem:[#allocation2 + $0x1e8] sm:$0xff]  ;;  %v1563_v52 = vld [vmem:[#allocation2 + $0x1f8] sm:$0xff] }
 0x297   :  { %1957 = vmatprep.subr.bf16.mxu0 %v1589_v56  ;;  %1998 = vmatprep.subr.bf16.mxu1 %v1591_v57  ;;  %v1560_v56 = vld [vmem:[#allocation2 + $0x1e0] sm:$0xff]  ;;  %v1562_v57 = vld [vmem:[#allocation2 + $0x1f0] sm:$0xff] }
 0x29a   :  { %1958 = vmatpush1.bf16.msra.mxu0 %v1588_v58  ;;  %1999 = vmatpush1.bf16.msra.mxu1 %v1590_v59  ;;  %v1569_v58 = vld [vmem:[#allocation2 + $0x228] sm:$0xff]  ;;  %v1571_v59 = vld [vmem:[#allocation2 + $0x238] sm:$0xff] }
 0x29b   :  { %1959 = vmatprep.subr.bf16.mxu0 %v1597_v60  ;;  %2000 = vmatprep.subr.bf16.mxu1 %v1599_v62  ;;  %v1568_v60 = vld [vmem:[#allocation2 + $0x220] sm:$0xff]  ;;  %v1570_v62 = vld [vmem:[#allocation2 + $0x230] sm:$0xff] }
 0x29e   :  { %1960 = vmatpush1.bf16.msra.mxu0 %v1596_v2  ;;  %2001 = vmatpush1.bf16.msra.mxu1 %v1598_v4  ;;  %v1577_v2 = vld [vmem:[#allocation2 + $0x268] sm:$0xff]  ;;  %v1579_v4 = vld [vmem:[#allocation2 + $0x278] sm:$0xff] }
 0x29f   :  { %1961 = vmatprep.subr.bf16.mxu0 %v1605_v5  ;;  %2002 = vmatprep.subr.bf16.mxu1 %v1607_v6  ;;  %v1576_v5 = vld [vmem:[#allocation2 + $0x260] sm:$0xff]  ;;  %v1578_v6 = vld [vmem:[#allocation2 + $0x270] sm:$0xff] }
 0x2a2   :  { %1962 = vmatpush1.bf16.msra.mxu0 %v1604_v3  ;;  %2003 = vmatpush1.bf16.msra.mxu1 %v1606_v7  ;;  %v1585_v3 = vld [vmem:[#allocation2 + $0x2a8] sm:$0xff]  ;;  %v1587_v7 = vld [vmem:[#allocation2 + $0x2b8] sm:$0xff] }
 0x2a3   :  { %1963 = vmatprep.subr.bf16.mxu0 %v1613_v11  ;;  %2004 = vmatprep.subr.bf16.mxu1 %v1615_v12  ;;  %v1584_v11 = vld [vmem:[#allocation2 + $0x2a0] sm:$0xff]  ;;  %v1586_v12 = vld [vmem:[#allocation2 + $0x2b0] sm:$0xff] }
 0x2a6   :  { %1964 = vmatpush1.bf16.msra.mxu0 %v1612_v14  ;;  %2005 = vmatpush1.bf16.msra.mxu1 %v1614_v15  ;;  %v1593_v14 = vld [vmem:[#allocation2 + $0x2e8] sm:$0xff]  ;;  %v1595_v15 = vld [vmem:[#allocation2 + $0x2f8] sm:$0xff] }
 0x2a7   :  { %1965 = vmatprep.subr.bf16.mxu0 %v1621_v16  ;;  %2006 = vmatprep.subr.bf16.mxu1 %v1623_v17  ;;  %v1592_v16 = vld [vmem:[#allocation2 + $0x2e0] sm:$0xff]  ;;  %v1594_v17 = vld [vmem:[#allocation2 + $0x2f0] sm:$0xff] }
 0x2aa   :  { %1966 = vmatpush1.bf16.msra.mxu0 %v1620_v18  ;;  %2007 = vmatpush1.bf16.msra.mxu1 %v1622_v46  ;;  %v1601_v18 = vld [vmem:[#allocation2 + $0x328] sm:$0xff]  ;;  %v1603_v46 = vld [vmem:[#allocation2 + $0x338] sm:$0xff] }
 0x2ab   :  { %2017 = vmatprep.subr.bf16.mxu0 %v1505_v19  ;;  %2058 = vmatprep.subr.bf16.mxu1 %v1507_v20  ;;  %v1600_v19 = vld [vmem:[#allocation2 + $0x320] sm:$0xff]  ;;  %v1602_v20 = vld [vmem:[#allocation2 + $0x330] sm:$0xff] }
 0x2ad   :  { %1968 = vmatmul.mubr.bf16.vlgmr.msra.gmra.mrb[28].mxu0 %v3385_v55  ;;  %2009 = vmatmul.mubr.bf16.vlgmr.msra.gmra.mrb[20].mxu1 %v3385_v55 }
 0x2ae   :  { %2018 = vmatpush1.bf16.msra.mxu0 %v1504_v21  ;;  %2059 = vmatpush1.bf16.msra.mxu1 %v1506_v22  ;;  %v1609_v21 = vld [vmem:[#allocation2 + $0x368] sm:$0xff]  ;;  %v1611_v22 = vld [vmem:[#allocation2 + $0x378] sm:$0xff] }
 0x2af   :  { %2019 = vmatprep.subr.bf16.mxu0 %v1513_v23  ;;  %2060 = vmatprep.subr.bf16.mxu1 %v1515_v25  ;;  %v1608_v23 = vld [vmem:[#allocation2 + $0x360] sm:$0xff]  ;;  %v1610_v25 = vld [vmem:[#allocation2 + $0x370] sm:$0xff] }
 0x2b0   :  { %2049 = vmatprep.mubr.bf16.mxu0 %v3377_v10  ;;  %2090 = vmatprep.mubr.bf16.mxu1 %v3377_v10  ;;  %v1536_v10 = vld [vmem:[#allocation2 + $0x120] sm:$0xff] }
 0x2b2   :  { %2020 = vmatpush1.bf16.msra.mxu0 %v1512_v26  ;;  %2061 = vmatpush1.bf16.msra.mxu1 %v1514_v27  ;;  %v1617_v26 = vld [vmem:[#allocation2 + $0x3a8] sm:$0xff]  ;;  %v1619_v27 = vld [vmem:[#allocation2 + $0x3b8] sm:$0xff] }
 0x2b3   :  { %2021 = vmatprep.subr.bf16.mxu0 %v1521_v28  ;;  %2062 = vmatprep.subr.bf16.mxu1 %v1523_v29  ;;  %v1616_v28 = vld [vmem:[#allocation2 + $0x3a0] sm:$0xff]  ;;  %v1618_v29 = vld [vmem:[#allocation2 + $0x3b0] sm:$0xff] }
 0x2b6   :  { %2022 = vmatpush1.bf16.msra.mxu0 %v1520_v30  ;;  %2063 = vmatpush1.bf16.msra.mxu1 %v1522_v31  ;;  %v1625_v30 = vld [vmem:[#allocation2 + $0x3e8] sm:$0xff]  ;;  %v1627_v31 = vld [vmem:[#allocation2 + $0x3f8] sm:$0xff] }
 0x2b7   :  { %2023 = vmatprep.subr.bf16.mxu0 %v1529_v32  ;;  %2064 = vmatprep.subr.bf16.mxu1 %v1531_v33  ;;  %v1624_v32 = vld [vmem:[#allocation2 + $0x3e0] sm:$0xff]  ;;  %v1626_v33 = vld [vmem:[#allocation2 + $0x3f0] sm:$0xff] }
 0x2ba   :  { %2024 = vmatpush1.bf16.msra.mxu0 %v1528_v36  ;;  %2065 = vmatpush1.bf16.msra.mxu1 %v1530_v37 }
 0x2bb   :  { %2025 = vmatprep.subr.bf16.mxu0 %v1537_v38  ;;  %2066 = vmatprep.subr.bf16.mxu1 %v1539_v39 }
 0x2be   :  { %2026 = vmatpush1.bf16.msra.mxu0 %v1536_v10  ;;  %2067 = vmatpush1.bf16.msra.mxu1 %v1538_v40 }
 0x2bf   :  { %2027 = vmatprep.subr.bf16.mxu0 %v1545_v41  ;;  %2068 = vmatprep.subr.bf16.mxu1 %v1547_v42 }
 0x2c2   :  { %2028 = vmatpush1.bf16.msra.mxu0 %v1544_v43  ;;  %2069 = vmatpush1.bf16.msra.mxu1 %v1546_v44 }
 0x2c3   :  { %2029 = vmatprep.subr.bf16.mxu0 %v1553_v47  ;;  %2070 = vmatprep.subr.bf16.mxu1 %v1555_v48 }
 0x2c6   :  { %2030 = vmatpush1.bf16.msra.mxu0 %v1552_v49  ;;  %2071 = vmatpush1.bf16.msra.mxu1 %v1554_v50 }
 0x2c7   :  { %2031 = vmatprep.subr.bf16.mxu0 %v1561_v51  ;;  %2072 = vmatprep.subr.bf16.mxu1 %v1563_v52 }
 0x2ca   :  { %2032 = vmatpush1.bf16.msra.mxu0 %v1560_v56  ;;  %2073 = vmatpush1.bf16.msra.mxu1 %v1562_v57 }
 0x2cb   :  { %2033 = vmatprep.subr.bf16.mxu0 %v1569_v58  ;;  %2074 = vmatprep.subr.bf16.mxu1 %v1571_v59 }
 0x2ce   :  { %2034 = vmatpush1.bf16.msra.mxu0 %v1568_v60  ;;  %2075 = vmatpush1.bf16.msra.mxu1 %v1570_v62 }
 0x2cf   :  { %2035 = vmatprep.subr.bf16.mxu0 %v1577_v2  ;;  %2076 = vmatprep.subr.bf16.mxu1 %v1579_v4 }
 0x2d2   :  { %2036 = vmatpush1.bf16.msra.mxu0 %v1576_v5  ;;  %2077 = vmatpush1.bf16.msra.mxu1 %v1578_v6 }
 0x2d3   :  { %2037 = vmatprep.subr.bf16.mxu0 %v1585_v3  ;;  %2078 = vmatprep.subr.bf16.mxu1 %v1587_v7  ;;  %v2099_v7 = vld [vmem:[%s3496_s6] sm:$0xff] }
 0x2d6   :  { %2038 = vmatpush1.bf16.msra.mxu0 %v1584_v11  ;;  %2079 = vmatpush1.bf16.msra.mxu1 %v1586_v12  ;;  %v2104_v11 = vrot.slane %v2099_v7, %v3291_v54  ;;  %v2112_v12 = vrot.slane %v2099_v7, %v3326_v34 }
 0x2d7   :  { %2039 = vmatprep.subr.bf16.mxu0 %v1593_v14  ;;  %2080 = vmatprep.subr.bf16.mxu1 %v1595_v15  ;;  %v2108_v14 = vrot.slane %v2099_v7, %v3299_v13  ;;  %v2116_v15 = vrot.slane %v2099_v7, %v3329_v35 }
 0x2da   :  { %2040 = vmatpush1.bf16.msra.mxu0 %v1592_v16  ;;  %2081 = vmatpush1.bf16.msra.mxu1 %v1594_v17 }
 0x2db   :  { %2041 = vmatprep.subr.bf16.mxu0 %v1601_v18  ;;  %2082 = vmatprep.subr.bf16.mxu1 %v1603_v46 }
 0x2de   :  { %2042 = vmatpush1.bf16.msra.mxu0 %v1600_v19  ;;  %2083 = vmatpush1.bf16.msra.mxu1 %v1602_v20 }
 0x2df   :  { %2043 = vmatprep.subr.bf16.mxu0 %v1609_v21  ;;  %2084 = vmatprep.subr.bf16.mxu1 %v1611_v22 }
 0x2e2   :  { %2044 = vmatpush1.bf16.msra.mxu0 %v1608_v23  ;;  %2085 = vmatpush1.bf16.msra.mxu1 %v1610_v25 }
 0x2e3   :  { %2045 = vmatprep.subr.bf16.mxu0 %v1617_v26  ;;  %2086 = vmatprep.subr.bf16.mxu1 %v1619_v27 }
 0x2e6   :  { %2046 = vmatpush1.bf16.msra.mxu0 %v1616_v28  ;;  %2087 = vmatpush1.bf16.msra.mxu1 %v1618_v29 }
 0x2e7   :  { %2047 = vmatprep.subr.bf16.mxu0 %v1625_v30  ;;  %2088 = vmatprep.subr.bf16.mxu1 %v1627_v31  ;;  %v2120_v31 = vrot.slane %v2099_v7, %v1404_v8 }
 0x2ea   :  { %2048 = vmatpush1.bf16.msra.mxu0 %v1624_v32  ;;  %2089 = vmatpush1.bf16.msra.mxu1 %v1626_v33  ;;  %v2128_v32 = vrot.slane %v2099_v7, %v1412_v1 }
 0x2ed   :  { %2050 = vmatmul.mubr.bf16.vlgmr.msra.gmra.mrb[32].mxu0 %v3385_v55  ;;  %2091 = vmatmul.mubr.bf16.vlgmr.msra.gmra.mrb[24].mxu1 %v3385_v55 }
 0x300   :  { %v1805_v36 = vpop.f32.mrb[20].mxu0  ;;  %v1846_v37 = vpop.f32.mrb[12].mxu1 }
 0x301   :  { %v1807_v38 = vpop.f32.mrb[21].mxu0  ;;  %v1848_v39 = vpop.f32.mrb[13].mxu1 }
 0x302   :  { %v1809_v10 = vpop.f32.mrb[22].mxu0  ;;  %v1850_v40 = vpop.f32.mrb[14].mxu1 }
 0x303   :  { %v1810_v41 = vpop.f32.mrb[23].mxu0  ;;  %v1851_v42 = vpop.f32.mrb[15].mxu1 }
 0x340   :  { %v1887_v43 = vpop.f32.mrb[24].mxu0  ;;  %v1928_v44 = vpop.f32.mrb[16].mxu1 }
 0x341   :  { %v1889_v47 = vpop.f32.mrb[25].mxu0  ;;  %v1930_v48 = vpop.f32.mrb[17].mxu1 }
 0x342   :  { %v1891_v49 = vpop.f32.mrb[26].mxu0  ;;  %v1932_v50 = vpop.f32.mrb[18].mxu1 }
 0x343   :  { %v1892_v51 = vpop.f32.mrb[27].mxu0  ;;  %v1933_v52 = vpop.f32.mrb[19].mxu1 }
 0x380   :  { %v1969_v56 = vpop.f32.mrb[28].mxu0  ;;  %v2010_v57 = vpop.f32.mrb[20].mxu1 }
 0x381   :  { %v1970_v58 = vadd.f32 %v1969_v56, %v1805_v36  ;;  %v2011_v55 = vadd.f32 %v2010_v57, %v1846_v37  ;;  %v1971_v59 = vpop.f32.mrb[29].mxu0  ;;  %v2012_v60 = vpop.f32.mrb[21].mxu1 }
 0x382   :  { %v1972_v62 = vadd.f32 %v1971_v59, %v1807_v38  ;;  %v2013_v2 = vadd.f32 %v2012_v60, %v1848_v39  ;;  %v1973_v4 = vpop.f32.mrb[30].mxu0  ;;  %v2014_v5 = vpop.f32.mrb[22].mxu1  ;;  %v2124_v38 = vrot.slane %v2099_v7, %v1408_v9  ;;  %v2132_v39 = vrot.slane %v2099_v7, %v1416_v61 }
 0x383   :  { %v1974_v6 = vpop.f32.mrb[31].mxu0  ;;  %v2015_v3 = vpop.f32.mrb[23].mxu1  ;;  %v2141_v16 = vadd.f32 %v2104_v11, %v1970_v58  ;;  %v2143_v17 = vadd.f32 %v2112_v12, %v2011_v55 }
 0x384   :  { %v2142_v18 = vadd.f32 %v2108_v14, %v1972_v62  ;;  %v2144_v46 = vadd.f32 %v2116_v15, %v2013_v2 }
 0x385   :  { %v2889_v19 = vmul.f32 -1.442695, %v2141_v16  ;;  %v2891_v20 = vmul.f32 -1.442695, %v2143_v17 }
 0x386   :  { %v2890_v21 = vmul.f32 -1.442695, %v2142_v18  ;;  %v2892_v22 = vmul.f32 -1.442695, %v2144_v46 }
 0x387   :  { %2989 = vpow2.f32 %v2889_v19 }
 0x388   :  { %2991 = vpow2.f32 %v2891_v20 }
 0x389   :  { %2993 = vpow2.f32 %v2890_v21 }
 0x38a   :  { %2995 = vpow2.f32 %v2892_v22 }
 0x391   :  { %v2990_v23 = vpop.eup %2989 }
 0x392   :  { %v2992_v25 = vpop.eup %2991  ;;  %v2157_v28 = vadd.f32 1.0, %v2990_v23 }
 0x393   :  { %v2994_v26 = vpop.eup %2993  ;;  %v2169_v29 = vadd.f32 1.0, %v2992_v25 }
 0x394   :  { %v2996_v27 = vpop.eup %2995  ;;  %v2158_v30 = vadd.f32 1.0, %v2994_v26  ;;  %2997 = vrcp.f32 %v2157_v28 }
 0x395   :  { %v2170_v33 = vadd.f32 1.0, %v2996_v27  ;;  %2999 = vrcp.f32 %v2169_v29 }
 0x396   :  { %3001 = vrcp.f32 %v2158_v30 }
 0x397   :  { %3003 = vrcp.f32 %v2170_v33 }
 0x3c0   :  { %v2051_v36 = vpop.f32.mrb[32].mxu0  ;;  %v2092_v37 = vpop.f32.mrb[24].mxu1 }
 0x3c1   :  { %v2052_v10 = vadd.f32 %v2051_v36, %v1887_v43  ;;  %v2093_v40 = vadd.f32 %v2092_v37, %v1928_v44  ;;  %v2053_v41 = vpop.f32.mrb[33].mxu0  ;;  %v2094_v42 = vpop.f32.mrb[25].mxu1  ;;  %v2895_v43 = vld.sshfl [vmem:[%s3492_s2 + $0x4] sm:$0x33 pattern:$0x76325410] }
 0x3c2   :  { %v2054_v49 = vadd.f32 %v2053_v41, %v1889_v47  ;;  %v2095_v8 = vadd.f32 %v2094_v42, %v1930_v48  ;;  %v2055_v50 = vpop.f32.mrb[34].mxu0  ;;  %v2096_v51 = vpop.f32.mrb[26].mxu1  ;;  %v2197_v55 = vcombine.high %v2895_v43, %v2895_v43 }
 0x3c3   :  { %v2145_v1 = vadd.f32 %v2120_v31, %v2052_v10  ;;  %v2147_v52 = vadd.f32 %v2128_v32, %v2093_v40  ;;  %v2056_v56 = vpop.f32.mrb[35].mxu0  ;;  %v2097_v57 = vpop.f32.mrb[27].mxu1 }
 0x3c4   :  { %v2146_v9 = vadd.f32 %v2124_v38, %v2054_v49  ;;  %v2148_v58 = vadd.f32 %v2132_v39, %v2095_v8  ;;  %v2998_v44 = vpop.eup %2997 }
 0x3c5   :  { %3005 = vtanh.f32 %v2145_v1  ;;  %v2893_v45 = vmul.f32 -1.442695, %v2147_v52  ;;  %v3000_v47 = vpop.eup %2999 }
 0x3c6   :  { %3007 = vtanh.f32 %v2146_v9  ;;  %v2894_v61 = vmul.f32 -1.442695, %v2148_v58  ;;  %v3002_v48 = vpop.eup %3001  ;;  %v2200_v2 = vmul.f32 %v3000_v47, %v2895_v43 }
 0x3c7   :  { %3009 = vpow2.f32 %v2893_v45  ;;  %v3004_v59 = vpop.eup %3003 }
 0x3c8   :  { %3011 = vpow2.f32 %v2894_v61  ;;  %v2201_v6 = vmul.f32 %v3004_v59, %v2197_v55 }
 0x3cf   :  { %v3006_v60 = vpop.eup %3005 }
 0x3d0   :  { %v3008_v62 = vpop.eup %3007  ;;  %v2202_v4 = vmul.f32 %v3006_v60, %v2998_v44 }
 0x3d1   :  { %v3010_v5 = vpop.eup %3009  ;;  %v2203_v3 = vmul.f32 %v3008_v62, %v3002_v48 }
 0x3d2   :  { %v3012_v7 = vpop.eup %3011  ;;  %v3411_v11 = vadd.f32 %v2202_v4, %v2200_v2  ;;  %v2183_v12 = vadd.f32 1.0, %v3010_v5 }
 0x3d3   :  { %v3413_v14 = vadd.f32 %v2203_v3, %v2201_v6  ;;  %v2184_v15 = vadd.f32 1.0, %v3012_v7 }
 0x3d4   :  { %3013 = vtanh.f32 %v3411_v11 }
 0x3d5   :  { %3015 = vrcp.f32 %v2183_v12 }
 0x3d6   :  { %3017 = vtanh.f32 %v3413_v14 }
 0x3d7   :  { %3019 = vrcp.f32 %v2184_v15 }
 0x3de   :  { %v3014_v16 = vpop.eup %3013 }
 0x3df   :  { %v3016_v17 = vpop.eup %3015 }
 0x3e0   :  { %v3018_v18 = vpop.eup %3017  ;;  %v3417_v46 = vmul.f32 %v3016_v17, %v3014_v16 }
 0x3e1   :  { %v3020_v19 = vpop.eup %3019 }
 0x3e2   :  { %v3419_v20 = vmul.f32 %v3020_v19, %v3018_v18 }
 0x3e3   :  { %3091 = dma.done.wait [#allocation6 + $0x1], 8192 }
 0x3e4   :  { %3092 = vsyncadd [#allocation6 + $0x1], 4294959104  ;;  %v2215_v21 = vpack.c.bf16 %v3419_v20, %v3419_v20  ;;  %v2217_v22 = vld [vmem:[#allocation3 + $0x8] sm:$0xff]  ;;  %v2219_v23 = vld [vmem:[#allocation3 + $0x18] sm:$0xff] }
 0x3e5   :  { %v2216_v25 = vld [vmem:[#allocation3] sm:$0xff]  ;;  %2302 = vmatprep.subr.bf16.mxu0 %v2217_v22  ;;  %2343 = vmatprep.subr.bf16.mxu1 %v2219_v23  ;;  %v2218_v26 = vld [vmem:[#allocation3 + $0x10] sm:$0xff]  ;;  %v2221_v27 = vld [vmem:[#allocation3 + $0x28] sm:$0xff] }
 0x3e6   :  { %2334 = vmatprep.mubr.bf16.mxu0 %v2215_v21  ;;  %2375 = vmatprep.mubr.bf16.mxu1 %v2215_v21  ;;  %v2223_v28 = vld [vmem:[#allocation3 + $0x38] sm:$0xff]  ;;  %v2220_v29 = vld [vmem:[#allocation3 + $0x20] sm:$0xff]  ;;  %v2222_v30 = vld [vmem:[#allocation3 + $0x30] sm:$0xff] }
 0x3e7   :  { %2303 = vmatpush1.bf16.msra.mxu0 %v2216_v25  ;;  %2344 = vmatpush1.bf16.msra.mxu1 %v2218_v26  ;;  %v2225_v31 = vld [vmem:[#allocation3 + $0x48] sm:$0xff]  ;;  %v2227_v32 = vld [vmem:[#allocation3 + $0x58] sm:$0xff]  ;;  %v2224_v33 = vld [vmem:[#allocation3 + $0x40] sm:$0xff] }
 0x3e8   :  { %2304 = vmatprep.subr.bf16.mxu0 %v2221_v27  ;;  %2345 = vmatprep.subr.bf16.mxu1 %v2223_v28  ;;  %v2226_v36 = vld [vmem:[#allocation3 + $0x50] sm:$0xff]  ;;  %v2229_v37 = vld [vmem:[#allocation3 + $0x68] sm:$0xff]  ;;  %v2231_v38 = vld [vmem:[#allocation3 + $0x78] sm:$0xff] }
 0x3e9   :  { %v2228_v39 = vld [vmem:[#allocation3 + $0x60] sm:$0xff]  ;;  %v2230_v10 = vld [vmem:[#allocation3 + $0x70] sm:$0xff]  ;;  %v2233_v40 = vld [vmem:[#allocation3 + $0x88] sm:$0xff] }
 0x3ea   :  { %v2235_v41 = vld [vmem:[#allocation3 + $0x98] sm:$0xff]  ;;  %v2232_v42 = vld [vmem:[#allocation3 + $0x80] sm:$0xff]  ;;  %v2234_v49 = vld [vmem:[#allocation3 + $0x90] sm:$0xff] }
 0x3eb   :  { %2305 = vmatpush1.bf16.msra.mxu0 %v2220_v29  ;;  %2346 = vmatpush1.bf16.msra.mxu1 %v2222_v30  ;;  %v2237_v8 = vld [vmem:[#allocation3 + $0xa8] sm:$0xff]  ;;  %v2239_v50 = vld [vmem:[#allocation3 + $0xb8] sm:$0xff]  ;;  %v2236_v51 = vld [vmem:[#allocation3 + $0xa0] sm:$0xff] }
 0x3ec   :  { %2306 = vmatprep.subr.bf16.mxu0 %v2225_v31  ;;  %2347 = vmatprep.subr.bf16.mxu1 %v2227_v32  ;;  %v2238_v1 = vld [vmem:[#allocation3 + $0xb0] sm:$0xff]  ;;  %v2241_v52 = vld [vmem:[#allocation3 + $0xc8] sm:$0xff]  ;;  %v2243_v56 = vld [vmem:[#allocation3 + $0xd8] sm:$0xff] }
 0x3ed   :  { %v2240_v57 = vld [vmem:[#allocation3 + $0xc0] sm:$0xff]  ;;  %v2242_v9 = vld [vmem:[#allocation3 + $0xd0] sm:$0xff]  ;;  %v2245_v58 = vld [vmem:[#allocation3 + $0xe8] sm:$0xff] }
 0x3ee   :  { %v2247_v45 = vld [vmem:[#allocation3 + $0xf8] sm:$0xff]  ;;  %v2244_v61 = vld [vmem:[#allocation3 + $0xe0] sm:$0xff]  ;;  %v2246_v43 = vld [vmem:[#allocation3 + $0xf0] sm:$0xff] }
 0x3ef   :  { %2307 = vmatpush1.bf16.msra.mxu0 %v2224_v33  ;;  %2348 = vmatpush1.bf16.msra.mxu1 %v2226_v36  ;;  %v2249_v44 = vld [vmem:[#allocation3 + $0x108] sm:$0xff]  ;;  %v2251_v47 = vld [vmem:[#allocation3 + $0x118] sm:$0xff]  ;;  %v2248_v48 = vld [vmem:[#allocation3 + $0x100] sm:$0xff] }
 0x3f0   :  { %2308 = vmatprep.subr.bf16.mxu0 %v2229_v37  ;;  %2349 = vmatprep.subr.bf16.mxu1 %v2231_v38  ;;  %v2250_v55 = vld [vmem:[#allocation3 + $0x110] sm:$0xff]  ;;  %v2253_v59 = vld [vmem:[#allocation3 + $0x128] sm:$0xff]  ;;  %v2255_v60 = vld [vmem:[#allocation3 + $0x138] sm:$0xff]  ;;  %v2214_v37 = vpack.c.bf16 %v3417_v46, %v3417_v46 }
 0x3f1   :  { %v2252_v62 = vld [vmem:[#allocation3 + $0x120] sm:$0xff]  ;;  %v2254_v2 = vld [vmem:[#allocation3 + $0x130] sm:$0xff]  ;;  %v2257_v4 = vld [vmem:[#allocation3 + $0x148] sm:$0xff] }
 0x3f2   :  { %v2259_v5 = vld [vmem:[#allocation3 + $0x158] sm:$0xff]  ;;  %v2256_v6 = vld [vmem:[#allocation3 + $0x140] sm:$0xff]  ;;  %v2258_v3 = vld [vmem:[#allocation3 + $0x150] sm:$0xff] }
 0x3f3   :  { %2309 = vmatpush1.bf16.msra.mxu0 %v2228_v39  ;;  %2350 = vmatpush1.bf16.msra.mxu1 %v2230_v10  ;;  %v2261_v7 = vld [vmem:[#allocation3 + $0x168] sm:$0xff]  ;;  %v2263_v12 = vld [vmem:[#allocation3 + $0x178] sm:$0xff]  ;;  %v2260_v15 = vld [vmem:[#allocation3 + $0x160] sm:$0xff] }
 0x3f4   :  { %2310 = vmatprep.subr.bf16.mxu0 %v2233_v40  ;;  %2351 = vmatprep.subr.bf16.mxu1 %v2235_v41  ;;  %v2262_v16 = vld [vmem:[#allocation3 + $0x170] sm:$0xff]  ;;  %v2265_v17 = vld [vmem:[#allocation3 + $0x188] sm:$0xff]  ;;  %v2267_v18 = vld [vmem:[#allocation3 + $0x198] sm:$0xff] }
 0x3f5   :  { %v2264_v19 = vld [vmem:[#allocation3 + $0x180] sm:$0xff]  ;;  %v2266_v21 = vld [vmem:[#allocation3 + $0x190] sm:$0xff]  ;;  %v2269_v22 = vld [vmem:[#allocation3 + $0x1a8] sm:$0xff] }
 0x3f6   :  { %v2271_v23 = vld [vmem:[#allocation3 + $0x1b8] sm:$0xff]  ;;  %v2268_v25 = vld [vmem:[#allocation3 + $0x1a0] sm:$0xff]  ;;  %v2270_v26 = vld [vmem:[#allocation3 + $0x1b0] sm:$0xff] }
 0x3f7   :  { %2311 = vmatpush1.bf16.msra.mxu0 %v2232_v42  ;;  %2352 = vmatpush1.bf16.msra.mxu1 %v2234_v49  ;;  %v2273_v27 = vld [vmem:[#allocation3 + $0x1c8] sm:$0xff]  ;;  %v2275_v28 = vld [vmem:[#allocation3 + $0x1d8] sm:$0xff]  ;;  %v2272_v29 = vld [vmem:[#allocation3 + $0x1c0] sm:$0xff] }
 0x3f8   :  { %2312 = vmatprep.subr.bf16.mxu0 %v2237_v8  ;;  %2353 = vmatprep.subr.bf16.mxu1 %v2239_v50  ;;  %v2274_v30 = vld [vmem:[#allocation3 + $0x1d0] sm:$0xff]  ;;  %v2277_v31 = vld [vmem:[#allocation3 + $0x1e8] sm:$0xff]  ;;  %v2279_v32 = vld [vmem:[#allocation3 + $0x1f8] sm:$0xff] }
 0x3f9   :  { %v2276_v33 = vld [vmem:[#allocation3 + $0x1e0] sm:$0xff]  ;;  %v2278_v36 = vld [vmem:[#allocation3 + $0x1f0] sm:$0xff] }
 0x3fa   :  { %v2280_v38 = vld [vmem:[%s3498_s8] sm:$0xf] }
 0x3fb   :  { %2313 = vmatpush1.bf16.msra.mxu0 %v2236_v51  ;;  %2354 = vmatpush1.bf16.msra.mxu1 %v2238_v1  ;;  %v2285_v39 = vrot.slane %v2280_v38, %v3291_v54  ;;  %v2293_v10 = vrot.slane %v2280_v38, %v3326_v34  ;;  %v2289_v40 = vrot.slane %v2280_v38, %v3299_v13 }
 0x3fc   :  { %2314 = vmatprep.subr.bf16.mxu0 %v2241_v52  ;;  %2355 = vmatprep.subr.bf16.mxu1 %v2243_v56  ;;  %v2297_v41 = vrot.slane %v2280_v38, %v3329_v35 }
 0x3ff   :  { %2315 = vmatpush1.bf16.msra.mxu0 %v2240_v57  ;;  %2356 = vmatpush1.bf16.msra.mxu1 %v2242_v9 }
 0x400   :  { %2316 = vmatprep.subr.bf16.mxu0 %v2245_v58  ;;  %2357 = vmatprep.subr.bf16.mxu1 %v2247_v45 }
 0x403   :  { %2317 = vmatpush1.bf16.msra.mxu0 %v2244_v61  ;;  %2358 = vmatpush1.bf16.msra.mxu1 %v2246_v43 }
 0x404   :  { %2318 = vmatprep.subr.bf16.mxu0 %v2249_v44  ;;  %2359 = vmatprep.subr.bf16.mxu1 %v2251_v47 }
 0x407   :  { %2319 = vmatpush1.bf16.msra.mxu0 %v2248_v48  ;;  %2360 = vmatpush1.bf16.msra.mxu1 %v2250_v55 }
 0x408   :  { %2320 = vmatprep.subr.bf16.mxu0 %v2253_v59  ;;  %2361 = vmatprep.subr.bf16.mxu1 %v2255_v60 }
 0x40b   :  { %2321 = vmatpush1.bf16.msra.mxu0 %v2252_v62  ;;  %2362 = vmatpush1.bf16.msra.mxu1 %v2254_v2 }
 0x40c   :  { %2322 = vmatprep.subr.bf16.mxu0 %v2257_v4  ;;  %2363 = vmatprep.subr.bf16.mxu1 %v2259_v5 }
 0x40f   :  { %2323 = vmatpush1.bf16.msra.mxu0 %v2256_v6  ;;  %2364 = vmatpush1.bf16.msra.mxu1 %v2258_v3 }
 0x410   :  { %2324 = vmatprep.subr.bf16.mxu0 %v2261_v7  ;;  %2365 = vmatprep.subr.bf16.mxu1 %v2263_v12 }
 0x413   :  { %2325 = vmatpush1.bf16.msra.mxu0 %v2260_v15  ;;  %2366 = vmatpush1.bf16.msra.mxu1 %v2262_v16 }
 0x414   :  { %2326 = vmatprep.subr.bf16.mxu0 %v2265_v17  ;;  %2367 = vmatprep.subr.bf16.mxu1 %v2267_v18 }
 0x417   :  { %2327 = vmatpush1.bf16.msra.mxu0 %v2264_v19  ;;  %2368 = vmatpush1.bf16.msra.mxu1 %v2266_v21 }
 0x418   :  { %2328 = vmatprep.subr.bf16.mxu0 %v2269_v22  ;;  %2369 = vmatprep.subr.bf16.mxu1 %v2271_v23 }
 0x41b   :  { %2329 = vmatpush1.bf16.msra.mxu0 %v2268_v25  ;;  %2370 = vmatpush1.bf16.msra.mxu1 %v2270_v26 }
 0x41c   :  { %2330 = vmatprep.subr.bf16.mxu0 %v2273_v27  ;;  %2371 = vmatprep.subr.bf16.mxu1 %v2275_v28 }
 0x41f   :  { %2331 = vmatpush1.bf16.msra.mxu0 %v2272_v29  ;;  %2372 = vmatpush1.bf16.msra.mxu1 %v2274_v30 }
 0x420   :  { %2332 = vmatprep.subr.bf16.mxu0 %v2277_v31  ;;  %2373 = vmatprep.subr.bf16.mxu1 %v2279_v32 }
 0x423   :  { %2333 = vmatpush1.bf16.msra.mxu0 %v2276_v33  ;;  %2374 = vmatpush1.bf16.msra.mxu1 %v2278_v36 }
 0x426   :  { %2335 = vmatmul.mubr.bf16.vlgmr.msra.gmra.mrb[36].mxu0 %v2214_v37  ;;  %2376 = vmatmul.mubr.bf16.vlgmr.msra.gmra.mrb[28].mxu1 %v2214_v37 }
 0x4f9   :  { %v2336_v42 = vpop.f32.mrb[36].mxu0  ;;  %v2377_v49 = vpop.f32.mrb[28].mxu1 }
 0x4fa   :  { %v3432_v8 = vadd.f32 %v2336_v42, %v2285_v39  ;;  %v3434_v50 = vadd.f32 %v2377_v49, %v2293_v10  ;;  %v2338_v51 = vpop.f32.mrb[37].mxu0  ;;  %v2379_v1 = vpop.f32.mrb[29].mxu1 }
 0x4fb   :  { %v2339_v52 = vadd.f32 %v2338_v51, %v2289_v40  ;;  %v3436_v56 = vadd.f32 %v2379_v1, %v2297_v41  ;;  %v2340_v57 = vpop.f32.mrb[38].mxu0  ;;  %v2381_v9 = vpop.f32.mrb[30].mxu1 }
 0x4fc   :  { %v2384_v58 = vmax.f32 %v3432_v8, 0.0  ;;  %v2386_v34 = vmax.f32 %v3434_v50, 0.0  ;;  %v2341_v45 = vpop.f32.mrb[39].mxu0  ;;  %v2382_v61 = vpop.f32.mrb[31].mxu1 }
 0x4fd   :  { %v2385_v35 = vmax.f32 %v2339_v52, 0.0  ;;  %v2387_v43 = vmax.f32 %v3436_v56, 0.0 }
 0x4fe   :  { %3093 = dma.done.wait [#allocation6 + $0x2], 8192 }
 0x4ff   :  { %3094 = vsyncadd [#allocation6 + $0x2], 4294959104  ;;  %v2392_v44 = vpack.c.bf16 %v2385_v35, %v2385_v35  ;;  %v2396_v47 = vld [vmem:[#allocation4 + $0x8] sm:$0xff]  ;;  %v2395_v48 = vld [vmem:[#allocation4] sm:$0xff]  ;;  %v2391_v39 = vpack.c.bf16 %v2384_v58, %v2384_v58  ;;  %v2394_v10 = vpack.c.bf16 %v2387_v43, %v2387_v43 }
 0x500   :  { %v2398_v55 = vld [vmem:[#allocation4 + $0x18] sm:$0xff]  ;;  %2471 = vmatprep.subr.bf16.mxu0 %v2396_v47  ;;  %v2397_v59 = vld [vmem:[#allocation4 + $0x10] sm:$0xff]  ;;  %v2400_v60 = vld [vmem:[#allocation4 + $0x28] sm:$0xff] }
 0x501   :  { %2503 = vmatprep.mubr.bf16.mxu0 %v2392_v44  ;;  %2472 = vmatpush1.bf16.msra.mxu0 %v2395_v48  ;;  %v2399_v62 = vld [vmem:[#allocation4 + $0x20] sm:$0xff]  ;;  %v2402_v2 = vld [vmem:[#allocation4 + $0x38] sm:$0xff]  ;;  %v2401_v4 = vld [vmem:[#allocation4 + $0x30] sm:$0xff] }
 0x502   :  { %2473 = vmatprep.subr.bf16.mxu0 %v2398_v55  ;;  %v2404_v5 = vld [vmem:[#allocation4 + $0x48] sm:$0xff]  ;;  %v2403_v6 = vld [vmem:[#allocation4 + $0x40] sm:$0xff]  ;;  %v2406_v3 = vld [vmem:[#allocation4 + $0x58] sm:$0xff] }
 0x503   :  { %v2405_v7 = vld [vmem:[#allocation4 + $0x50] sm:$0xff]  ;;  %v2408_v12 = vld [vmem:[#allocation4 + $0x68] sm:$0xff]  ;;  %v2407_v15 = vld [vmem:[#allocation4 + $0x60] sm:$0xff] }
 0x504   :  { %v2410_v16 = vld [vmem:[#allocation4 + $0x78] sm:$0xff]  ;;  %v2409_v17 = vld [vmem:[#allocation4 + $0x70] sm:$0xff]  ;;  %v2412_v18 = vld [vmem:[#allocation4 + $0x88] sm:$0xff] }
 0x505   :  { %2474 = vmatpush1.bf16.msra.mxu0 %v2397_v59  ;;  %v2411_v19 = vld [vmem:[#allocation4 + $0x80] sm:$0xff]  ;;  %v2414_v21 = vld [vmem:[#allocation4 + $0x98] sm:$0xff]  ;;  %v2413_v22 = vld [vmem:[#allocation4 + $0x90] sm:$0xff] }
 0x506   :  { %2475 = vmatprep.subr.bf16.mxu0 %v2400_v60  ;;  %v2416_v23 = vld [vmem:[#allocation4 + $0xa8] sm:$0xff]  ;;  %v2415_v25 = vld [vmem:[#allocation4 + $0xa0] sm:$0xff]  ;;  %v2418_v26 = vld [vmem:[#allocation4 + $0xb8] sm:$0xff] }
 0x507   :  { %v2417_v27 = vld [vmem:[#allocation4 + $0xb0] sm:$0xff]  ;;  %v2420_v28 = vld [vmem:[#allocation4 + $0xc8] sm:$0xff]  ;;  %v2419_v29 = vld [vmem:[#allocation4 + $0xc0] sm:$0xff] }
 0x508   :  { %v2422_v30 = vld [vmem:[#allocation4 + $0xd8] sm:$0xff]  ;;  %v2421_v31 = vld [vmem:[#allocation4 + $0xd0] sm:$0xff]  ;;  %v2424_v32 = vld [vmem:[#allocation4 + $0xe8] sm:$0xff] }
 0x509   :  { %2476 = vmatpush1.bf16.msra.mxu0 %v2399_v62  ;;  %v2423_v33 = vld [vmem:[#allocation4 + $0xe0] sm:$0xff]  ;;  %v2426_v36 = vld [vmem:[#allocation4 + $0xf8] sm:$0xff]  ;;  %v2425_v37 = vld [vmem:[#allocation4 + $0xf0] sm:$0xff] }
 0x50a   :  { %2477 = vmatprep.subr.bf16.mxu0 %v2402_v2  ;;  %v2428_v38 = vld [vmem:[#allocation4 + $0x108] sm:$0xff]  ;;  %v2427_v40 = vld [vmem:[#allocation4 + $0x100] sm:$0xff]  ;;  %v2430_v41 = vld [vmem:[#allocation4 + $0x118] sm:$0xff] }
 0x50b   :  { %v2429_v42 = vld [vmem:[#allocation4 + $0x110] sm:$0xff]  ;;  %v2432_v49 = vld [vmem:[#allocation4 + $0x128] sm:$0xff]  ;;  %v2431_v51 = vld [vmem:[#allocation4 + $0x120] sm:$0xff] }
 0x50c   :  { %v2434_v8 = vld [vmem:[#allocation4 + $0x138] sm:$0xff]  ;;  %v2433_v1 = vld [vmem:[#allocation4 + $0x130] sm:$0xff]  ;;  %v2436_v52 = vld [vmem:[#allocation4 + $0x148] sm:$0xff] }
 0x50d   :  { %2478 = vmatpush1.bf16.msra.mxu0 %v2401_v4  ;;  %v2435_v56 = vld [vmem:[#allocation4 + $0x140] sm:$0xff]  ;;  %v2438_v57 = vld [vmem:[#allocation4 + $0x158] sm:$0xff]  ;;  %v2437_v9 = vld [vmem:[#allocation4 + $0x150] sm:$0xff] }
 0x50e   :  { %2479 = vmatprep.subr.bf16.mxu0 %v2404_v5  ;;  %v2440_v58 = vld [vmem:[#allocation4 + $0x168] sm:$0xff]  ;;  %v2439_v45 = vld [vmem:[#allocation4 + $0x160] sm:$0xff]  ;;  %v2442_v61 = vld [vmem:[#allocation4 + $0x178] sm:$0xff] }
 0x50f   :  { %v2441_v35 = vld [vmem:[#allocation4 + $0x170] sm:$0xff]  ;;  %v2444_v43 = vld [vmem:[#allocation4 + $0x188] sm:$0xff]  ;;  %v2443_v44 = vld [vmem:[#allocation4 + $0x180] sm:$0xff] }
 0x510   :  { %v2446_v47 = vld [vmem:[#allocation4 + $0x198] sm:$0xff]  ;;  %v2445_v48 = vld [vmem:[#allocation4 + $0x190] sm:$0xff]  ;;  %v2448_v55 = vld [vmem:[#allocation4 + $0x1a8] sm:$0xff] }
 0x511   :  { %2480 = vmatpush1.bf16.msra.mxu0 %v2403_v6  ;;  %v2447_v59 = vld [vmem:[#allocation4 + $0x1a0] sm:$0xff]  ;;  %v2450_v60 = vld [vmem:[#allocation4 + $0x1b8] sm:$0xff]  ;;  %v2449_v62 = vld [vmem:[#allocation4 + $0x1b0] sm:$0xff] }
 0x512   :  { %2481 = vmatprep.subr.bf16.mxu0 %v2406_v3  ;;  %v2452_v2 = vld [vmem:[#allocation4 + $0x1c8] sm:$0xff]  ;;  %v2451_v4 = vld [vmem:[#allocation4 + $0x1c0] sm:$0xff]  ;;  %v2454_v5 = vld [vmem:[#allocation4 + $0x1d8] sm:$0xff] }
 0x513   :  { %v2453_v6 = vld [vmem:[#allocation4 + $0x1d0] sm:$0xff]  ;;  %v2456_v3 = vld [vmem:[#allocation4 + $0x1e8] sm:$0xff] }
 0x515   :  { %2482 = vmatpush1.bf16.msra.mxu0 %v2405_v7  ;;  %v2455_v7 = vld [vmem:[#allocation4 + $0x1e0] sm:$0xff] }
 0x516   :  { %2483 = vmatprep.subr.bf16.mxu0 %v2408_v12  ;;  %v2458_v12 = vld [vmem:[#allocation4 + $0x1f8] sm:$0xff] }
 0x519   :  { %2484 = vmatpush1.bf16.msra.mxu0 %v2407_v15  ;;  %v2457_v15 = vld [vmem:[#allocation4 + $0x1f0] sm:$0xff] }
 0x51a   :  { %2485 = vmatprep.subr.bf16.mxu0 %v2410_v16  ;;  %v2393_v16 = vpack.c.bf16 %v2386_v34, %v2386_v34 }
 0x51d   :  { %2486 = vmatpush1.bf16.msra.mxu0 %v2409_v17  ;;  %v2459_v17 = vld [vmem:[%s3500_s10] sm:$0x3] }
 0x51e   :  { %2487 = vmatprep.subr.bf16.mxu0 %v2412_v18  ;;  %v2464_v18 = vrot.slane %v2459_v17, %v3291_v54 }
 0x521   :  { %2488 = vmatpush1.bf16.msra.mxu0 %v2411_v19  ;;  %v2468_v19 = vrot.slane %v2459_v17, %v3299_v13 }
 0x522   :  { %2489 = vmatprep.subr.bf16.mxu0 %v2414_v21 }
 0x525   :  { %2490 = vmatpush1.bf16.msra.mxu0 %v2413_v22 }
 0x526   :  { %2491 = vmatprep.subr.bf16.mxu0 %v2416_v23 }
 0x529   :  { %2492 = vmatpush1.bf16.msra.mxu0 %v2415_v25 }
 0x52a   :  { %2493 = vmatprep.subr.bf16.mxu0 %v2418_v26 }
 0x52d   :  { %2494 = vmatpush1.bf16.msra.mxu0 %v2417_v27 }
 0x52e   :  { %2495 = vmatprep.subr.bf16.mxu0 %v2420_v28 }
 0x531   :  { %2496 = vmatpush1.bf16.msra.mxu0 %v2419_v29 }
 0x532   :  { %2497 = vmatprep.subr.bf16.mxu0 %v2422_v30 }
 0x535   :  { %2498 = vmatpush1.bf16.msra.mxu0 %v2421_v31 }
 0x536   :  { %2499 = vmatprep.subr.bf16.mxu0 %v2424_v32 }
 0x539   :  { %2500 = vmatpush1.bf16.msra.mxu0 %v2423_v33 }
 0x53a   :  { %2501 = vmatprep.subr.bf16.mxu0 %v2426_v36 }
 0x53d   :  { %2502 = vmatpush1.bf16.msra.mxu0 %v2425_v37 }
 0x53e   :  { %2512 = vmatprep.subr.bf16.mxu0 %v2428_v38 }
 0x540   :  { %2504 = vmatmul.mubr.bf16.vlgmr.msra.gmra.mrb[40].mxu0 %v2391_v39 }
 0x541   :  { %2513 = vmatpush1.bf16.msra.mxu0 %v2427_v40  ;;  %2544 = vmatprep.mubr.bf16.mxu0 %v2394_v10 }
 0x542   :  { %2514 = vmatprep.subr.bf16.mxu0 %v2430_v41 }
 0x545   :  { %2515 = vmatpush1.bf16.msra.mxu0 %v2429_v42 }
 0x546   :  { %2516 = vmatprep.subr.bf16.mxu0 %v2432_v49 }
 0x549   :  { %2517 = vmatpush1.bf16.msra.mxu0 %v2431_v51 }
 0x54a   :  { %2518 = vmatprep.subr.bf16.mxu0 %v2434_v8 }
 0x54d   :  { %2519 = vmatpush1.bf16.msra.mxu0 %v2433_v1 }
 0x54e   :  { %2520 = vmatprep.subr.bf16.mxu0 %v2436_v52 }
 0x551   :  { %2521 = vmatpush1.bf16.msra.mxu0 %v2435_v56 }
 0x552   :  { %2522 = vmatprep.subr.bf16.mxu0 %v2438_v57 }
 0x555   :  { %2523 = vmatpush1.bf16.msra.mxu0 %v2437_v9 }
 0x556   :  { %2524 = vmatprep.subr.bf16.mxu0 %v2440_v58 }
 0x559   :  { %2525 = vmatpush1.bf16.msra.mxu0 %v2439_v45 }
 0x55a   :  { %2526 = vmatprep.subr.bf16.mxu0 %v2442_v61 }
 0x55d   :  { %2527 = vmatpush1.bf16.msra.mxu0 %v2441_v35 }
 0x55e   :  { %2528 = vmatprep.subr.bf16.mxu0 %v2444_v43 }
 0x561   :  { %2529 = vmatpush1.bf16.msra.mxu0 %v2443_v44 }
 0x562   :  { %2530 = vmatprep.subr.bf16.mxu0 %v2446_v47 }
 0x565   :  { %2531 = vmatpush1.bf16.msra.mxu0 %v2445_v48 }
 0x566   :  { %2532 = vmatprep.subr.bf16.mxu0 %v2448_v55 }
 0x569   :  { %2533 = vmatpush1.bf16.msra.mxu0 %v2447_v59 }
 0x56a   :  { %2534 = vmatprep.subr.bf16.mxu0 %v2450_v60 }
 0x56d   :  { %2535 = vmatpush1.bf16.msra.mxu0 %v2449_v62 }
 0x56e   :  { %2536 = vmatprep.subr.bf16.mxu0 %v2452_v2 }
 0x571   :  { %2537 = vmatpush1.bf16.msra.mxu0 %v2451_v4 }
 0x572   :  { %2538 = vmatprep.subr.bf16.mxu0 %v2454_v5 }
 0x575   :  { %2539 = vmatpush1.bf16.msra.mxu0 %v2453_v6 }
 0x576   :  { %2540 = vmatprep.subr.bf16.mxu0 %v2456_v3 }
 0x579   :  { %2541 = vmatpush1.bf16.msra.mxu0 %v2455_v7 }
 0x57a   :  { %2542 = vmatprep.subr.bf16.mxu0 %v2458_v12 }
 0x57d   :  { %2543 = vmatpush1.bf16.msra.mxu0 %v2457_v15 }
 0x580   :  { %2545 = vmatmul.mubr.bf16.vlgmr.msra.gmra.mrb[40].mxu0 %v2393_v16 }
 0x653   :  { %v2546_v21 = vpop.f32.mrb[40].mxu0 }
 0x654   :  { %v2929_v22 = vadd.f32 %v2546_v21, %v2464_v18  ;;  %v2548_v23 = vpop.f32.mrb[41].mxu0 }
 0x655   :  { %v2930_v25 = vadd.f32 %v2548_v23, %v2468_v19  ;;  %v2550_v26 = vpop.f32.mrb[42].mxu0 }
 0x656   :  { %v2553_v27 = vmax.f32 %v2929_v22, 0.0  ;;  %v2551_v28 = vpop.f32.mrb[43].mxu0 }
 0x657   :  { %v2554_v50 = vmax.f32 %v2930_v25, 0.0 }
 0x658   :  { %3095 = dma.done.wait [#allocation6 + $0x3], 2048 }
 0x659   :  { %3096 = vsyncadd [#allocation6 + $0x3], 4294965248  ;;  %v2626_v34 = vcombine.low %v3352_v53, %v3354_v24  ;;  %v2638_v29 = vcombine.low %v3417_v46, %v3419_v20  ;;  %v2651_v54 = vcombine.low %v3338_v63, %v3340_v0  ;;  %v2663_v13 = vcombine.low %v3411_v11, %v3413_v14  ;;  %v2568_v63 = vld [vmem:[#allocation5 + $0x40] sm:$0xff]  ;;  %v2569_v53 = vld [vmem:[#allocation5 + $0x48] sm:$0xff]  ;;  %s3120_s5 = smov [#allocation10]  }
 0x65a   :  { %v2559_v30 = vpack.c.bf16 %v2554_v50, %v2554_v50  ;;  %v2560_v0 = vld [vmem:[#allocation5] sm:$0xff]  ;;  %2907 = vmatprep.subr.bf16.mxu1 %v2568_v63  ;;  %v2561_v24 = vld [vmem:[#allocation5 + $0x8] sm:$0xff]  ;;  %v2570_v11 = vld [vmem:[#allocation5 + $0x50] sm:$0xff]  ;;  %v2558_v40 = vpack.c.bf16 %v2553_v27, %v2553_v27  ;;  %s2680_s22 = sshll.u32 %s3120_s5, 4  ;;  %s2681_s22 = int_to_ptr.vmem [resolvable:$true] %s2680_s22 }
 0x65b   :  { %2897 = vst.sshfl [vmem:[%s3504_s14] sm:$0x33 pattern:$0x76325410] %v2626_v34  ;;  %2899 = vst.sshfl [vmem:[%s3505_s15] sm:$0x33 pattern:$0x76325410] %v2651_v54  ;;  %2908 = vmatpush3.bf16.msra.mxu1 %v2560_v0  ;;  %p3070_p3 = scmp.lt.s32.totalorder %s2681_s22, %s2681_s22 }
 0x65c   :  { %2905 = vst.sshfl [vmem:[%s3504_s14 + $0x4] sm:$0x33 pattern:$0x76325410] %v2638_v29  ;;  %2615 = vmatprep.mubr.bf16.mxu1 %v2559_v30  ;;  %2909 = vmatprep.subr.bf16.mxu1 %v2569_v53  ;;  %v2562_v14 = vld [vmem:[#allocation5 + $0x10] sm:$0xff]  ;;  %v2571_v46 = vld [vmem:[#allocation5 + $0x58] sm:$0xff] }
 0x65d   :  { %2906 = vst.sshfl [vmem:[%s3505_s15 + $0x4] sm:$0x33 pattern:$0x76325410] %v2663_v13  ;;  %v2563_v20 = vld [vmem:[#allocation5 + $0x18] sm:$0xff]  ;;  %v2572_v31 = vld [vmem:[#allocation5 + $0x60] sm:$0xff] }
 0x65e   :  { %v2564_v32 = vld [vmem:[#allocation5 + $0x20] sm:$0xff]  ;;  %v2573_v33 = vld [vmem:[#allocation5 + $0x68] sm:$0xff]  ;;  %v2574_v37 = vld [vmem:[#allocation5 + $0x70] sm:$0xff]  ;;  %s3065_s28 = scalar_lea.vmem %s2681_s22, 32 }
 0x65f   :  { %2910 = vmatpush3.bf16.msra.mxu1 %v2561_v24  ;;  %v2565_v36 = vld [vmem:[#allocation5 + $0x28] sm:$0xff]  ;;  %v2566_v38 = vld [vmem:[#allocation5 + $0x30] sm:$0xff]  ;;  %v2575_v39 = vld [vmem:[#allocation5 + $0x78] sm:$0xff]  ;;  %p3066_p2 = scmp.ne.s32.totalorder %s2681_s22, %s3065_s28  ;;  %p3071_p4 = scmp.lt.s32.totalorder %s3065_s28, %s3065_s28 }
 0x660   :  { %2911 = vmatprep.subr.bf16.mxu1 %v2570_v11  ;;  %v2567_v10 = vld [vmem:[#allocation5 + $0x38] sm:$0xff]  ;;  %v2896_v42 = vld [vmem:[%s3502_s12] ss:$0 sm:$0xff] }
 0x661   :  { %p3072_p5 = por %p3071_p4, %p3070_p3 }
 0x663   :  { %2912 = vmatpush3.bf16.msra.mxu1 %v2562_v14  ;;  %p3073_p6 = pnand %p3072_p5, %p3066_p2 }
 0x664   :  { %2913 = vmatprep.subr.bf16.mxu1 %v2571_v46 }
 0x667   :  { %2914 = vmatpush3.bf16.msra.mxu1 %v2563_v20 }
 0x668   :  { %2915 = vmatprep.subr.bf16.mxu1 %v2572_v31 }
 0x66b   :  { %2916 = vmatpush3.bf16.msra.mxu1 %v2564_v32 }
 0x66c   :  { %2917 = vmatprep.subr.bf16.mxu1 %v2573_v33 }
 0x66f   :  { %2918 = vmatpush3.bf16.msra.mxu1 %v2565_v36 }
 0x670   :  { %2919 = vmatprep.subr.bf16.mxu1 %v2574_v37 }
 0x673   :  { %2920 = vmatpush3.bf16.msra.mxu1 %v2566_v38 }
 0x674   :  { %2921 = vmatprep.subr.bf16.mxu1 %v2575_v39 }
 0x677   :  { %2922 = vmatpush3.bf16.msra.mxu1 %v2567_v10 }
 0x67a   :  { %2616 = vmatmul.mubr.bf16.vlgmr.msra.gmra.mrb[32].mxu1 %v2558_v40 }
 0x74d   :  { %v2923_v41 = vpop.f32.mrb[32].mxu1 }
 0x74e   :  { %v2924_v49 = vpop.f32.mrb[33].mxu1 }
 0x74f   :  { %v2925_v51 = vadd.f32 %v2924_v49, %v2923_v41  ;;  %v2926_v8 = vpop.f32.mrb[34].mxu1 }
 0x750   :  { %v2927_v1 = vpop.f32.mrb[35].mxu1 }
 0x751   :  { %v2618_v52 = vadd.f32 %v2925_v51, %v2896_v42 }
 0x753   :  { %2623 = vst [vmem:[#allocation10] sm:$0x3] %v2618_v52 }
 0x754   :  { %3076 = shalt.err (!%p3073_p6)
}
 0x755   :  { %s3077_s12 = scalar_lea.hbm %s3503_s13, 32 }
 0x756   :  { %p3078_p7 = scmp.ne.s32.totalorder %s3503_s13, %s3077_s12  ;;  %p3081_p8 = scmp.lt.u32.totalorder %s3077_s12, %s3503_s13 }
 0x758   :  { %p3083_p9 = pnand %p3081_p8, %p3078_p7 }
 0x75a   :  { %3086 = shalt.err (!%p3083_p9)
}
 0x75b   :  { %2683 = dma.vmem_to_hbm [thread:$0]  %s2681_s22, 32, %s3503_s13, [#allocation9]  }
 0x75c   :  { %3097 = dma.done.wait [#allocation9], 32  }
 0x75d   :  { %3098 = vsyncadd [#allocation9], 4294967264 }
 0x75e   :  { %2695 = vsyncpa [#allocation8], 1 }
 0x75f   :  { %2696 = vsyncpa [#allocation9], 1 }
 0x760   :  { %2697 = vsyncmov [#allocation6] }
 0x763   :  { %s2698_s1 = vpop.sfrf %2697 }
 0x764   :  { %p2901_p10 = scmp.ne.s32.totalorder %s2698_s1, 0 }
 0x766   :  { %2702 = shalt.err (%p2901_p10)  }
 0x767   :  { %2704 = vsyncmov [#allocation6 + $0x1] }
 0x76a   :  { %s2705_s9 = vpop.sfrf %2704 }
 0x76b   :  { %p2902_p11 = scmp.ne.s32.totalorder %s2705_s9, 0 }
 0x76d   :  { %2709 = shalt.err (%p2902_p11)  }
 0x76e   :  { %2711 = vsyncmov [#allocation6 + $0x2] }
 0x771   :  { %s2712_s6 = vpop.sfrf %2711 }
 0x772   :  { %p2903_p12 = scmp.ne.s32.totalorder %s2712_s6, 0 }
 0x774   :  { %2716 = shalt.err (%p2903_p12)  }
 0x775   :  { %2718 = vsyncmov [#allocation6 + $0x3] }
 0x778   :  { %s2719_s21 = vpop.sfrf %2718 }
 0x779   :  { %p2904_p13 = scmp.ne.s32.totalorder %s2719_s21, 0 }
 0x77b   :  { %2723 = shalt.err (%p2904_p13)  }

</bundles_post_ra>
